<compile_context>
chip_gen: v7x
topology: tpu7x:2x2x1
jax: 0.10.0
libtpu: 0.0.40
codegen_flags: <defaults>
</compile_context>

<pallas_src>
import functools

import jax
import jax.numpy as jnp
from jax import lax
from jax.experimental import pallas as pl
from jax.experimental.pallas import tpu as pltpu


def _inv_sqrtm(xm, i3, eye, iter_n):
    """Sqrtm.forward semantics: Newton-Schulz approx of x^{-1/2} (iter_n >= 2)."""
    # normA = 1/3 * sum(x * 3*I) == trace(x); eye/i3 are hoisted by the caller.
    norm_a = jnp.sum(xm * eye)
    a = xm / norm_a
    zy = 0.5 * (i3 - a)
    y = jnp.dot(a, zy, preferred_element_type=jnp.float32)   # Y[0]
    z = zy                                                    # Z[0]
    for _ in range(iter_n - 2):
        zy = 0.5 * (i3 - jnp.dot(z, y, preferred_element_type=jnp.float32))
        y_new = jnp.dot(y, zy, preferred_element_type=jnp.float32)
        z = jnp.dot(zy, z, preferred_element_type=jnp.float32)
        y = y_new
    zyz = jnp.dot(
        0.5 * (i3 - jnp.dot(z, y, preferred_element_type=jnp.float32)), z,
        preferred_element_type=jnp.float32)
    return zyz * lax.rsqrt(norm_a)   # ZYZ * normA^{-0.5}


def sice_kernel(x_ref, w_ref, bnb_ref, eps_ref, out_ref, *,
                n_steps, f_lr, f_sparsity, sqrt_iters):
    bb = x_ref.shape[0]
    d = out_ref.shape[-1]
    m = x_ref.shape[-1]

    # ---- constants hoisted once per grid step ----
    eye = (lax.broadcasted_iota(jnp.int32, (d, d), 0) ==
           lax.broadcasted_iota(jnp.int32, (d, d), 1)).astype(jnp.float32)
    i3 = 3.0 * eye
    # I = 1e-10 (everywhere) + 1e-9 * diag(rand(D)) -- rebuilt from the (1,D) row.
    imat = 1e-10 + 1e-9 * (eye * eps_ref[...])

    w = w_ref[...]        # (D, C_in) with eval-BN scale already folded in
    bnb = bnb_ref[...]    # (D, 1) eval-BN bias

    inv_m = 1.0 / float(m)
    # Guard the iterNum == 1 case (reference divides by zero there).
    denom = float(n_steps - 1) if n_steps > 1 else 1.0

    # The bb per-batch chains below are fully independent; unrolling them in
    # one straight-line block lets the scheduler interleave their serial
    # Newton-Schulz / SICE matmuls and hide MXU push->pop latency.
    for bidx in range(bb):
        # ---- conv_dr_block: 1x1 Conv1d (matmul) + eval BatchNorm1d + ReLU ----
        x = x_ref[bidx]                                            # (C_in, M)
        h = jnp.dot(w, x, preferred_element_type=jnp.float32)      # (D, M)
        h = jnp.maximum(h + bnb, 0.0)                              # bias + ReLU

        # ---- Covpool without the dense (M,M) centering matrix ----
        hc = h - jnp.mean(h, axis=-1, keepdims=True)               # center over M
        c = jnp.dot(hc, hc.T, preferred_element_type=jnp.float32) * inv_m
        tr = jnp.sum(c * eye)                                      # trace(C)
        cn = c / tr                                                # normalized mfC

        # ---- mfInvC = inv_sqrtm(mfC + I)^2 ----
        zz = _inv_sqrtm(cn + imat, i3, eye, sqrt_iters)
        llt = jnp.dot(zz, zz, preferred_element_type=jnp.float32)
        cov = cn

        # ---- SICE proximal-gradient iterations ----
        for i in range(n_steps):
            plus = jnp.maximum(llt, 0.0)
            minus = jnp.maximum(-llt, 0.0)
            zz = _inv_sqrtm(llt + imat, i3, eye, sqrt_iters)
            g1 = -jnp.dot(zz, zz, preferred_element_type=jnp.float32)
            g2 = 0.5 * (cov.T + cov)
            g12 = g1 + g2
            f_dec = 1.0 - i / denom
            plus = jnp.maximum(plus - f_lr * f_dec * (g12 + f_sparsity), 0.0)
            minus = jnp.maximum(minus - f_lr * f_dec * (-g12 + f_sparsity), 0.0)
            llt = plus - minus
            llt = 0.5 * (llt + llt.T)

        # ---- mfOut = mfLLT / trace(covpool(x)) ----
        out_ref[bidx] = llt / tr


def sice_forward(x, w, bn_scale, bn_bias, eps_diag, *,
                 iter_num=3, f_lr=5.0, f_sparsity=0.07, sqrt_iters=7,
                 batch_block=None):
    b, c_in, m = x.shape
    d = w.shape[0]
    assert sqrt_iters >= 2, "Newton-Schulz helper requires sqrt_iters >= 2"

    # Batch block: largest divisor of B up to 8 elements per grid step.
    # (On v7x, keeping b // bb >= 2 lets the two TensorCores split the grid.)
    if batch_block is None:
        batch_block = 1
        for cand in range(min(b, 8), 0, -1):
            if b % cand == 0:
                batch_block = cand
                break
    bb = batch_block
    assert b % bb == 0

    # True constant fold of eval-mode BN scale into the 1x1 conv weight.
    w_eff = (bn_scale[:, None] * w).astype(jnp.float32)            # (D, C_in)
    bias_col = bn_bias.reshape(d, 1).astype(jnp.float32)           # (D, 1)
    eps_row = eps_diag.reshape(1, d).astype(jnp.float32)           # (1, D)

    kernel = functools.partial(sice_kernel, n_steps=iter_num, f_lr=f_lr,
                               f_sparsity=f_sparsity, sqrt_iters=sqrt_iters)

    mf_out = pl.pallas_call(
        kernel,
        out_shape=jax.ShapeDtypeStruct((b, d, d), jnp.float32),
        grid=(b // bb,),
        in_specs=[
            pl.BlockSpec((bb, c_in, m), lambda i: (i, 0, 0)),   # x, batch block
            pl.BlockSpec((d, c_in), lambda i: (0, 0)),          # folded conv weight
            pl.BlockSpec((d, 1), lambda i: (0, 0)),             # BN bias
            pl.BlockSpec((1, d), lambda i: (0, 0)),             # eps diagonal row
        ],
        out_specs=pl.BlockSpec((bb, d, d), lambda i: (i, 0, 0)),
        compiler_params=pltpu.CompilerParams(dimension_semantics=("parallel",)),
    )(x, w_eff, bias_col, eps_row)

    # ---- Triuvec (glue): upper-triangular (incl. diag) extraction ----
    mask = jnp.triu(jnp.ones((d, d), dtype=bool)).reshape(-1)
    idx = jnp.nonzero(mask, size=d * (d + 1) // 2)[0]
    # PyTorch x[:, index] with index of shape (n,1) yields (B, n, 1)
    y = mf_out.reshape(b, d * d)[:, idx][:, :, None]
    return y


if __name__ == "__main__":
    key = jax.random.PRNGKey(0)
    B, C_IN, DR, M = 2, 32, 16, 64          # SICE(input_dim=32, dimension_reduction=16)
    ITER_NUM, SICE_LR, SPARSITY = 3, 5.0, 0.07

    k1, k2, k3 = jax.random.split(key, 3)
    x = jax.random.normal(k1, (B, C_IN, M), dtype=jnp.float32)

    # Conv1d(C_IN, DR, kernel=1, bias=False): kaiming_normal fan_out/relu -> std=sqrt(2/DR)
    w = jax.random.normal(k2, (DR, C_IN), dtype=jnp.float32) * jnp.sqrt(2.0 / DR)

    # BatchNorm1d(DR) deterministic init: gamma=1, beta=0, running_mean=0, running_var=1
    bn_eps = 1e-5
    gamma = jnp.ones((DR,), jnp.float32)
    beta = jnp.zeros((DR,), jnp.float32)
    r_mean = jnp.zeros((DR,), jnp.float32)
    r_var = jnp.ones((DR,), jnp.float32)
    bn_scale = gamma / jnp.sqrt(r_var + bn_eps)
    bn_bias = beta - r_mean * bn_scale

    # torch.rand(D) equivalent for the tiny diagonal regularizer
    eps_diag = jax.random.uniform(k3, (DR,), dtype=jnp.float32)

    out = sice_forward(x, w, bn_scale, bn_bias, eps_diag,
                       iter_num=ITER_NUM, f_lr=SICE_LR, f_sparsity=SPARSITY)
    out = jax.block_until_ready(out)
    assert out.shape == (B, DR * (DR + 1) // 2, 1), out.shape
    assert bool(jnp.all(jnp.isfinite(out)))
    print("KERNEL_OK")
</pallas_src>

<mosaic_0001>
module attributes {stable_mosaic.version = 11 : i64} {
  func.func @sice_kernel(%arg0: i32, %arg1: memref<2x32x64xf32, #tpu.memory_space<vmem>>, %arg2: memref<16x32xf32, #tpu.memory_space<vmem>>, %arg3: memref<16x1xf32, #tpu.memory_space<vmem>>, %arg4: memref<1x16xf32, #tpu.memory_space<vmem>>, %arg5: memref<2x16x16xf32, #tpu.memory_space<vmem>>) attributes {dimension_semantics = [#tpu.dimension_semantics<parallel>], iteration_bounds = array<i64: 1>, scalar_prefetch = 0 : i64, scratch_operands = 0 : i64, tpu.core_type = #tpu.core_type<tc>, window_params = [{transform_indices = @transform_0, window_bounds = array<i64: 2, 32, 64>}, {pipeline_mode = #tpu.pipeline_mode<synchronous>, transform_indices = @transform_1, window_bounds = array<i64: 16, 32>}, {pipeline_mode = #tpu.pipeline_mode<synchronous>, transform_indices = @transform_2, window_bounds = array<i64: 16, 1>}, {pipeline_mode = #tpu.pipeline_mode<synchronous>, transform_indices = @transform_3, window_bounds = array<i64: 1, 16>}, {transform_indices = @transform_4, window_bounds = array<i64: 2, 16, 16>}]} {
    %0 = tpu.iota {dimensions = array<i32: 0>} : vector<16x16xi32>
    %1 = tpu.iota {dimensions = array<i32: 1>} : vector<16x16xi32>
    %2 = arith.cmpi eq, %0, %1 : vector<16x16xi32>
    %3 = arith.extui %2 : vector<16x16xi1> to vector<16x16xi32>
    %4 = arith.sitofp %3 : vector<16x16xi32> to vector<16x16xf32>
    %cst = arith.constant 3.000000e+00 : f32
    %5 = vector.broadcast %cst : f32 to vector<16x16xf32>
    %6 = arith.mulf %5, %4 : vector<16x16xf32>
    %c0 = arith.constant 0 : index
    %c0_0 = arith.constant 0 : index
    %7 = vector.load %arg4[%c0, %c0_0] : memref<1x16xf32, #tpu.memory_space<vmem>>, vector<1x16xf32>
    %8 = vector.broadcast %7 : vector<1x16xf32> to vector<16x16xf32>
    %9 = arith.mulf %4, %8 : vector<16x16xf32>
    %cst_1 = arith.constant 9.99999971E-10 : f32
    %10 = vector.broadcast %cst_1 : f32 to vector<16x16xf32>
    %11 = arith.mulf %10, %9 : vector<16x16xf32>
    %cst_2 = arith.constant 1.000000e-10 : f32
    %12 = vector.broadcast %cst_2 : f32 to vector<16x16xf32>
    %13 = arith.addf %12, %11 : vector<16x16xf32>
    %c0_3 = arith.constant 0 : index
    %c0_4 = arith.constant 0 : index
    %14 = vector.load %arg2[%c0_3, %c0_4] : memref<16x32xf32, #tpu.memory_space<vmem>>, vector<16x32xf32>
    %c0_5 = arith.constant 0 : index
    %c0_6 = arith.constant 0 : index
    %15 = vector.load %arg3[%c0_5, %c0_6] : memref<16x1xf32, #tpu.memory_space<vmem>>, vector<16x1xf32>
    %c0_7 = arith.constant 0 : index
    %c0_8 = arith.constant 0 : index
    %c0_9 = arith.constant 0 : index
    %16 = vector.load %arg1[%c0_7, %c0_8, %c0_9] : memref<2x32x64xf32, #tpu.memory_space<vmem>>, vector<1x32x64xf32>
    %17 = vector.shape_cast %16 : vector<1x32x64xf32> to vector<32x64xf32>
    %cst_10 = arith.constant dense<0.000000e+00> : vector<16x64xf32>
    %18 = tpu.matmul %14, %17, %cst_10 {dimension_numbers = #tpu.dot_dimension_numbers<[1], [0], [0], [1], [0, 0, 1, 1], [], []>} : vector<16x32xf32>, vector<32x64xf32>, vector<16x64xf32> -> vector<16x64xf32>
    %19 = vector.broadcast %15 : vector<16x1xf32> to vector<16x64xf32>
    %20 = arith.addf %18, %19 : vector<16x64xf32>
    %cst_11 = arith.constant 0.000000e+00 : f32
    %21 = vector.broadcast %cst_11 : f32 to vector<16x64xf32>
    %22 = arith.maximumf %20, %21 : vector<16x64xf32>
    %cst_12 = arith.constant dense<0.000000e+00> : vector<16xf32>
    %23 = vector.multi_reduction <add>, %22, %cst_12 [1] : vector<16x64xf32> to vector<16xf32>
    %24 = vector.shape_cast %23 : vector<16xf32> to vector<16x1xf32>
    %cst_13 = arith.constant 6.400000e+01 : f32
    %25 = vector.broadcast %cst_13 : f32 to vector<16x1xf32>
    %26 = arith.divf %24, %25 : vector<16x1xf32>
    %27 = vector.broadcast %26 : vector<16x1xf32> to vector<16x64xf32>
    %28 = arith.subf %22, %27 : vector<16x64xf32>
    %29 = tpu.transpose %28, [1, 0] : vector<16x64xf32> -> vector<64x16xf32>
    %cst_14 = arith.constant dense<0.000000e+00> : vector<16x16xf32>
    %30 = tpu.matmul %28, %29, %cst_14 {dimension_numbers = #tpu.dot_dimension_numbers<[1], [0], [0], [1], [0, 0, 1, 1], [], []>} : vector<16x64xf32>, vector<64x16xf32>, vector<16x16xf32> -> vector<16x16xf32>
    %cst_15 = arith.constant 1.562500e-02 : f32
    %31 = vector.broadcast %cst_15 : f32 to vector<16x16xf32>
    %32 = arith.mulf %30, %31 : vector<16x16xf32>
    %33 = arith.mulf %32, %4 : vector<16x16xf32>
    %34 = vector.shape_cast %33 : vector<16x16xf32> to vector<1x16x16xf32>
    %cst_16 = arith.constant dense<0.000000e+00> : vector<1xf32>
    %35 = vector.multi_reduction <add>, %34, %cst_16 [1, 2] : vector<1x16x16xf32> to vector<1xf32>
    %36 = vector.shape_cast %35 : vector<1xf32> to vector<1x1x1xf32>
    %37 = vector.extract %36[0, 0, 0] : f32 from vector<1x1x1xf32>
    %38 = vector.broadcast %37 : f32 to vector<16x16xf32>
    %39 = arith.divf %32, %38 : vector<16x16xf32>
    %40 = arith.addf %39, %13 : vector<16x16xf32>
    %41 = arith.mulf %40, %4 : vector<16x16xf32>
    %42 = vector.shape_cast %41 : vector<16x16xf32> to vector<1x16x16xf32>
    %cst_17 = arith.constant dense<0.000000e+00> : vector<1xf32>
    %43 = vector.multi_reduction <add>, %42, %cst_17 [1, 2] : vector<1x16x16xf32> to vector<1xf32>
    %44 = vector.shape_cast %43 : vector<1xf32> to vector<1x1x1xf32>
    %45 = vector.extract %44[0, 0, 0] : f32 from vector<1x1x1xf32>
    %46 = vector.broadcast %45 : f32 to vector<16x16xf32>
    %47 = arith.divf %40, %46 : vector<16x16xf32>
    %48 = arith.subf %6, %47 : vector<16x16xf32>
    %cst_18 = arith.constant 5.000000e-01 : f32
    %49 = vector.broadcast %cst_18 : f32 to vector<16x16xf32>
    %50 = arith.mulf %49, %48 : vector<16x16xf32>
    %cst_19 = arith.constant dense<0.000000e+00> : vector<16x16xf32>
    %51 = tpu.matmul %47, %50, %cst_19 {dimension_numbers = #tpu.dot_dimension_numbers<[1], [0], [0], [1], [0, 0, 1, 1], [], []>} : vector<16x16xf32>, vector<16x16xf32>, vector<16x16xf32> -> vector<16x16xf32>
    %cst_20 = arith.constant dense<0.000000e+00> : vector<16x16xf32>
    %52 = tpu.matmul %50, %51, %cst_20 {dimension_numbers = #tpu.dot_dimension_numbers<[1], [0], [0], [1], [0, 0, 1, 1], [], []>} : vector<16x16xf32>, vector<16x16xf32>, vector<16x16xf32> -> vector<16x16xf32>
    %53 = arith.subf %6, %52 : vector<16x16xf32>
    %cst_21 = arith.constant 5.000000e-01 : f32
    %54 = vector.broadcast %cst_21 : f32 to vector<16x16xf32>
    %55 = arith.mulf %54, %53 : vector<16x16xf32>
    %cst_22 = arith.constant dense<0.000000e+00> : vector<16x16xf32>
    %56 = tpu.matmul %51, %55, %cst_22 {dimension_numbers = #tpu.dot_dimension_numbers<[1], [0], [0], [1], [0, 0, 1, 1], [], []>} : vector<16x16xf32>, vector<16x16xf32>, vector<16x16xf32> -> vector<16x16xf32>
    %cst_23 = arith.constant dense<0.000000e+00> : vector<16x16xf32>
    %57 = tpu.matmul %55, %50, %cst_23 {dimension_numbers = #tpu.dot_dimension_numbers<[1], [0], [0], [1], [0, 0, 1, 1], [], []>} : vector<16x16xf32>, vector<16x16xf32>, vector<16x16xf32> -> vector<16x16xf32>
    %cst_24 = arith.constant dense<0.000000e+00> : vector<16x16xf32>
    %58 = tpu.matmul %57, %56, %cst_24 {dimension_numbers = #tpu.dot_dimension_numbers<[1], [0], [0], [1], [0, 0, 1, 1], [], []>} : vector<16x16xf32>, vector<16x16xf32>, vector<16x16xf32> -> vector<16x16xf32>
    %59 = arith.subf %6, %58 : vector<16x16xf32>
    %cst_25 = arith.constant 5.000000e-01 : f32
    %60 = vector.broadcast %cst_25 : f32 to vector<16x16xf32>
    %61 = arith.mulf %60, %59 : vector<16x16xf32>
    %cst_26 = arith.constant dense<0.000000e+00> : vector<16x16xf32>
    %62 = tpu.matmul %56, %61, %cst_26 {dimension_numbers = #tpu.dot_dimension_numbers<[1], [0], [0], [1], [0, 0, 1, 1], [], []>} : vector<16x16xf32>, vector<16x16xf32>, vector<16x16xf32> -> vector<16x16xf32>
    %cst_27 = arith.constant dense<0.000000e+00> : vector<16x16xf32>
    %63 = tpu.matmul %61, %57, %cst_27 {dimension_numbers = #tpu.dot_dimension_numbers<[1], [0], [0], [1], [0, 0, 1, 1], [], []>} : vector<16x16xf32>, vector<16x16xf32>, vector<16x16xf32> -> vector<16x16xf32>
    %cst_28 = arith.constant dense<0.000000e+00> : vector<16x16xf32>
    %64 = tpu.matmul %63, %62, %cst_28 {dimension_numbers = #tpu.dot_dimension_numbers<[1], [0], [0], [1], [0, 0, 1, 1], [], []>} : vector<16x16xf32>, vector<16x16xf32>, vector<16x16xf32> -> vector<16x16xf32>
    %65 = arith.subf %6, %64 : vector<16x16xf32>
    %cst_29 = arith.constant 5.000000e-01 : f32
    %66 = vector.broadcast %cst_29 : f32 to vector<16x16xf32>
    %67 = arith.mulf %66, %65 : vector<16x16xf32>
    %cst_30 = arith.constant dense<0.000000e+00> : vector<16x16xf32>
    %68 = tpu.matmul %62, %67, %cst_30 {dimension_numbers = #tpu.dot_dimension_numbers<[1], [0], [0], [1], [0, 0, 1, 1], [], []>} : vector<16x16xf32>, vector<16x16xf32>, vector<16x16xf32> -> vector<16x16xf32>
    %cst_31 = arith.constant dense<0.000000e+00> : vector<16x16xf32>
    %69 = tpu.matmul %67, %63, %cst_31 {dimension_numbers = #tpu.dot_dimension_numbers<[1], [0], [0], [1], [0, 0, 1, 1], [], []>} : vector<16x16xf32>, vector<16x16xf32>, vector<16x16xf32> -> vector<16x16xf32>
    %cst_32 = arith.constant dense<0.000000e+00> : vector<16x16xf32>
    %70 = tpu.matmul %69, %68, %cst_32 {dimension_numbers = #tpu.dot_dimension_numbers<[1], [0], [0], [1], [0, 0, 1, 1], [], []>} : vector<16x16xf32>, vector<16x16xf32>, vector<16x16xf32> -> vector<16x16xf32>
    %71 = arith.subf %6, %70 : vector<16x16xf32>
    %cst_33 = arith.constant 5.000000e-01 : f32
    %72 = vector.broadcast %cst_33 : f32 to vector<16x16xf32>
    %73 = arith.mulf %72, %71 : vector<16x16xf32>
    %cst_34 = arith.constant dense<0.000000e+00> : vector<16x16xf32>
    %74 = tpu.matmul %68, %73, %cst_34 {dimension_numbers = #tpu.dot_dimension_numbers<[1], [0], [0], [1], [0, 0, 1, 1], [], []>} : vector<16x16xf32>, vector<16x16xf32>, vector<16x16xf32> -> vector<16x16xf32>
    %cst_35 = arith.constant dense<0.000000e+00> : vector<16x16xf32>
    %75 = tpu.matmul %73, %69, %cst_35 {dimension_numbers = #tpu.dot_dimension_numbers<[1], [0], [0], [1], [0, 0, 1, 1], [], []>} : vector<16x16xf32>, vector<16x16xf32>, vector<16x16xf32> -> vector<16x16xf32>
    %cst_36 = arith.constant dense<0.000000e+00> : vector<16x16xf32>
    %76 = tpu.matmul %75, %74, %cst_36 {dimension_numbers = #tpu.dot_dimension_numbers<[1], [0], [0], [1], [0, 0, 1, 1], [], []>} : vector<16x16xf32>, vector<16x16xf32>, vector<16x16xf32> -> vector<16x16xf32>
    %77 = arith.subf %6, %76 : vector<16x16xf32>
    %cst_37 = arith.constant 5.000000e-01 : f32
    %78 = vector.broadcast %cst_37 : f32 to vector<16x16xf32>
    %79 = arith.mulf %78, %77 : vector<16x16xf32>
    %cst_38 = arith.constant dense<0.000000e+00> : vector<16x16xf32>
    %80 = tpu.matmul %74, %79, %cst_38 {dimension_numbers = #tpu.dot_dimension_numbers<[1], [0], [0], [1], [0, 0, 1, 1], [], []>} : vector<16x16xf32>, vector<16x16xf32>, vector<16x16xf32> -> vector<16x16xf32>
    %cst_39 = arith.constant dense<0.000000e+00> : vector<16x16xf32>
    %81 = tpu.matmul %79, %75, %cst_39 {dimension_numbers = #tpu.dot_dimension_numbers<[1], [0], [0], [1], [0, 0, 1, 1], [], []>} : vector<16x16xf32>, vector<16x16xf32>, vector<16x16xf32> -> vector<16x16xf32>
    %cst_40 = arith.constant dense<0.000000e+00> : vector<16x16xf32>
    %82 = tpu.matmul %81, %80, %cst_40 {dimension_numbers = #tpu.dot_dimension_numbers<[1], [0], [0], [1], [0, 0, 1, 1], [], []>} : vector<16x16xf32>, vector<16x16xf32>, vector<16x16xf32> -> vector<16x16xf32>
    %83 = arith.subf %6, %82 : vector<16x16xf32>
    %cst_41 = arith.constant 5.000000e-01 : f32
    %84 = vector.broadcast %cst_41 : f32 to vector<16x16xf32>
    %85 = arith.mulf %84, %83 : vector<16x16xf32>
    %cst_42 = arith.constant dense<0.000000e+00> : vector<16x16xf32>
    %86 = tpu.matmul %85, %81, %cst_42 {dimension_numbers = #tpu.dot_dimension_numbers<[1], [0], [0], [1], [0, 0, 1, 1], [], []>} : vector<16x16xf32>, vector<16x16xf32>, vector<16x16xf32> -> vector<16x16xf32>
    %87 = math.rsqrt %45 : f32
    %88 = vector.broadcast %87 : f32 to vector<16x16xf32>
    %89 = arith.mulf %86, %88 : vector<16x16xf32>
    %cst_43 = arith.constant dense<0.000000e+00> : vector<16x16xf32>
    %90 = tpu.matmul %89, %89, %cst_43 {dimension_numbers = #tpu.dot_dimension_numbers<[1], [0], [0], [1], [0, 0, 1, 1], [], []>} : vector<16x16xf32>, vector<16x16xf32>, vector<16x16xf32> -> vector<16x16xf32>
    %cst_44 = arith.constant 0.000000e+00 : f32
    %91 = vector.broadcast %cst_44 : f32 to vector<16x16xf32>
    %92 = arith.maximumf %90, %91 : vector<16x16xf32>
    %cst_45 = arith.constant 0.000000e+00 : f32
    %93 = vector.broadcast %cst_45 : f32 to vector<16x16xf32>
    %94 = arith.subf %93, %90 : vector<16x16xf32>
    %cst_46 = arith.constant 0.000000e+00 : f32
    %95 = vector.broadcast %cst_46 : f32 to vector<16x16xf32>
    %96 = arith.maximumf %94, %95 : vector<16x16xf32>
    %97 = arith.addf %90, %13 : vector<16x16xf32>
    %98 = arith.mulf %97, %4 : vector<16x16xf32>
    %99 = vector.shape_cast %98 : vector<16x16xf32> to vector<1x16x16xf32>
    %cst_47 = arith.constant dense<0.000000e+00> : vector<1xf32>
    %100 = vector.multi_reduction <add>, %99, %cst_47 [1, 2] : vector<1x16x16xf32> to vector<1xf32>
    %101 = vector.shape_cast %100 : vector<1xf32> to vector<1x1x1xf32>
    %102 = vector.extract %101[0, 0, 0] : f32 from vector<1x1x1xf32>
    %103 = vector.broadcast %102 : f32 to vector<16x16xf32>
    %104 = arith.divf %97, %103 : vector<16x16xf32>
    %105 = arith.subf %6, %104 : vector<16x16xf32>
    %cst_48 = arith.constant 5.000000e-01 : f32
    %106 = vector.broadcast %cst_48 : f32 to vector<16x16xf32>
    %107 = arith.mulf %106, %105 : vector<16x16xf32>
    %cst_49 = arith.constant dense<0.000000e+00> : vector<16x16xf32>
    %108 = tpu.matmul %104, %107, %cst_49 {dimension_numbers = #tpu.dot_dimension_numbers<[1], [0], [0], [1], [0, 0, 1, 1], [], []>} : vector<16x16xf32>, vector<16x16xf32>, vector<16x16xf32> -> vector<16x16xf32>
    %cst_50 = arith.constant dense<0.000000e+00> : vector<16x16xf32>
    %109 = tpu.matmul %107, %108, %cst_50 {dimension_numbers = #tpu.dot_dimension_numbers<[1], [0], [0], [1], [0, 0, 1, 1], [], []>} : vector<16x16xf32>, vector<16x16xf32>, vector<16x16xf32> -> vector<16x16xf32>
    %110 = arith.subf %6, %109 : vector<16x16xf32>
    %cst_51 = arith.constant 5.000000e-01 : f32
    %111 = vector.broadcast %cst_51 : f32 to vector<16x16xf32>
    %112 = arith.mulf %111, %110 : vector<16x16xf32>
    %cst_52 = arith.constant dense<0.000000e+00> : vector<16x16xf32>
    %113 = tpu.matmul %108, %112, %cst_52 {dimension_numbers = #tpu.dot_dimension_numbers<[1], [0], [0], [1], [0, 0, 1, 1], [], []>} : vector<16x16xf32>, vector<16x16xf32>, vector<16x16xf32> -> vector<16x16xf32>
    %cst_53 = arith.constant dense<0.000000e+00> : vector<16x16xf32>
    %114 = tpu.matmul %112, %107, %cst_53 {dimension_numbers = #tpu.dot_dimension_numbers<[1], [0], [0], [1], [0, 0, 1, 1], [], []>} : vector<16x16xf32>, vector<16x16xf32>, vector<16x16xf32> -> vector<16x16xf32>
    %cst_54 = arith.constant dense<0.000000e+00> : vector<16x16xf32>
    %115 = tpu.matmul %114, %113, %cst_54 {dimension_numbers = #tpu.dot_dimension_numbers<[1], [0], [0], [1], [0, 0, 1, 1], [], []>} : vector<16x16xf32>, vector<16x16xf32>, vector<16x16xf32> -> vector<16x16xf32>
    %116 = arith.subf %6, %115 : vector<16x16xf32>
    %cst_55 = arith.constant 5.000000e-01 : f32
    %117 = vector.broadcast %cst_55 : f32 to vector<16x16xf32>
    %118 = arith.mulf %117, %116 : vector<16x16xf32>
    %cst_56 = arith.constant dense<0.000000e+00> : vector<16x16xf32>
    %119 = tpu.matmul %113, %118, %cst_56 {dimension_numbers = #tpu.dot_dimension_numbers<[1], [0], [0], [1], [0, 0, 1, 1], [], []>} : vector<16x16xf32>, vector<16x16xf32>, vector<16x16xf32> -> vector<16x16xf32>
    %cst_57 = arith.constant dense<0.000000e+00> : vector<16x16xf32>
    %120 = tpu.matmul %118, %114, %cst_57 {dimension_numbers = #tpu.dot_dimension_numbers<[1], [0], [0], [1], [0, 0, 1, 1], [], []>} : vector<16x16xf32>, vector<16x16xf32>, vector<16x16xf32> -> vector<16x16xf32>
    %cst_58 = arith.constant dense<0.000000e+00> : vector<16x16xf32>
    %121 = tpu.matmul %120, %119, %cst_58 {dimension_numbers = #tpu.dot_dimension_numbers<[1], [0], [0], [1], [0, 0, 1, 1], [], []>} : vector<16x16xf32>, vector<16x16xf32>, vector<16x16xf32> -> vector<16x16xf32>
    %122 = arith.subf %6, %121 : vector<16x16xf32>
    %cst_59 = arith.constant 5.000000e-01 : f32
    %123 = vector.broadcast %cst_59 : f32 to vector<16x16xf32>
    %124 = arith.mulf %123, %122 : vector<16x16xf32>
    %cst_60 = arith.constant dense<0.000000e+00> : vector<16x16xf32>
    %125 = tpu.matmul %119, %124, %cst_60 {dimension_numbers = #tpu.dot_dimension_numbers<[1], [0], [0], [1], [0, 0, 1, 1], [], []>} : vector<16x16xf32>, vector<16x16xf32>, vector<16x16xf32> -> vector<16x16xf32>
    %cst_61 = arith.constant dense<0.000000e+00> : vector<16x16xf32>
    %126 = tpu.matmul %124, %120, %cst_61 {dimension_numbers = #tpu.dot_dimension_numbers<[1], [0], [0], [1], [0, 0, 1, 1], [], []>} : vector<16x16xf32>, vector<16x16xf32>, vector<16x16xf32> -> vector<16x16xf32>
    %cst_62 = arith.constant dense<0.000000e+00> : vector<16x16xf32>
    %127 = tpu.matmul %126, %125, %cst_62 {dimension_numbers = #tpu.dot_dimension_numbers<[1], [0], [0], [1], [0, 0, 1, 1], [], []>} : vector<16x16xf32>, vector<16x16xf32>, vector<16x16xf32> -> vector<16x16xf32>
    %128 = arith.subf %6, %127 : vector<16x16xf32>
    %cst_63 = arith.constant 5.000000e-01 : f32
    %129 = vector.broadcast %cst_63 : f32 to vector<16x16xf32>
    %130 = arith.mulf %129, %128 : vector<16x16xf32>
    %cst_64 = arith.constant dense<0.000000e+00> : vector<16x16xf32>
    %131 = tpu.matmul %125, %130, %cst_64 {dimension_numbers = #tpu.dot_dimension_numbers<[1], [0], [0], [1], [0, 0, 1, 1], [], []>} : vector<16x16xf32>, vector<16x16xf32>, vector<16x16xf32> -> vector<16x16xf32>
    %cst_65 = arith.constant dense<0.000000e+00> : vector<16x16xf32>
    %132 = tpu.matmul %130, %126, %cst_65 {dimension_numbers = #tpu.dot_dimension_numbers<[1], [0], [0], [1], [0, 0, 1, 1], [], []>} : vector<16x16xf32>, vector<16x16xf32>, vector<16x16xf32> -> vector<16x16xf32>
    %cst_66 = arith.constant dense<0.000000e+00> : vector<16x16xf32>
    %133 = tpu.matmul %132, %131, %cst_66 {dimension_numbers = #tpu.dot_dimension_numbers<[1], [0], [0], [1], [0, 0, 1, 1], [], []>} : vector<16x16xf32>, vector<16x16xf32>, vector<16x16xf32> -> vector<16x16xf32>
    %134 = arith.subf %6, %133 : vector<16x16xf32>
    %cst_67 = arith.constant 5.000000e-01 : f32
    %135 = vector.broadcast %cst_67 : f32 to vector<16x16xf32>
    %136 = arith.mulf %135, %134 : vector<16x16xf32>
    %cst_68 = arith.constant dense<0.000000e+00> : vector<16x16xf32>
    %137 = tpu.matmul %131, %136, %cst_68 {dimension_numbers = #tpu.dot_dimension_numbers<[1], [0], [0], [1], [0, 0, 1, 1], [], []>} : vector<16x16xf32>, vector<16x16xf32>, vector<16x16xf32> -> vector<16x16xf32>
    %cst_69 = arith.constant dense<0.000000e+00> : vector<16x16xf32>
    %138 = tpu.matmul %136, %132, %cst_69 {dimension_numbers = #tpu.dot_dimension_numbers<[1], [0], [0], [1], [0, 0, 1, 1], [], []>} : vector<16x16xf32>, vector<16x16xf32>, vector<16x16xf32> -> vector<16x16xf32>
    %cst_70 = arith.constant dense<0.000000e+00> : vector<16x16xf32>
    %139 = tpu.matmul %138, %137, %cst_70 {dimension_numbers = #tpu.dot_dimension_numbers<[1], [0], [0], [1], [0, 0, 1, 1], [], []>} : vector<16x16xf32>, vector<16x16xf32>, vector<16x16xf32> -> vector<16x16xf32>
    %140 = arith.subf %6, %139 : vector<16x16xf32>
    %cst_71 = arith.constant 5.000000e-01 : f32
    %141 = vector.broadcast %cst_71 : f32 to vector<16x16xf32>
    %142 = arith.mulf %141, %140 : vector<16x16xf32>
    %cst_72 = arith.constant dense<0.000000e+00> : vector<16x16xf32>
    %143 = tpu.matmul %142, %138, %cst_72 {dimension_numbers = #tpu.dot_dimension_numbers<[1], [0], [0], [1], [0, 0, 1, 1], [], []>} : vector<16x16xf32>, vector<16x16xf32>, vector<16x16xf32> -> vector<16x16xf32>
    %144 = math.rsqrt %102 : f32
    %145 = vector.broadcast %144 : f32 to vector<16x16xf32>
    %146 = arith.mulf %143, %145 : vector<16x16xf32>
    %cst_73 = arith.constant dense<0.000000e+00> : vector<16x16xf32>
    %147 = tpu.matmul %146, %146, %cst_73 {dimension_numbers = #tpu.dot_dimension_numbers<[1], [0], [0], [1], [0, 0, 1, 1], [], []>} : vector<16x16xf32>, vector<16x16xf32>, vector<16x16xf32> -> vector<16x16xf32>
    %cst_74 = arith.constant 0.000000e+00 : f32
    %148 = vector.broadcast %cst_74 : f32 to vector<16x16xf32>
    %149 = arith.subf %148, %147 : vector<16x16xf32>
    %150 = tpu.transpose %39, [1, 0] : vector<16x16xf32> -> vector<16x16xf32>
    %151 = arith.addf %150, %39 : vector<16x16xf32>
    %cst_75 = arith.constant 5.000000e-01 : f32
    %152 = vector.broadcast %cst_75 : f32 to vector<16x16xf32>
    %153 = arith.mulf %152, %151 : vector<16x16xf32>
    %154 = arith.addf %149, %153 : vector<16x16xf32>
    %cst_76 = arith.constant 7.000000e-02 : f32
    %155 = vector.broadcast %cst_76 : f32 to vector<16x16xf32>
    %156 = arith.addf %154, %155 : vector<16x16xf32>
    %cst_77 = arith.constant 5.000000e+00 : f32
    %157 = vector.broadcast %cst_77 : f32 to vector<16x16xf32>
    %158 = arith.mulf %157, %156 : vector<16x16xf32>
    %159 = arith.subf %92, %158 : vector<16x16xf32>
    %cst_78 = arith.constant 0.000000e+00 : f32
    %160 = vector.broadcast %cst_78 : f32 to vector<16x16xf32>
    %161 = arith.maximumf %159, %160 : vector<16x16xf32>
    %cst_79 = arith.constant 0.000000e+00 : f32
    %162 = vector.broadcast %cst_79 : f32 to vector<16x16xf32>
    %163 = arith.subf %162, %154 : vector<16x16xf32>
    %cst_80 = arith.constant 7.000000e-02 : f32
    %164 = vector.broadcast %cst_80 : f32 to vector<16x16xf32>
    %165 = arith.addf %163, %164 : vector<16x16xf32>
    %cst_81 = arith.constant 5.000000e+00 : f32
    %166 = vector.broadcast %cst_81 : f32 to vector<16x16xf32>
    %167 = arith.mulf %166, %165 : vector<16x16xf32>
    %168 = arith.subf %96, %167 : vector<16x16xf32>
    %cst_82 = arith.constant 0.000000e+00 : f32
    %169 = vector.broadcast %cst_82 : f32 to vector<16x16xf32>
    %170 = arith.maximumf %168, %169 : vector<16x16xf32>
    %171 = arith.subf %161, %170 : vector<16x16xf32>
    %172 = tpu.transpose %171, [1, 0] : vector<16x16xf32> -> vector<16x16xf32>
    %173 = arith.addf %171, %172 : vector<16x16xf32>
    %cst_83 = arith.constant 5.000000e-01 : f32
    %174 = vector.broadcast %cst_83 : f32 to vector<16x16xf32>
    %175 = arith.mulf %174, %173 : vector<16x16xf32>
    %cst_84 = arith.constant 0.000000e+00 : f32
    %176 = vector.broadcast %cst_84 : f32 to vector<16x16xf32>
    %177 = arith.maximumf %175, %176 : vector<16x16xf32>
    %cst_85 = arith.constant 0.000000e+00 : f32
    %178 = vector.broadcast %cst_85 : f32 to vector<16x16xf32>
    %179 = arith.subf %178, %175 : vector<16x16xf32>
    %cst_86 = arith.constant 0.000000e+00 : f32
    %180 = vector.broadcast %cst_86 : f32 to vector<16x16xf32>
    %181 = arith.maximumf %179, %180 : vector<16x16xf32>
    %182 = arith.addf %175, %13 : vector<16x16xf32>
    %183 = arith.mulf %182, %4 : vector<16x16xf32>
    %184 = vector.shape_cast %183 : vector<16x16xf32> to vector<1x16x16xf32>
    %cst_87 = arith.constant dense<0.000000e+00> : vector<1xf32>
    %185 = vector.multi_reduction <add>, %184, %cst_87 [1, 2] : vector<1x16x16xf32> to vector<1xf32>
    %186 = vector.shape_cast %185 : vector<1xf32> to vector<1x1x1xf32>
    %187 = vector.extract %186[0, 0, 0] : f32 from vector<1x1x1xf32>
    %188 = vector.broadcast %187 : f32 to vector<16x16xf32>
    %189 = arith.divf %182, %188 : vector<16x16xf32>
    %190 = arith.subf %6, %189 : vector<16x16xf32>
    %cst_88 = arith.constant 5.000000e-01 : f32
    %191 = vector.broadcast %cst_88 : f32 to vector<16x16xf32>
    %192 = arith.mulf %191, %190 : vector<16x16xf32>
    %cst_89 = arith.constant dense<0.000000e+00> : vector<16x16xf32>
    %193 = tpu.matmul %189, %192, %cst_89 {dimension_numbers = #tpu.dot_dimension_numbers<[1], [0], [0], [1], [0, 0, 1, 1], [], []>} : vector<16x16xf32>, vector<16x16xf32>, vector<16x16xf32> -> vector<16x16xf32>
    %cst_90 = arith.constant dense<0.000000e+00> : vector<16x16xf32>
    %194 = tpu.matmul %192, %193, %cst_90 {dimension_numbers = #tpu.dot_dimension_numbers<[1], [0], [0], [1], [0, 0, 1, 1], [], []>} : vector<16x16xf32>, vector<16x16xf32>, vector<16x16xf32> -> vector<16x16xf32>
    %195 = arith.subf %6, %194 : vector<16x16xf32>
    %cst_91 = arith.constant 5.000000e-01 : f32
    %196 = vector.broadcast %cst_91 : f32 to vector<16x16xf32>
    %197 = arith.mulf %196, %195 : vector<16x16xf32>
    %cst_92 = arith.constant dense<0.000000e+00> : vector<16x16xf32>
    %198 = tpu.matmul %193, %197, %cst_92 {dimension_numbers = #tpu.dot_dimension_numbers<[1], [0], [0], [1], [0, 0, 1, 1], [], []>} : vector<16x16xf32>, vector<16x16xf32>, vector<16x16xf32> -> vector<16x16xf32>
    %cst_93 = arith.constant dense<0.000000e+00> : vector<16x16xf32>
    %199 = tpu.matmul %197, %192, %cst_93 {dimension_numbers = #tpu.dot_dimension_numbers<[1], [0], [0], [1], [0, 0, 1, 1], [], []>} : vector<16x16xf32>, vector<16x16xf32>, vector<16x16xf32> -> vector<16x16xf32>
    %cst_94 = arith.constant dense<0.000000e+00> : vector<16x16xf32>
    %200 = tpu.matmul %199, %198, %cst_94 {dimension_numbers = #tpu.dot_dimension_numbers<[1], [0], [0], [1], [0, 0, 1, 1], [], []>} : vector<16x16xf32>, vector<16x16xf32>, vector<16x16xf32> -> vector<16x16xf32>
    %201 = arith.subf %6, %200 : vector<16x16xf32>
    %cst_95 = arith.constant 5.000000e-01 : f32
    %202 = vector.broadcast %cst_95 : f32 to vector<16x16xf32>
    %203 = arith.mulf %202, %201 : vector<16x16xf32>
    %cst_96 = arith.constant dense<0.000000e+00> : vector<16x16xf32>
    %204 = tpu.matmul %198, %203, %cst_96 {dimension_numbers = #tpu.dot_dimension_numbers<[1], [0], [0], [1], [0, 0, 1, 1], [], []>} : vector<16x16xf32>, vector<16x16xf32>, vector<16x16xf32> -> vector<16x16xf32>
    %cst_97 = arith.constant dense<0.000000e+00> : vector<16x16xf32>
    %205 = tpu.matmul %203, %199, %cst_97 {dimension_numbers = #tpu.dot_dimension_numbers<[1], [0], [0], [1], [0, 0, 1, 1], [], []>} : vector<16x16xf32>, vector<16x16xf32>, vector<16x16xf32> -> vector<16x16xf32>
    %cst_98 = arith.constant dense<0.000000e+00> : vector<16x16xf32>
    %206 = tpu.matmul %205, %204, %cst_98 {dimension_numbers = #tpu.dot_dimension_numbers<[1], [0], [0], [1], [0, 0, 1, 1], [], []>} : vector<16x16xf32>, vector<16x16xf32>, vector<16x16xf32> -> vector<16x16xf32>
    %207 = arith.subf %6, %206 : vector<16x16xf32>
    %cst_99 = arith.constant 5.000000e-01 : f32
    %208 = vector.broadcast %cst_99 : f32 to vector<16x16xf32>
    %209 = arith.mulf %208, %207 : vector<16x16xf32>
    %cst_100 = arith.constant dense<0.000000e+00> : vector<16x16xf32>
    %210 = tpu.matmul %204, %209, %cst_100 {dimension_numbers = #tpu.dot_dimension_numbers<[1], [0], [0], [1], [0, 0, 1, 1], [], []>} : vector<16x16xf32>, vector<16x16xf32>, vector<16x16xf32> -> vector<16x16xf32>
    %cst_101 = arith.constant dense<0.000000e+00> : vector<16x16xf32>
    %211 = tpu.matmul %209, %205, %cst_101 {dimension_numbers = #tpu.dot_dimension_numbers<[1], [0], [0], [1], [0, 0, 1, 1], [], []>} : vector<16x16xf32>, vector<16x16xf32>, vector<16x16xf32> -> vector<16x16xf32>
    %cst_102 = arith.constant dense<0.000000e+00> : vector<16x16xf32>
    %212 = tpu.matmul %211, %210, %cst_102 {dimension_numbers = #tpu.dot_dimension_numbers<[1], [0], [0], [1], [0, 0, 1, 1], [], []>} : vector<16x16xf32>, vector<16x16xf32>, vector<16x16xf32> -> vector<16x16xf32>
    %213 = arith.subf %6, %212 : vector<16x16xf32>
    %cst_103 = arith.constant 5.000000e-01 : f32
    %214 = vector.broadcast %cst_103 : f32 to vector<16x16xf32>
    %215 = arith.mulf %214, %213 : vector<16x16xf32>
    %cst_104 = arith.constant dense<0.000000e+00> : vector<16x16xf32>
    %216 = tpu.matmul %210, %215, %cst_104 {dimension_numbers = #tpu.dot_dimension_numbers<[1], [0], [0], [1], [0, 0, 1, 1], [], []>} : vector<16x16xf32>, vector<16x16xf32>, vector<16x16xf32> -> vector<16x16xf32>
    %cst_105 = arith.constant dense<0.000000e+00> : vector<16x16xf32>
    %217 = tpu.matmul %215, %211, %cst_105 {dimension_numbers = #tpu.dot_dimension_numbers<[1], [0], [0], [1], [0, 0, 1, 1], [], []>} : vector<16x16xf32>, vector<16x16xf32>, vector<16x16xf32> -> vector<16x16xf32>
    %cst_106 = arith.constant dense<0.000000e+00> : vector<16x16xf32>
    %218 = tpu.matmul %217, %216, %cst_106 {dimension_numbers = #tpu.dot_dimension_numbers<[1], [0], [0], [1], [0, 0, 1, 1], [], []>} : vector<16x16xf32>, vector<16x16xf32>, vector<16x16xf32> -> vector<16x16xf32>
    %219 = arith.subf %6, %218 : vector<16x16xf32>
    %cst_107 = arith.constant 5.000000e-01 : f32
    %220 = vector.broadcast %cst_107 : f32 to vector<16x16xf32>
    %221 = arith.mulf %220, %219 : vector<16x16xf32>
    %cst_108 = arith.constant dense<0.000000e+00> : vector<16x16xf32>
    %222 = tpu.matmul %216, %221, %cst_108 {dimension_numbers = #tpu.dot_dimension_numbers<[1], [0], [0], [1], [0, 0, 1, 1], [], []>} : vector<16x16xf32>, vector<16x16xf32>, vector<16x16xf32> -> vector<16x16xf32>
    %cst_109 = arith.constant dense<0.000000e+00> : vector<16x16xf32>
    %223 = tpu.matmul %221, %217, %cst_109 {dimension_numbers = #tpu.dot_dimension_numbers<[1], [0], [0], [1], [0, 0, 1, 1], [], []>} : vector<16x16xf32>, vector<16x16xf32>, vector<16x16xf32> -> vector<16x16xf32>
    %cst_110 = arith.constant dense<0.000000e+00> : vector<16x16xf32>
    %224 = tpu.matmul %223, %222, %cst_110 {dimension_numbers = #tpu.dot_dimension_numbers<[1], [0], [0], [1], [0, 0, 1, 1], [], []>} : vector<16x16xf32>, vector<16x16xf32>, vector<16x16xf32> -> vector<16x16xf32>
    %225 = arith.subf %6, %224 : vector<16x16xf32>
    %cst_111 = arith.constant 5.000000e-01 : f32
    %226 = vector.broadcast %cst_111 : f32 to vector<16x16xf32>
    %227 = arith.mulf %226, %225 : vector<16x16xf32>
    %cst_112 = arith.constant dense<0.000000e+00> : vector<16x16xf32>
    %228 = tpu.matmul %227, %223, %cst_112 {dimension_numbers = #tpu.dot_dimension_numbers<[1], [0], [0], [1], [0, 0, 1, 1], [], []>} : vector<16x16xf32>, vector<16x16xf32>, vector<16x16xf32> -> vector<16x16xf32>
    %229 = math.rsqrt %187 : f32
    %230 = vector.broadcast %229 : f32 to vector<16x16xf32>
    %231 = arith.mulf %228, %230 : vector<16x16xf32>
    %cst_113 = arith.constant dense<0.000000e+00> : vector<16x16xf32>
    %232 = tpu.matmul %231, %231, %cst_113 {dimension_numbers = #tpu.dot_dimension_numbers<[1], [0], [0], [1], [0, 0, 1, 1], [], []>} : vector<16x16xf32>, vector<16x16xf32>, vector<16x16xf32> -> vector<16x16xf32>
    %cst_114 = arith.constant 0.000000e+00 : f32
    %233 = vector.broadcast %cst_114 : f32 to vector<16x16xf32>
    %234 = arith.subf %233, %232 : vector<16x16xf32>
    %235 = tpu.transpose %39, [1, 0] : vector<16x16xf32> -> vector<16x16xf32>
    %236 = arith.addf %235, %39 : vector<16x16xf32>
    %cst_115 = arith.constant 5.000000e-01 : f32
    %237 = vector.broadcast %cst_115 : f32 to vector<16x16xf32>
    %238 = arith.mulf %237, %236 : vector<16x16xf32>
    %239 = arith.addf %234, %238 : vector<16x16xf32>
    %cst_116 = arith.constant 7.000000e-02 : f32
    %240 = vector.broadcast %cst_116 : f32 to vector<16x16xf32>
    %241 = arith.addf %239, %240 : vector<16x16xf32>
    %cst_117 = arith.constant 2.500000e+00 : f32
    %242 = vector.broadcast %cst_117 : f32 to vector<16x16xf32>
    %243 = arith.mulf %242, %241 : vector<16x16xf32>
    %244 = arith.subf %177, %243 : vector<16x16xf32>
    %cst_118 = arith.constant 0.000000e+00 : f32
    %245 = vector.broadcast %cst_118 : f32 to vector<16x16xf32>
    %246 = arith.maximumf %244, %245 : vector<16x16xf32>
    %cst_119 = arith.constant 0.000000e+00 : f32
    %247 = vector.broadcast %cst_119 : f32 to vector<16x16xf32>
    %248 = arith.subf %247, %239 : vector<16x16xf32>
    %cst_120 = arith.constant 7.000000e-02 : f32
    %249 = vector.broadcast %cst_120 : f32 to vector<16x16xf32>
    %250 = arith.addf %248, %249 : vector<16x16xf32>
    %cst_121 = arith.constant 2.500000e+00 : f32
    %251 = vector.broadcast %cst_121 : f32 to vector<16x16xf32>
    %252 = arith.mulf %251, %250 : vector<16x16xf32>
    %253 = arith.subf %181, %252 : vector<16x16xf32>
    %cst_122 = arith.constant 0.000000e+00 : f32
    %254 = vector.broadcast %cst_122 : f32 to vector<16x16xf32>
    %255 = arith.maximumf %253, %254 : vector<16x16xf32>
    %256 = arith.subf %246, %255 : vector<16x16xf32>
    %257 = tpu.transpose %256, [1, 0] : vector<16x16xf32> -> vector<16x16xf32>
    %258 = arith.addf %256, %257 : vector<16x16xf32>
    %cst_123 = arith.constant 5.000000e-01 : f32
    %259 = vector.broadcast %cst_123 : f32 to vector<16x16xf32>
    %260 = arith.mulf %259, %258 : vector<16x16xf32>
    %cst_124 = arith.constant 0.000000e+00 : f32
    %261 = vector.broadcast %cst_124 : f32 to vector<16x16xf32>
    %262 = arith.maximumf %260, %261 : vector<16x16xf32>
    %cst_125 = arith.constant 0.000000e+00 : f32
    %263 = vector.broadcast %cst_125 : f32 to vector<16x16xf32>
    %264 = arith.subf %263, %260 : vector<16x16xf32>
    %cst_126 = arith.constant 0.000000e+00 : f32
    %265 = vector.broadcast %cst_126 : f32 to vector<16x16xf32>
    %266 = arith.maximumf %264, %265 : vector<16x16xf32>
    %267 = arith.addf %260, %13 : vector<16x16xf32>
    %268 = arith.mulf %267, %4 : vector<16x16xf32>
    %269 = vector.shape_cast %268 : vector<16x16xf32> to vector<1x16x16xf32>
    %cst_127 = arith.constant dense<0.000000e+00> : vector<1xf32>
    %270 = vector.multi_reduction <add>, %269, %cst_127 [1, 2] : vector<1x16x16xf32> to vector<1xf32>
    %271 = vector.shape_cast %270 : vector<1xf32> to vector<1x1x1xf32>
    %272 = vector.extract %271[0, 0, 0] : f32 from vector<1x1x1xf32>
    %273 = vector.broadcast %272 : f32 to vector<16x16xf32>
    %274 = arith.divf %267, %273 : vector<16x16xf32>
    %275 = arith.subf %6, %274 : vector<16x16xf32>
    %cst_128 = arith.constant 5.000000e-01 : f32
    %276 = vector.broadcast %cst_128 : f32 to vector<16x16xf32>
    %277 = arith.mulf %276, %275 : vector<16x16xf32>
    %cst_129 = arith.constant dense<0.000000e+00> : vector<16x16xf32>
    %278 = tpu.matmul %274, %277, %cst_129 {dimension_numbers = #tpu.dot_dimension_numbers<[1], [0], [0], [1], [0, 0, 1, 1], [], []>} : vector<16x16xf32>, vector<16x16xf32>, vector<16x16xf32> -> vector<16x16xf32>
    %cst_130 = arith.constant dense<0.000000e+00> : vector<16x16xf32>
    %279 = tpu.matmul %277, %278, %cst_130 {dimension_numbers = #tpu.dot_dimension_numbers<[1], [0], [0], [1], [0, 0, 1, 1], [], []>} : vector<16x16xf32>, vector<16x16xf32>, vector<16x16xf32> -> vector<16x16xf32>
    %280 = arith.subf %6, %279 : vector<16x16xf32>
    %cst_131 = arith.constant 5.000000e-01 : f32
    %281 = vector.broadcast %cst_131 : f32 to vector<16x16xf32>
    %282 = arith.mulf %281, %280 : vector<16x16xf32>
    %cst_132 = arith.constant dense<0.000000e+00> : vector<16x16xf32>
    %283 = tpu.matmul %278, %282, %cst_132 {dimension_numbers = #tpu.dot_dimension_numbers<[1], [0], [0], [1], [0, 0, 1, 1], [], []>} : vector<16x16xf32>, vector<16x16xf32>, vector<16x16xf32> -> vector<16x16xf32>
    %cst_133 = arith.constant dense<0.000000e+00> : vector<16x16xf32>
    %284 = tpu.matmul %282, %277, %cst_133 {dimension_numbers = #tpu.dot_dimension_numbers<[1], [0], [0], [1], [0, 0, 1, 1], [], []>} : vector<16x16xf32>, vector<16x16xf32>, vector<16x16xf32> -> vector<16x16xf32>
    %cst_134 = arith.constant dense<0.000000e+00> : vector<16x16xf32>
    %285 = tpu.matmul %284, %283, %cst_134 {dimension_numbers = #tpu.dot_dimension_numbers<[1], [0], [0], [1], [0, 0, 1, 1], [], []>} : vector<16x16xf32>, vector<16x16xf32>, vector<16x16xf32> -> vector<16x16xf32>
    %286 = arith.subf %6, %285 : vector<16x16xf32>
    %cst_135 = arith.constant 5.000000e-01 : f32
    %287 = vector.broadcast %cst_135 : f32 to vector<16x16xf32>
    %288 = arith.mulf %287, %286 : vector<16x16xf32>
    %cst_136 = arith.constant dense<0.000000e+00> : vector<16x16xf32>
    %289 = tpu.matmul %283, %288, %cst_136 {dimension_numbers = #tpu.dot_dimension_numbers<[1], [0], [0], [1], [0, 0, 1, 1], [], []>} : vector<16x16xf32>, vector<16x16xf32>, vector<16x16xf32> -> vector<16x16xf32>
    %cst_137 = arith.constant dense<0.000000e+00> : vector<16x16xf32>
    %290 = tpu.matmul %288, %284, %cst_137 {dimension_numbers = #tpu.dot_dimension_numbers<[1], [0], [0], [1], [0, 0, 1, 1], [], []>} : vector<16x16xf32>, vector<16x16xf32>, vector<16x16xf32> -> vector<16x16xf32>
    %cst_138 = arith.constant dense<0.000000e+00> : vector<16x16xf32>
    %291 = tpu.matmul %290, %289, %cst_138 {dimension_numbers = #tpu.dot_dimension_numbers<[1], [0], [0], [1], [0, 0, 1, 1], [], []>} : vector<16x16xf32>, vector<16x16xf32>, vector<16x16xf32> -> vector<16x16xf32>
    %292 = arith.subf %6, %291 : vector<16x16xf32>
    %cst_139 = arith.constant 5.000000e-01 : f32
    %293 = vector.broadcast %cst_139 : f32 to vector<16x16xf32>
    %294 = arith.mulf %293, %292 : vector<16x16xf32>
    %cst_140 = arith.constant dense<0.000000e+00> : vector<16x16xf32>
    %295 = tpu.matmul %289, %294, %cst_140 {dimension_numbers = #tpu.dot_dimension_numbers<[1], [0], [0], [1], [0, 0, 1, 1], [], []>} : vector<16x16xf32>, vector<16x16xf32>, vector<16x16xf32> -> vector<16x16xf32>
    %cst_141 = arith.constant dense<0.000000e+00> : vector<16x16xf32>
    %296 = tpu.matmul %294, %290, %cst_141 {dimension_numbers = #tpu.dot_dimension_numbers<[1], [0], [0], [1], [0, 0, 1, 1], [], []>} : vector<16x16xf32>, vector<16x16xf32>, vector<16x16xf32> -> vector<16x16xf32>
    %cst_142 = arith.constant dense<0.000000e+00> : vector<16x16xf32>
    %297 = tpu.matmul %296, %295, %cst_142 {dimension_numbers = #tpu.dot_dimension_numbers<[1], [0], [0], [1], [0, 0, 1, 1], [], []>} : vector<16x16xf32>, vector<16x16xf32>, vector<16x16xf32> -> vector<16x16xf32>
    %298 = arith.subf %6, %297 : vector<16x16xf32>
    %cst_143 = arith.constant 5.000000e-01 : f32
    %299 = vector.broadcast %cst_143 : f32 to vector<16x16xf32>
    %300 = arith.mulf %299, %298 : vector<16x16xf32>
    %cst_144 = arith.constant dense<0.000000e+00> : vector<16x16xf32>
    %301 = tpu.matmul %295, %300, %cst_144 {dimension_numbers = #tpu.dot_dimension_numbers<[1], [0], [0], [1], [0, 0, 1, 1], [], []>} : vector<16x16xf32>, vector<16x16xf32>, vector<16x16xf32> -> vector<16x16xf32>
    %cst_145 = arith.constant dense<0.000000e+00> : vector<16x16xf32>
    %302 = tpu.matmul %300, %296, %cst_145 {dimension_numbers = #tpu.dot_dimension_numbers<[1], [0], [0], [1], [0, 0, 1, 1], [], []>} : vector<16x16xf32>, vector<16x16xf32>, vector<16x16xf32> -> vector<16x16xf32>
    %cst_146 = arith.constant dense<0.000000e+00> : vector<16x16xf32>
    %303 = tpu.matmul %302, %301, %cst_146 {dimension_numbers = #tpu.dot_dimension_numbers<[1], [0], [0], [1], [0, 0, 1, 1], [], []>} : vector<16x16xf32>, vector<16x16xf32>, vector<16x16xf32> -> vector<16x16xf32>
    %304 = arith.subf %6, %303 : vector<16x16xf32>
    %cst_147 = arith.constant 5.000000e-01 : f32
    %305 = vector.broadcast %cst_147 : f32 to vector<16x16xf32>
    %306 = arith.mulf %305, %304 : vector<16x16xf32>
    %cst_148 = arith.constant dense<0.000000e+00> : vector<16x16xf32>
    %307 = tpu.matmul %301, %306, %cst_148 {dimension_numbers = #tpu.dot_dimension_numbers<[1], [0], [0], [1], [0, 0, 1, 1], [], []>} : vector<16x16xf32>, vector<16x16xf32>, vector<16x16xf32> -> vector<16x16xf32>
    %cst_149 = arith.constant dense<0.000000e+00> : vector<16x16xf32>
    %308 = tpu.matmul %306, %302, %cst_149 {dimension_numbers = #tpu.dot_dimension_numbers<[1], [0], [0], [1], [0, 0, 1, 1], [], []>} : vector<16x16xf32>, vector<16x16xf32>, vector<16x16xf32> -> vector<16x16xf32>
    %cst_150 = arith.constant dense<0.000000e+00> : vector<16x16xf32>
    %309 = tpu.matmul %308, %307, %cst_150 {dimension_numbers = #tpu.dot_dimension_numbers<[1], [0], [0], [1], [0, 0, 1, 1], [], []>} : vector<16x16xf32>, vector<16x16xf32>, vector<16x16xf32> -> vector<16x16xf32>
    %310 = arith.subf %6, %309 : vector<16x16xf32>
    %cst_151 = arith.constant 5.000000e-01 : f32
    %311 = vector.broadcast %cst_151 : f32 to vector<16x16xf32>
    %312 = arith.mulf %311, %310 : vector<16x16xf32>
    %cst_152 = arith.constant dense<0.000000e+00> : vector<16x16xf32>
    %313 = tpu.matmul %312, %308, %cst_152 {dimension_numbers = #tpu.dot_dimension_numbers<[1], [0], [0], [1], [0, 0, 1, 1], [], []>} : vector<16x16xf32>, vector<16x16xf32>, vector<16x16xf32> -> vector<16x16xf32>
    %314 = math.rsqrt %272 : f32
    %315 = vector.broadcast %314 : f32 to vector<16x16xf32>
    %316 = arith.mulf %313, %315 : vector<16x16xf32>
    %cst_153 = arith.constant dense<0.000000e+00> : vector<16x16xf32>
    %317 = tpu.matmul %316, %316, %cst_153 {dimension_numbers = #tpu.dot_dimension_numbers<[1], [0], [0], [1], [0, 0, 1, 1], [], []>} : vector<16x16xf32>, vector<16x16xf32>, vector<16x16xf32> -> vector<16x16xf32>
    %cst_154 = arith.constant 0.000000e+00 : f32
    %318 = vector.broadcast %cst_154 : f32 to vector<16x16xf32>
    %319 = arith.subf %318, %317 : vector<16x16xf32>
    %320 = tpu.transpose %39, [1, 0] : vector<16x16xf32> -> vector<16x16xf32>
    %321 = arith.addf %320, %39 : vector<16x16xf32>
    %cst_155 = arith.constant 5.000000e-01 : f32
    %322 = vector.broadcast %cst_155 : f32 to vector<16x16xf32>
    %323 = arith.mulf %322, %321 : vector<16x16xf32>
    %324 = arith.addf %319, %323 : vector<16x16xf32>
    %cst_156 = arith.constant 7.000000e-02 : f32
    %325 = vector.broadcast %cst_156 : f32 to vector<16x16xf32>
    %326 = arith.addf %324, %325 : vector<16x16xf32>
    %cst_157 = arith.constant 0.000000e+00 : f32
    %327 = vector.broadcast %cst_157 : f32 to vector<16x16xf32>
    %328 = arith.mulf %327, %326 : vector<16x16xf32>
    %329 = arith.subf %262, %328 : vector<16x16xf32>
    %cst_158 = arith.constant 0.000000e+00 : f32
    %330 = vector.broadcast %cst_158 : f32 to vector<16x16xf32>
    %331 = arith.maximumf %329, %330 : vector<16x16xf32>
    %cst_159 = arith.constant 0.000000e+00 : f32
    %332 = vector.broadcast %cst_159 : f32 to vector<16x16xf32>
    %333 = arith.subf %332, %324 : vector<16x16xf32>
    %cst_160 = arith.constant 7.000000e-02 : f32
    %334 = vector.broadcast %cst_160 : f32 to vector<16x16xf32>
    %335 = arith.addf %333, %334 : vector<16x16xf32>
    %cst_161 = arith.constant 0.000000e+00 : f32
    %336 = vector.broadcast %cst_161 : f32 to vector<16x16xf32>
    %337 = arith.mulf %336, %335 : vector<16x16xf32>
    %338 = arith.subf %266, %337 : vector<16x16xf32>
    %cst_162 = arith.constant 0.000000e+00 : f32
    %339 = vector.broadcast %cst_162 : f32 to vector<16x16xf32>
    %340 = arith.maximumf %338, %339 : vector<16x16xf32>
    %341 = arith.subf %331, %340 : vector<16x16xf32>
    %342 = tpu.transpose %341, [1, 0] : vector<16x16xf32> -> vector<16x16xf32>
    %343 = arith.addf %341, %342 : vector<16x16xf32>
    %cst_163 = arith.constant 5.000000e-01 : f32
    %344 = vector.broadcast %cst_163 : f32 to vector<16x16xf32>
    %345 = arith.mulf %344, %343 : vector<16x16xf32>
    %346 = vector.broadcast %37 : f32 to vector<16x16xf32>
    %347 = arith.divf %345, %346 : vector<16x16xf32>
    %c0_164 = arith.constant 0 : index
    %c0_165 = arith.constant 0 : index
    %c0_166 = arith.constant 0 : index
    %348 = vector.load %arg5[%c0_164, %c0_165, %c0_166] : memref<2x16x16xf32, #tpu.memory_space<vmem>>, vector<1x16x16xf32>
    %349 = vector.shape_cast %348 : vector<1x16x16xf32> to vector<16x16xf32>
    %350 = vector.shape_cast %347 : vector<16x16xf32> to vector<1x16x16xf32>
    tpu.vector_store %arg5[%c0_164, %c0_165, %c0_166], %350 {strides = array<i32>} : memref<2x16x16xf32, #tpu.memory_space<vmem>>, vector<1x16x16xf32>,
    %c1 = arith.constant 1 : index
    %c0_167 = arith.constant 0 : index
    %c0_168 = arith.constant 0 : index
    %351 = vector.load %arg1[%c1, %c0_167, %c0_168] : memref<2x32x64xf32, #tpu.memory_space<vmem>>, vector<1x32x64xf32>
    %352 = vector.shape_cast %351 : vector<1x32x64xf32> to vector<32x64xf32>
    %cst_169 = arith.constant dense<0.000000e+00> : vector<16x64xf32>
    %353 = tpu.matmul %14, %352, %cst_169 {dimension_numbers = #tpu.dot_dimension_numbers<[1], [0], [0], [1], [0, 0, 1, 1], [], []>} : vector<16x32xf32>, vector<32x64xf32>, vector<16x64xf32> -> vector<16x64xf32>
    %354 = vector.broadcast %15 : vector<16x1xf32> to vector<16x64xf32>
    %355 = arith.addf %353, %354 : vector<16x64xf32>
    %cst_170 = arith.constant 0.000000e+00 : f32
    %356 = vector.broadcast %cst_170 : f32 to vector<16x64xf32>
    %357 = arith.maximumf %355, %356 : vector<16x64xf32>
    %cst_171 = arith.constant dense<0.000000e+00> : vector<16xf32>
    %358 = vector.multi_reduction <add>, %357, %cst_171 [1] : vector<16x64xf32> to vector<16xf32>
    %359 = vector.shape_cast %358 : vector<16xf32> to vector<16x1xf32>
    %cst_172 = arith.constant 6.400000e+01 : f32
    %360 = vector.broadcast %cst_172 : f32 to vector<16x1xf32>
    %361 = arith.divf %359, %360 : vector<16x1xf32>
    %362 = vector.broadcast %361 : vector<16x1xf32> to vector<16x64xf32>
    %363 = arith.subf %357, %362 : vector<16x64xf32>
    %364 = tpu.transpose %363, [1, 0] : vector<16x64xf32> -> vector<64x16xf32>
    %cst_173 = arith.constant dense<0.000000e+00> : vector<16x16xf32>
    %365 = tpu.matmul %363, %364, %cst_173 {dimension_numbers = #tpu.dot_dimension_numbers<[1], [0], [0], [1], [0, 0, 1, 1], [], []>} : vector<16x64xf32>, vector<64x16xf32>, vector<16x16xf32> -> vector<16x16xf32>
    %cst_174 = arith.constant 1.562500e-02 : f32
    %366 = vector.broadcast %cst_174 : f32 to vector<16x16xf32>
    %367 = arith.mulf %365, %366 : vector<16x16xf32>
    %368 = arith.mulf %367, %4 : vector<16x16xf32>
    %369 = vector.shape_cast %368 : vector<16x16xf32> to vector<1x16x16xf32>
    %cst_175 = arith.constant dense<0.000000e+00> : vector<1xf32>
    %370 = vector.multi_reduction <add>, %369, %cst_175 [1, 2] : vector<1x16x16xf32> to vector<1xf32>
    %371 = vector.shape_cast %370 : vector<1xf32> to vector<1x1x1xf32>
    %372 = vector.extract %371[0, 0, 0] : f32 from vector<1x1x1xf32>
    %373 = vector.broadcast %372 : f32 to vector<16x16xf32>
    %374 = arith.divf %367, %373 : vector<16x16xf32>
    %375 = arith.addf %374, %13 : vector<16x16xf32>
    %376 = arith.mulf %375, %4 : vector<16x16xf32>
    %377 = vector.shape_cast %376 : vector<16x16xf32> to vector<1x16x16xf32>
    %cst_176 = arith.constant dense<0.000000e+00> : vector<1xf32>
    %378 = vector.multi_reduction <add>, %377, %cst_176 [1, 2] : vector<1x16x16xf32> to vector<1xf32>
    %379 = vector.shape_cast %378 : vector<1xf32> to vector<1x1x1xf32>
    %380 = vector.extract %379[0, 0, 0] : f32 from vector<1x1x1xf32>
    %381 = vector.broadcast %380 : f32 to vector<16x16xf32>
    %382 = arith.divf %375, %381 : vector<16x16xf32>
    %383 = arith.subf %6, %382 : vector<16x16xf32>
    %cst_177 = arith.constant 5.000000e-01 : f32
    %384 = vector.broadcast %cst_177 : f32 to vector<16x16xf32>
    %385 = arith.mulf %384, %383 : vector<16x16xf32>
    %cst_178 = arith.constant dense<0.000000e+00> : vector<16x16xf32>
    %386 = tpu.matmul %382, %385, %cst_178 {dimension_numbers = #tpu.dot_dimension_numbers<[1], [0], [0], [1], [0, 0, 1, 1], [], []>} : vector<16x16xf32>, vector<16x16xf32>, vector<16x16xf32> -> vector<16x16xf32>
    %cst_179 = arith.constant dense<0.000000e+00> : vector<16x16xf32>
    %387 = tpu.matmul %385, %386, %cst_179 {dimension_numbers = #tpu.dot_dimension_numbers<[1], [0], [0], [1], [0, 0, 1, 1], [], []>} : vector<16x16xf32>, vector<16x16xf32>, vector<16x16xf32> -> vector<16x16xf32>
    %388 = arith.subf %6, %387 : vector<16x16xf32>
    %cst_180 = arith.constant 5.000000e-01 : f32
    %389 = vector.broadcast %cst_180 : f32 to vector<16x16xf32>
    %390 = arith.mulf %389, %388 : vector<16x16xf32>
    %cst_181 = arith.constant dense<0.000000e+00> : vector<16x16xf32>
    %391 = tpu.matmul %386, %390, %cst_181 {dimension_numbers = #tpu.dot_dimension_numbers<[1], [0], [0], [1], [0, 0, 1, 1], [], []>} : vector<16x16xf32>, vector<16x16xf32>, vector<16x16xf32> -> vector<16x16xf32>
    %cst_182 = arith.constant dense<0.000000e+00> : vector<16x16xf32>
    %392 = tpu.matmul %390, %385, %cst_182 {dimension_numbers = #tpu.dot_dimension_numbers<[1], [0], [0], [1], [0, 0, 1, 1], [], []>} : vector<16x16xf32>, vector<16x16xf32>, vector<16x16xf32> -> vector<16x16xf32>
    %cst_183 = arith.constant dense<0.000000e+00> : vector<16x16xf32>
    %393 = tpu.matmul %392, %391, %cst_183 {dimension_numbers = #tpu.dot_dimension_numbers<[1], [0], [0], [1], [0, 0, 1, 1], [], []>} : vector<16x16xf32>, vector<16x16xf32>, vector<16x16xf32> -> vector<16x16xf32>
    %394 = arith.subf %6, %393 : vector<16x16xf32>
    %cst_184 = arith.constant 5.000000e-01 : f32
    %395 = vector.broadcast %cst_184 : f32 to vector<16x16xf32>
    %396 = arith.mulf %395, %394 : vector<16x16xf32>
    %cst_185 = arith.constant dense<0.000000e+00> : vector<16x16xf32>
    %397 = tpu.matmul %391, %396, %cst_185 {dimension_numbers = #tpu.dot_dimension_numbers<[1], [0], [0], [1], [0, 0, 1, 1], [], []>} : vector<16x16xf32>, vector<16x16xf32>, vector<16x16xf32> -> vector<16x16xf32>
    %cst_186 = arith.constant dense<0.000000e+00> : vector<16x16xf32>
    %398 = tpu.matmul %396, %392, %cst_186 {dimension_numbers = #tpu.dot_dimension_numbers<[1], [0], [0], [1], [0, 0, 1, 1], [], []>} : vector<16x16xf32>, vector<16x16xf32>, vector<16x16xf32> -> vector<16x16xf32>
    %cst_187 = arith.constant dense<0.000000e+00> : vector<16x16xf32>
    %399 = tpu.matmul %398, %397, %cst_187 {dimension_numbers = #tpu.dot_dimension_numbers<[1], [0], [0], [1], [0, 0, 1, 1], [], []>} : vector<16x16xf32>, vector<16x16xf32>, vector<16x16xf32> -> vector<16x16xf32>
    %400 = arith.subf %6, %399 : vector<16x16xf32>
    %cst_188 = arith.constant 5.000000e-01 : f32
    %401 = vector.broadcast %cst_188 : f32 to vector<16x16xf32>
    %402 = arith.mulf %401, %400 : vector<16x16xf32>
    %cst_189 = arith.constant dense<0.000000e+00> : vector<16x16xf32>
    %403 = tpu.matmul %397, %402, %cst_189 {dimension_numbers = #tpu.dot_dimension_numbers<[1], [0], [0], [1], [0, 0, 1, 1], [], []>} : vector<16x16xf32>, vector<16x16xf32>, vector<16x16xf32> -> vector<16x16xf32>
    %cst_190 = arith.constant dense<0.000000e+00> : vector<16x16xf32>
    %404 = tpu.matmul %402, %398, %cst_190 {dimension_numbers = #tpu.dot_dimension_numbers<[1], [0], [0], [1], [0, 0, 1, 1], [], []>} : vector<16x16xf32>, vector<16x16xf32>, vector<16x16xf32> -> vector<16x16xf32>
    %cst_191 = arith.constant dense<0.000000e+00> : vector<16x16xf32>
    %405 = tpu.matmul %404, %403, %cst_191 {dimension_numbers = #tpu.dot_dimension_numbers<[1], [0], [0], [1], [0, 0, 1, 1], [], []>} : vector<16x16xf32>, vector<16x16xf32>, vector<16x16xf32> -> vector<16x16xf32>
    %406 = arith.subf %6, %405 : vector<16x16xf32>
    %cst_192 = arith.constant 5.000000e-01 : f32
    %407 = vector.broadcast %cst_192 : f32 to vector<16x16xf32>
    %408 = arith.mulf %407, %406 : vector<16x16xf32>
    %cst_193 = arith.constant dense<0.000000e+00> : vector<16x16xf32>
    %409 = tpu.matmul %403, %408, %cst_193 {dimension_numbers = #tpu.dot_dimension_numbers<[1], [0], [0], [1], [0, 0, 1, 1], [], []>} : vector<16x16xf32>, vector<16x16xf32>, vector<16x16xf32> -> vector<16x16xf32>
    %cst_194 = arith.constant dense<0.000000e+00> : vector<16x16xf32>
    %410 = tpu.matmul %408, %404, %cst_194 {dimension_numbers = #tpu.dot_dimension_numbers<[1], [0], [0], [1], [0, 0, 1, 1], [], []>} : vector<16x16xf32>, vector<16x16xf32>, vector<16x16xf32> -> vector<16x16xf32>
    %cst_195 = arith.constant dense<0.000000e+00> : vector<16x16xf32>
    %411 = tpu.matmul %410, %409, %cst_195 {dimension_numbers = #tpu.dot_dimension_numbers<[1], [0], [0], [1], [0, 0, 1, 1], [], []>} : vector<16x16xf32>, vector<16x16xf32>, vector<16x16xf32> -> vector<16x16xf32>
    %412 = arith.subf %6, %411 : vector<16x16xf32>
    %cst_196 = arith.constant 5.000000e-01 : f32
    %413 = vector.broadcast %cst_196 : f32 to vector<16x16xf32>
    %414 = arith.mulf %413, %412 : vector<16x16xf32>
    %cst_197 = arith.constant dense<0.000000e+00> : vector<16x16xf32>
    %415 = tpu.matmul %409, %414, %cst_197 {dimension_numbers = #tpu.dot_dimension_numbers<[1], [0], [0], [1], [0, 0, 1, 1], [], []>} : vector<16x16xf32>, vector<16x16xf32>, vector<16x16xf32> -> vector<16x16xf32>
    %cst_198 = arith.constant dense<0.000000e+00> : vector<16x16xf32>
    %416 = tpu.matmul %414, %410, %cst_198 {dimension_numbers = #tpu.dot_dimension_numbers<[1], [0], [0], [1], [0, 0, 1, 1], [], []>} : vector<16x16xf32>, vector<16x16xf32>, vector<16x16xf32> -> vector<16x16xf32>
    %cst_199 = arith.constant dense<0.000000e+00> : vector<16x16xf32>
    %417 = tpu.matmul %416, %415, %cst_199 {dimension_numbers = #tpu.dot_dimension_numbers<[1], [0], [0], [1], [0, 0, 1, 1], [], []>} : vector<16x16xf32>, vector<16x16xf32>, vector<16x16xf32> -> vector<16x16xf32>
    %418 = arith.subf %6, %417 : vector<16x16xf32>
    %cst_200 = arith.constant 5.000000e-01 : f32
    %419 = vector.broadcast %cst_200 : f32 to vector<16x16xf32>
    %420 = arith.mulf %419, %418 : vector<16x16xf32>
    %cst_201 = arith.constant dense<0.000000e+00> : vector<16x16xf32>
    %421 = tpu.matmul %420, %416, %cst_201 {dimension_numbers = #tpu.dot_dimension_numbers<[1], [0], [0], [1], [0, 0, 1, 1], [], []>} : vector<16x16xf32>, vector<16x16xf32>, vector<16x16xf32> -> vector<16x16xf32>
    %422 = math.rsqrt %380 : f32
    %423 = vector.broadcast %422 : f32 to vector<16x16xf32>
    %424 = arith.mulf %421, %423 : vector<16x16xf32>
    %cst_202 = arith.constant dense<0.000000e+00> : vector<16x16xf32>
    %425 = tpu.matmul %424, %424, %cst_202 {dimension_numbers = #tpu.dot_dimension_numbers<[1], [0], [0], [1], [0, 0, 1, 1], [], []>} : vector<16x16xf32>, vector<16x16xf32>, vector<16x16xf32> -> vector<16x16xf32>
    %cst_203 = arith.constant 0.000000e+00 : f32
    %426 = vector.broadcast %cst_203 : f32 to vector<16x16xf32>
    %427 = arith.maximumf %425, %426 : vector<16x16xf32>
    %cst_204 = arith.constant 0.000000e+00 : f32
    %428 = vector.broadcast %cst_204 : f32 to vector<16x16xf32>
    %429 = arith.subf %428, %425 : vector<16x16xf32>
    %cst_205 = arith.constant 0.000000e+00 : f32
    %430 = vector.broadcast %cst_205 : f32 to vector<16x16xf32>
    %431 = arith.maximumf %429, %430 : vector<16x16xf32>
    %432 = arith.addf %425, %13 : vector<16x16xf32>
    %433 = arith.mulf %432, %4 : vector<16x16xf32>
    %434 = vector.shape_cast %433 : vector<16x16xf32> to vector<1x16x16xf32>
    %cst_206 = arith.constant dense<0.000000e+00> : vector<1xf32>
    %435 = vector.multi_reduction <add>, %434, %cst_206 [1, 2] : vector<1x16x16xf32> to vector<1xf32>
    %436 = vector.shape_cast %435 : vector<1xf32> to vector<1x1x1xf32>
    %437 = vector.extract %436[0, 0, 0] : f32 from vector<1x1x1xf32>
    %438 = vector.broadcast %437 : f32 to vector<16x16xf32>
    %439 = arith.divf %432, %438 : vector<16x16xf32>
    %440 = arith.subf %6, %439 : vector<16x16xf32>
    %cst_207 = arith.constant 5.000000e-01 : f32
    %441 = vector.broadcast %cst_207 : f32 to vector<16x16xf32>
    %442 = arith.mulf %441, %440 : vector<16x16xf32>
    %cst_208 = arith.constant dense<0.000000e+00> : vector<16x16xf32>
    %443 = tpu.matmul %439, %442, %cst_208 {dimension_numbers = #tpu.dot_dimension_numbers<[1], [0], [0], [1], [0, 0, 1, 1], [], []>} : vector<16x16xf32>, vector<16x16xf32>, vector<16x16xf32> -> vector<16x16xf32>
    %cst_209 = arith.constant dense<0.000000e+00> : vector<16x16xf32>
    %444 = tpu.matmul %442, %443, %cst_209 {dimension_numbers = #tpu.dot_dimension_numbers<[1], [0], [0], [1], [0, 0, 1, 1], [], []>} : vector<16x16xf32>, vector<16x16xf32>, vector<16x16xf32> -> vector<16x16xf32>
    %445 = arith.subf %6, %444 : vector<16x16xf32>
    %cst_210 = arith.constant 5.000000e-01 : f32
    %446 = vector.broadcast %cst_210 : f32 to vector<16x16xf32>
    %447 = arith.mulf %446, %445 : vector<16x16xf32>
    %cst_211 = arith.constant dense<0.000000e+00> : vector<16x16xf32>
    %448 = tpu.matmul %443, %447, %cst_211 {dimension_numbers = #tpu.dot_dimension_numbers<[1], [0], [0], [1], [0, 0, 1, 1], [], []>} : vector<16x16xf32>, vector<16x16xf32>, vector<16x16xf32> -> vector<16x16xf32>
    %cst_212 = arith.constant dense<0.000000e+00> : vector<16x16xf32>
    %449 = tpu.matmul %447, %442, %cst_212 {dimension_numbers = #tpu.dot_dimension_numbers<[1], [0], [0], [1], [0, 0, 1, 1], [], []>} : vector<16x16xf32>, vector<16x16xf32>, vector<16x16xf32> -> vector<16x16xf32>
    %cst_213 = arith.constant dense<0.000000e+00> : vector<16x16xf32>
    %450 = tpu.matmul %449, %448, %cst_213 {dimension_numbers = #tpu.dot_dimension_numbers<[1], [0], [0], [1], [0, 0, 1, 1], [], []>} : vector<16x16xf32>, vector<16x16xf32>, vector<16x16xf32> -> vector<16x16xf32>
    %451 = arith.subf %6, %450 : vector<16x16xf32>
    %cst_214 = arith.constant 5.000000e-01 : f32
    %452 = vector.broadcast %cst_214 : f32 to vector<16x16xf32>
    %453 = arith.mulf %452, %451 : vector<16x16xf32>
    %cst_215 = arith.constant dense<0.000000e+00> : vector<16x16xf32>
    %454 = tpu.matmul %448, %453, %cst_215 {dimension_numbers = #tpu.dot_dimension_numbers<[1], [0], [0], [1], [0, 0, 1, 1], [], []>} : vector<16x16xf32>, vector<16x16xf32>, vector<16x16xf32> -> vector<16x16xf32>
    %cst_216 = arith.constant dense<0.000000e+00> : vector<16x16xf32>
    %455 = tpu.matmul %453, %449, %cst_216 {dimension_numbers = #tpu.dot_dimension_numbers<[1], [0], [0], [1], [0, 0, 1, 1], [], []>} : vector<16x16xf32>, vector<16x16xf32>, vector<16x16xf32> -> vector<16x16xf32>
    %cst_217 = arith.constant dense<0.000000e+00> : vector<16x16xf32>
    %456 = tpu.matmul %455, %454, %cst_217 {dimension_numbers = #tpu.dot_dimension_numbers<[1], [0], [0], [1], [0, 0, 1, 1], [], []>} : vector<16x16xf32>, vector<16x16xf32>, vector<16x16xf32> -> vector<16x16xf32>
    %457 = arith.subf %6, %456 : vector<16x16xf32>
    %cst_218 = arith.constant 5.000000e-01 : f32
    %458 = vector.broadcast %cst_218 : f32 to vector<16x16xf32>
    %459 = arith.mulf %458, %457 : vector<16x16xf32>
    %cst_219 = arith.constant dense<0.000000e+00> : vector<16x16xf32>
    %460 = tpu.matmul %454, %459, %cst_219 {dimension_numbers = #tpu.dot_dimension_numbers<[1], [0], [0], [1], [0, 0, 1, 1], [], []>} : vector<16x16xf32>, vector<16x16xf32>, vector<16x16xf32> -> vector<16x16xf32>
    %cst_220 = arith.constant dense<0.000000e+00> : vector<16x16xf32>
    %461 = tpu.matmul %459, %455, %cst_220 {dimension_numbers = #tpu.dot_dimension_numbers<[1], [0], [0], [1], [0, 0, 1, 1], [], []>} : vector<16x16xf32>, vector<16x16xf32>, vector<16x16xf32> -> vector<16x16xf32>
    %cst_221 = arith.constant dense<0.000000e+00> : vector<16x16xf32>
    %462 = tpu.matmul %461, %460, %cst_221 {dimension_numbers = #tpu.dot_dimension_numbers<[1], [0], [0], [1], [0, 0, 1, 1], [], []>} : vector<16x16xf32>, vector<16x16xf32>, vector<16x16xf32> -> vector<16x16xf32>
    %463 = arith.subf %6, %462 : vector<16x16xf32>
    %cst_222 = arith.constant 5.000000e-01 : f32
    %464 = vector.broadcast %cst_222 : f32 to vector<16x16xf32>
    %465 = arith.mulf %464, %463 : vector<16x16xf32>
    %cst_223 = arith.constant dense<0.000000e+00> : vector<16x16xf32>
    %466 = tpu.matmul %460, %465, %cst_223 {dimension_numbers = #tpu.dot_dimension_numbers<[1], [0], [0], [1], [0, 0, 1, 1], [], []>} : vector<16x16xf32>, vector<16x16xf32>, vector<16x16xf32> -> vector<16x16xf32>
    %cst_224 = arith.constant dense<0.000000e+00> : vector<16x16xf32>
    %467 = tpu.matmul %465, %461, %cst_224 {dimension_numbers = #tpu.dot_dimension_numbers<[1], [0], [0], [1], [0, 0, 1, 1], [], []>} : vector<16x16xf32>, vector<16x16xf32>, vector<16x16xf32> -> vector<16x16xf32>
    %cst_225 = arith.constant dense<0.000000e+00> : vector<16x16xf32>
    %468 = tpu.matmul %467, %466, %cst_225 {dimension_numbers = #tpu.dot_dimension_numbers<[1], [0], [0], [1], [0, 0, 1, 1], [], []>} : vector<16x16xf32>, vector<16x16xf32>, vector<16x16xf32> -> vector<16x16xf32>
    %469 = arith.subf %6, %468 : vector<16x16xf32>
    %cst_226 = arith.constant 5.000000e-01 : f32
    %470 = vector.broadcast %cst_226 : f32 to vector<16x16xf32>
    %471 = arith.mulf %470, %469 : vector<16x16xf32>
    %cst_227 = arith.constant dense<0.000000e+00> : vector<16x16xf32>
    %472 = tpu.matmul %466, %471, %cst_227 {dimension_numbers = #tpu.dot_dimension_numbers<[1], [0], [0], [1], [0, 0, 1, 1], [], []>} : vector<16x16xf32>, vector<16x16xf32>, vector<16x16xf32> -> vector<16x16xf32>
    %cst_228 = arith.constant dense<0.000000e+00> : vector<16x16xf32>
    %473 = tpu.matmul %471, %467, %cst_228 {dimension_numbers = #tpu.dot_dimension_numbers<[1], [0], [0], [1], [0, 0, 1, 1], [], []>} : vector<16x16xf32>, vector<16x16xf32>, vector<16x16xf32> -> vector<16x16xf32>
    %cst_229 = arith.constant dense<0.000000e+00> : vector<16x16xf32>
    %474 = tpu.matmul %473, %472, %cst_229 {dimension_numbers = #tpu.dot_dimension_numbers<[1], [0], [0], [1], [0, 0, 1, 1], [], []>} : vector<16x16xf32>, vector<16x16xf32>, vector<16x16xf32> -> vector<16x16xf32>
    %475 = arith.subf %6, %474 : vector<16x16xf32>
    %cst_230 = arith.constant 5.000000e-01 : f32
    %476 = vector.broadcast %cst_230 : f32 to vector<16x16xf32>
    %477 = arith.mulf %476, %475 : vector<16x16xf32>
    %cst_231 = arith.constant dense<0.000000e+00> : vector<16x16xf32>
    %478 = tpu.matmul %477, %473, %cst_231 {dimension_numbers = #tpu.dot_dimension_numbers<[1], [0], [0], [1], [0, 0, 1, 1], [], []>} : vector<16x16xf32>, vector<16x16xf32>, vector<16x16xf32> -> vector<16x16xf32>
    %479 = math.rsqrt %437 : f32
    %480 = vector.broadcast %479 : f32 to vector<16x16xf32>
    %481 = arith.mulf %478, %480 : vector<16x16xf32>
    %cst_232 = arith.constant dense<0.000000e+00> : vector<16x16xf32>
    %482 = tpu.matmul %481, %481, %cst_232 {dimension_numbers = #tpu.dot_dimension_numbers<[1], [0], [0], [1], [0, 0, 1, 1], [], []>} : vector<16x16xf32>, vector<16x16xf32>, vector<16x16xf32> -> vector<16x16xf32>
    %cst_233 = arith.constant 0.000000e+00 : f32
    %483 = vector.broadcast %cst_233 : f32 to vector<16x16xf32>
    %484 = arith.subf %483, %482 : vector<16x16xf32>
    %485 = tpu.transpose %374, [1, 0] : vector<16x16xf32> -> vector<16x16xf32>
    %486 = arith.addf %485, %374 : vector<16x16xf32>
    %cst_234 = arith.constant 5.000000e-01 : f32
    %487 = vector.broadcast %cst_234 : f32 to vector<16x16xf32>
    %488 = arith.mulf %487, %486 : vector<16x16xf32>
    %489 = arith.addf %484, %488 : vector<16x16xf32>
    %cst_235 = arith.constant 7.000000e-02 : f32
    %490 = vector.broadcast %cst_235 : f32 to vector<16x16xf32>
    %491 = arith.addf %489, %490 : vector<16x16xf32>
    %cst_236 = arith.constant 5.000000e+00 : f32
    %492 = vector.broadcast %cst_236 : f32 to vector<16x16xf32>
    %493 = arith.mulf %492, %491 : vector<16x16xf32>
    %494 = arith.subf %427, %493 : vector<16x16xf32>
    %cst_237 = arith.constant 0.000000e+00 : f32
    %495 = vector.broadcast %cst_237 : f32 to vector<16x16xf32>
    %496 = arith.maximumf %494, %495 : vector<16x16xf32>
    %cst_238 = arith.constant 0.000000e+00 : f32
    %497 = vector.broadcast %cst_238 : f32 to vector<16x16xf32>
    %498 = arith.subf %497, %489 : vector<16x16xf32>
    %cst_239 = arith.constant 7.000000e-02 : f32
    %499 = vector.broadcast %cst_239 : f32 to vector<16x16xf32>
    %500 = arith.addf %498, %499 : vector<16x16xf32>
    %cst_240 = arith.constant 5.000000e+00 : f32
    %501 = vector.broadcast %cst_240 : f32 to vector<16x16xf32>
    %502 = arith.mulf %501, %500 : vector<16x16xf32>
    %503 = arith.subf %431, %502 : vector<16x16xf32>
    %cst_241 = arith.constant 0.000000e+00 : f32
    %504 = vector.broadcast %cst_241 : f32 to vector<16x16xf32>
    %505 = arith.maximumf %503, %504 : vector<16x16xf32>
    %506 = arith.subf %496, %505 : vector<16x16xf32>
    %507 = tpu.transpose %506, [1, 0] : vector<16x16xf32> -> vector<16x16xf32>
    %508 = arith.addf %506, %507 : vector<16x16xf32>
    %cst_242 = arith.constant 5.000000e-01 : f32
    %509 = vector.broadcast %cst_242 : f32 to vector<16x16xf32>
    %510 = arith.mulf %509, %508 : vector<16x16xf32>
    %cst_243 = arith.constant 0.000000e+00 : f32
    %511 = vector.broadcast %cst_243 : f32 to vector<16x16xf32>
    %512 = arith.maximumf %510, %511 : vector<16x16xf32>
    %cst_244 = arith.constant 0.000000e+00 : f32
    %513 = vector.broadcast %cst_244 : f32 to vector<16x16xf32>
    %514 = arith.subf %513, %510 : vector<16x16xf32>
    %cst_245 = arith.constant 0.000000e+00 : f32
    %515 = vector.broadcast %cst_245 : f32 to vector<16x16xf32>
    %516 = arith.maximumf %514, %515 : vector<16x16xf32>
    %517 = arith.addf %510, %13 : vector<16x16xf32>
    %518 = arith.mulf %517, %4 : vector<16x16xf32>
    %519 = vector.shape_cast %518 : vector<16x16xf32> to vector<1x16x16xf32>
    %cst_246 = arith.constant dense<0.000000e+00> : vector<1xf32>
    %520 = vector.multi_reduction <add>, %519, %cst_246 [1, 2] : vector<1x16x16xf32> to vector<1xf32>
    %521 = vector.shape_cast %520 : vector<1xf32> to vector<1x1x1xf32>
    %522 = vector.extract %521[0, 0, 0] : f32 from vector<1x1x1xf32>
    %523 = vector.broadcast %522 : f32 to vector<16x16xf32>
    %524 = arith.divf %517, %523 : vector<16x16xf32>
    %525 = arith.subf %6, %524 : vector<16x16xf32>
    %cst_247 = arith.constant 5.000000e-01 : f32
    %526 = vector.broadcast %cst_247 : f32 to vector<16x16xf32>
    %527 = arith.mulf %526, %525 : vector<16x16xf32>
    %cst_248 = arith.constant dense<0.000000e+00> : vector<16x16xf32>
    %528 = tpu.matmul %524, %527, %cst_248 {dimension_numbers = #tpu.dot_dimension_numbers<[1], [0], [0], [1], [0, 0, 1, 1], [], []>} : vector<16x16xf32>, vector<16x16xf32>, vector<16x16xf32> -> vector<16x16xf32>
    %cst_249 = arith.constant dense<0.000000e+00> : vector<16x16xf32>
    %529 = tpu.matmul %527, %528, %cst_249 {dimension_numbers = #tpu.dot_dimension_numbers<[1], [0], [0], [1], [0, 0, 1, 1], [], []>} : vector<16x16xf32>, vector<16x16xf32>, vector<16x16xf32> -> vector<16x16xf32>
    %530 = arith.subf %6, %529 : vector<16x16xf32>
    %cst_250 = arith.constant 5.000000e-01 : f32
    %531 = vector.broadcast %cst_250 : f32 to vector<16x16xf32>
    %532 = arith.mulf %531, %530 : vector<16x16xf32>
    %cst_251 = arith.constant dense<0.000000e+00> : vector<16x16xf32>
    %533 = tpu.matmul %528, %532, %cst_251 {dimension_numbers = #tpu.dot_dimension_numbers<[1], [0], [0], [1], [0, 0, 1, 1], [], []>} : vector<16x16xf32>, vector<16x16xf32>, vector<16x16xf32> -> vector<16x16xf32>
    %cst_252 = arith.constant dense<0.000000e+00> : vector<16x16xf32>
    %534 = tpu.matmul %532, %527, %cst_252 {dimension_numbers = #tpu.dot_dimension_numbers<[1], [0], [0], [1], [0, 0, 1, 1], [], []>} : vector<16x16xf32>, vector<16x16xf32>, vector<16x16xf32> -> vector<16x16xf32>
    %cst_253 = arith.constant dense<0.000000e+00> : vector<16x16xf32>
    %535 = tpu.matmul %534, %533, %cst_253 {dimension_numbers = #tpu.dot_dimension_numbers<[1], [0], [0], [1], [0, 0, 1, 1], [], []>} : vector<16x16xf32>, vector<16x16xf32>, vector<16x16xf32> -> vector<16x16xf32>
    %536 = arith.subf %6, %535 : vector<16x16xf32>
    %cst_254 = arith.constant 5.000000e-01 : f32
    %537 = vector.broadcast %cst_254 : f32 to vector<16x16xf32>
    %538 = arith.mulf %537, %536 : vector<16x16xf32>
    %cst_255 = arith.constant dense<0.000000e+00> : vector<16x16xf32>
    %539 = tpu.matmul %533, %538, %cst_255 {dimension_numbers = #tpu.dot_dimension_numbers<[1], [0], [0], [1], [0, 0, 1, 1], [], []>} : vector<16x16xf32>, vector<16x16xf32>, vector<16x16xf32> -> vector<16x16xf32>
    %cst_256 = arith.constant dense<0.000000e+00> : vector<16x16xf32>
    %540 = tpu.matmul %538, %534, %cst_256 {dimension_numbers = #tpu.dot_dimension_numbers<[1], [0], [0], [1], [0, 0, 1, 1], [], []>} : vector<16x16xf32>, vector<16x16xf32>, vector<16x16xf32> -> vector<16x16xf32>
    %cst_257 = arith.constant dense<0.000000e+00> : vector<16x16xf32>
    %541 = tpu.matmul %540, %539, %cst_257 {dimension_numbers = #tpu.dot_dimension_numbers<[1], [0], [0], [1], [0, 0, 1, 1], [], []>} : vector<16x16xf32>, vector<16x16xf32>, vector<16x16xf32> -> vector<16x16xf32>
    %542 = arith.subf %6, %541 : vector<16x16xf32>
    %cst_258 = arith.constant 5.000000e-01 : f32
    %543 = vector.broadcast %cst_258 : f32 to vector<16x16xf32>
    %544 = arith.mulf %543, %542 : vector<16x16xf32>
    %cst_259 = arith.constant dense<0.000000e+00> : vector<16x16xf32>
    %545 = tpu.matmul %539, %544, %cst_259 {dimension_numbers = #tpu.dot_dimension_numbers<[1], [0], [0], [1], [0, 0, 1, 1], [], []>} : vector<16x16xf32>, vector<16x16xf32>, vector<16x16xf32> -> vector<16x16xf32>
    %cst_260 = arith.constant dense<0.000000e+00> : vector<16x16xf32>
    %546 = tpu.matmul %544, %540, %cst_260 {dimension_numbers = #tpu.dot_dimension_numbers<[1], [0], [0], [1], [0, 0, 1, 1], [], []>} : vector<16x16xf32>, vector<16x16xf32>, vector<16x16xf32> -> vector<16x16xf32>
    %cst_261 = arith.constant dense<0.000000e+00> : vector<16x16xf32>
    %547 = tpu.matmul %546, %545, %cst_261 {dimension_numbers = #tpu.dot_dimension_numbers<[1], [0], [0], [1], [0, 0, 1, 1], [], []>} : vector<16x16xf32>, vector<16x16xf32>, vector<16x16xf32> -> vector<16x16xf32>
    %548 = arith.subf %6, %547 : vector<16x16xf32>
    %cst_262 = arith.constant 5.000000e-01 : f32
    %549 = vector.broadcast %cst_262 : f32 to vector<16x16xf32>
    %550 = arith.mulf %549, %548 : vector<16x16xf32>
    %cst_263 = arith.constant dense<0.000000e+00> : vector<16x16xf32>
    %551 = tpu.matmul %545, %550, %cst_263 {dimension_numbers = #tpu.dot_dimension_numbers<[1], [0], [0], [1], [0, 0, 1, 1], [], []>} : vector<16x16xf32>, vector<16x16xf32>, vector<16x16xf32> -> vector<16x16xf32>
    %cst_264 = arith.constant dense<0.000000e+00> : vector<16x16xf32>
    %552 = tpu.matmul %550, %546, %cst_264 {dimension_numbers = #tpu.dot_dimension_numbers<[1], [0], [0], [1], [0, 0, 1, 1], [], []>} : vector<16x16xf32>, vector<16x16xf32>, vector<16x16xf32> -> vector<16x16xf32>
    %cst_265 = arith.constant dense<0.000000e+00> : vector<16x16xf32>
    %553 = tpu.matmul %552, %551, %cst_265 {dimension_numbers = #tpu.dot_dimension_numbers<[1], [0], [0], [1], [0, 0, 1, 1], [], []>} : vector<16x16xf32>, vector<16x16xf32>, vector<16x16xf32> -> vector<16x16xf32>
    %554 = arith.subf %6, %553 : vector<16x16xf32>
    %cst_266 = arith.constant 5.000000e-01 : f32
    %555 = vector.broadcast %cst_266 : f32 to vector<16x16xf32>
    %556 = arith.mulf %555, %554 : vector<16x16xf32>
    %cst_267 = arith.constant dense<0.000000e+00> : vector<16x16xf32>
    %557 = tpu.matmul %551, %556, %cst_267 {dimension_numbers = #tpu.dot_dimension_numbers<[1], [0], [0], [1], [0, 0, 1, 1], [], []>} : vector<16x16xf32>, vector<16x16xf32>, vector<16x16xf32> -> vector<16x16xf32>
    %cst_268 = arith.constant dense<0.000000e+00> : vector<16x16xf32>
    %558 = tpu.matmul %556, %552, %cst_268 {dimension_numbers = #tpu.dot_dimension_numbers<[1], [0], [0], [1], [0, 0, 1, 1], [], []>} : vector<16x16xf32>, vector<16x16xf32>, vector<16x16xf32> -> vector<16x16xf32>
    %cst_269 = arith.constant dense<0.000000e+00> : vector<16x16xf32>
    %559 = tpu.matmul %558, %557, %cst_269 {dimension_numbers = #tpu.dot_dimension_numbers<[1], [0], [0], [1], [0, 0, 1, 1], [], []>} : vector<16x16xf32>, vector<16x16xf32>, vector<16x16xf32> -> vector<16x16xf32>
    %560 = arith.subf %6, %559 : vector<16x16xf32>
    %cst_270 = arith.constant 5.000000e-01 : f32
    %561 = vector.broadcast %cst_270 : f32 to vector<16x16xf32>
    %562 = arith.mulf %561, %560 : vector<16x16xf32>
    %cst_271 = arith.constant dense<0.000000e+00> : vector<16x16xf32>
    %563 = tpu.matmul %562, %558, %cst_271 {dimension_numbers = #tpu.dot_dimension_numbers<[1], [0], [0], [1], [0, 0, 1, 1], [], []>} : vector<16x16xf32>, vector<16x16xf32>, vector<16x16xf32> -> vector<16x16xf32>
    %564 = math.rsqrt %522 : f32
    %565 = vector.broadcast %564 : f32 to vector<16x16xf32>
    %566 = arith.mulf %563, %565 : vector<16x16xf32>
    %cst_272 = arith.constant dense<0.000000e+00> : vector<16x16xf32>
    %567 = tpu.matmul %566, %566, %cst_272 {dimension_numbers = #tpu.dot_dimension_numbers<[1], [0], [0], [1], [0, 0, 1, 1], [], []>} : vector<16x16xf32>, vector<16x16xf32>, vector<16x16xf32> -> vector<16x16xf32>
    %cst_273 = arith.constant 0.000000e+00 : f32
    %568 = vector.broadcast %cst_273 : f32 to vector<16x16xf32>
    %569 = arith.subf %568, %567 : vector<16x16xf32>
    %570 = tpu.transpose %374, [1, 0] : vector<16x16xf32> -> vector<16x16xf32>
    %571 = arith.addf %570, %374 : vector<16x16xf32>
    %cst_274 = arith.constant 5.000000e-01 : f32
    %572 = vector.broadcast %cst_274 : f32 to vector<16x16xf32>
    %573 = arith.mulf %572, %571 : vector<16x16xf32>
    %574 = arith.addf %569, %573 : vector<16x16xf32>
    %cst_275 = arith.constant 7.000000e-02 : f32
    %575 = vector.broadcast %cst_275 : f32 to vector<16x16xf32>
    %576 = arith.addf %574, %575 : vector<16x16xf32>
    %cst_276 = arith.constant 2.500000e+00 : f32
    %577 = vector.broadcast %cst_276 : f32 to vector<16x16xf32>
    %578 = arith.mulf %577, %576 : vector<16x16xf32>
    %579 = arith.subf %512, %578 : vector<16x16xf32>
    %cst_277 = arith.constant 0.000000e+00 : f32
    %580 = vector.broadcast %cst_277 : f32 to vector<16x16xf32>
    %581 = arith.maximumf %579, %580 : vector<16x16xf32>
    %cst_278 = arith.constant 0.000000e+00 : f32
    %582 = vector.broadcast %cst_278 : f32 to vector<16x16xf32>
    %583 = arith.subf %582, %574 : vector<16x16xf32>
    %cst_279 = arith.constant 7.000000e-02 : f32
    %584 = vector.broadcast %cst_279 : f32 to vector<16x16xf32>
    %585 = arith.addf %583, %584 : vector<16x16xf32>
    %cst_280 = arith.constant 2.500000e+00 : f32
    %586 = vector.broadcast %cst_280 : f32 to vector<16x16xf32>
    %587 = arith.mulf %586, %585 : vector<16x16xf32>
    %588 = arith.subf %516, %587 : vector<16x16xf32>
    %cst_281 = arith.constant 0.000000e+00 : f32
    %589 = vector.broadcast %cst_281 : f32 to vector<16x16xf32>
    %590 = arith.maximumf %588, %589 : vector<16x16xf32>
    %591 = arith.subf %581, %590 : vector<16x16xf32>
    %592 = tpu.transpose %591, [1, 0] : vector<16x16xf32> -> vector<16x16xf32>
    %593 = arith.addf %591, %592 : vector<16x16xf32>
    %cst_282 = arith.constant 5.000000e-01 : f32
    %594 = vector.broadcast %cst_282 : f32 to vector<16x16xf32>
    %595 = arith.mulf %594, %593 : vector<16x16xf32>
    %cst_283 = arith.constant 0.000000e+00 : f32
    %596 = vector.broadcast %cst_283 : f32 to vector<16x16xf32>
    %597 = arith.maximumf %595, %596 : vector<16x16xf32>
    %cst_284 = arith.constant 0.000000e+00 : f32
    %598 = vector.broadcast %cst_284 : f32 to vector<16x16xf32>
    %599 = arith.subf %598, %595 : vector<16x16xf32>
    %cst_285 = arith.constant 0.000000e+00 : f32
    %600 = vector.broadcast %cst_285 : f32 to vector<16x16xf32>
    %601 = arith.maximumf %599, %600 : vector<16x16xf32>
    %602 = arith.addf %595, %13 : vector<16x16xf32>
    %603 = arith.mulf %602, %4 : vector<16x16xf32>
    %604 = vector.shape_cast %603 : vector<16x16xf32> to vector<1x16x16xf32>
    %cst_286 = arith.constant dense<0.000000e+00> : vector<1xf32>
    %605 = vector.multi_reduction <add>, %604, %cst_286 [1, 2] : vector<1x16x16xf32> to vector<1xf32>
    %606 = vector.shape_cast %605 : vector<1xf32> to vector<1x1x1xf32>
    %607 = vector.extract %606[0, 0, 0] : f32 from vector<1x1x1xf32>
    %608 = vector.broadcast %607 : f32 to vector<16x16xf32>
    %609 = arith.divf %602, %608 : vector<16x16xf32>
    %610 = arith.subf %6, %609 : vector<16x16xf32>
    %cst_287 = arith.constant 5.000000e-01 : f32
    %611 = vector.broadcast %cst_287 : f32 to vector<16x16xf32>
    %612 = arith.mulf %611, %610 : vector<16x16xf32>
    %cst_288 = arith.constant dense<0.000000e+00> : vector<16x16xf32>
    %613 = tpu.matmul %609, %612, %cst_288 {dimension_numbers = #tpu.dot_dimension_numbers<[1], [0], [0], [1], [0, 0, 1, 1], [], []>} : vector<16x16xf32>, vector<16x16xf32>, vector<16x16xf32> -> vector<16x16xf32>
    %cst_289 = arith.constant dense<0.000000e+00> : vector<16x16xf32>
    %614 = tpu.matmul %612, %613, %cst_289 {dimension_numbers = #tpu.dot_dimension_numbers<[1], [0], [0], [1], [0, 0, 1, 1], [], []>} : vector<16x16xf32>, vector<16x16xf32>, vector<16x16xf32> -> vector<16x16xf32>
    %615 = arith.subf %6, %614 : vector<16x16xf32>
    %cst_290 = arith.constant 5.000000e-01 : f32
    %616 = vector.broadcast %cst_290 : f32 to vector<16x16xf32>
    %617 = arith.mulf %616, %615 : vector<16x16xf32>
    %cst_291 = arith.constant dense<0.000000e+00> : vector<16x16xf32>
    %618 = tpu.matmul %613, %617, %cst_291 {dimension_numbers = #tpu.dot_dimension_numbers<[1], [0], [0], [1], [0, 0, 1, 1], [], []>} : vector<16x16xf32>, vector<16x16xf32>, vector<16x16xf32> -> vector<16x16xf32>
    %cst_292 = arith.constant dense<0.000000e+00> : vector<16x16xf32>
    %619 = tpu.matmul %617, %612, %cst_292 {dimension_numbers = #tpu.dot_dimension_numbers<[1], [0], [0], [1], [0, 0, 1, 1], [], []>} : vector<16x16xf32>, vector<16x16xf32>, vector<16x16xf32> -> vector<16x16xf32>
    %cst_293 = arith.constant dense<0.000000e+00> : vector<16x16xf32>
    %620 = tpu.matmul %619, %618, %cst_293 {dimension_numbers = #tpu.dot_dimension_numbers<[1], [0], [0], [1], [0, 0, 1, 1], [], []>} : vector<16x16xf32>, vector<16x16xf32>, vector<16x16xf32> -> vector<16x16xf32>
    %621 = arith.subf %6, %620 : vector<16x16xf32>
    %cst_294 = arith.constant 5.000000e-01 : f32
    %622 = vector.broadcast %cst_294 : f32 to vector<16x16xf32>
    %623 = arith.mulf %622, %621 : vector<16x16xf32>
    %cst_295 = arith.constant dense<0.000000e+00> : vector<16x16xf32>
    %624 = tpu.matmul %618, %623, %cst_295 {dimension_numbers = #tpu.dot_dimension_numbers<[1], [0], [0], [1], [0, 0, 1, 1], [], []>} : vector<16x16xf32>, vector<16x16xf32>, vector<16x16xf32> -> vector<16x16xf32>
    %cst_296 = arith.constant dense<0.000000e+00> : vector<16x16xf32>
    %625 = tpu.matmul %623, %619, %cst_296 {dimension_numbers = #tpu.dot_dimension_numbers<[1], [0], [0], [1], [0, 0, 1, 1], [], []>} : vector<16x16xf32>, vector<16x16xf32>, vector<16x16xf32> -> vector<16x16xf32>
    %cst_297 = arith.constant dense<0.000000e+00> : vector<16x16xf32>
    %626 = tpu.matmul %625, %624, %cst_297 {dimension_numbers = #tpu.dot_dimension_numbers<[1], [0], [0], [1], [0, 0, 1, 1], [], []>} : vector<16x16xf32>, vector<16x16xf32>, vector<16x16xf32> -> vector<16x16xf32>
    %627 = arith.subf %6, %626 : vector<16x16xf32>
    %cst_298 = arith.constant 5.000000e-01 : f32
    %628 = vector.broadcast %cst_298 : f32 to vector<16x16xf32>
    %629 = arith.mulf %628, %627 : vector<16x16xf32>
    %cst_299 = arith.constant dense<0.000000e+00> : vector<16x16xf32>
    %630 = tpu.matmul %624, %629, %cst_299 {dimension_numbers = #tpu.dot_dimension_numbers<[1], [0], [0], [1], [0, 0, 1, 1], [], []>} : vector<16x16xf32>, vector<16x16xf32>, vector<16x16xf32> -> vector<16x16xf32>
    %cst_300 = arith.constant dense<0.000000e+00> : vector<16x16xf32>
    %631 = tpu.matmul %629, %625, %cst_300 {dimension_numbers = #tpu.dot_dimension_numbers<[1], [0], [0], [1], [0, 0, 1, 1], [], []>} : vector<16x16xf32>, vector<16x16xf32>, vector<16x16xf32> -> vector<16x16xf32>
    %cst_301 = arith.constant dense<0.000000e+00> : vector<16x16xf32>
    %632 = tpu.matmul %631, %630, %cst_301 {dimension_numbers = #tpu.dot_dimension_numbers<[1], [0], [0], [1], [0, 0, 1, 1], [], []>} : vector<16x16xf32>, vector<16x16xf32>, vector<16x16xf32> -> vector<16x16xf32>
    %633 = arith.subf %6, %632 : vector<16x16xf32>
    %cst_302 = arith.constant 5.000000e-01 : f32
    %634 = vector.broadcast %cst_302 : f32 to vector<16x16xf32>
    %635 = arith.mulf %634, %633 : vector<16x16xf32>
    %cst_303 = arith.constant dense<0.000000e+00> : vector<16x16xf32>
    %636 = tpu.matmul %630, %635, %cst_303 {dimension_numbers = #tpu.dot_dimension_numbers<[1], [0], [0], [1], [0, 0, 1, 1], [], []>} : vector<16x16xf32>, vector<16x16xf32>, vector<16x16xf32> -> vector<16x16xf32>
    %cst_304 = arith.constant dense<0.000000e+00> : vector<16x16xf32>
    %637 = tpu.matmul %635, %631, %cst_304 {dimension_numbers = #tpu.dot_dimension_numbers<[1], [0], [0], [1], [0, 0, 1, 1], [], []>} : vector<16x16xf32>, vector<16x16xf32>, vector<16x16xf32> -> vector<16x16xf32>
    %cst_305 = arith.constant dense<0.000000e+00> : vector<16x16xf32>
    %638 = tpu.matmul %637, %636, %cst_305 {dimension_numbers = #tpu.dot_dimension_numbers<[1], [0], [0], [1], [0, 0, 1, 1], [], []>} : vector<16x16xf32>, vector<16x16xf32>, vector<16x16xf32> -> vector<16x16xf32>
    %639 = arith.subf %6, %638 : vector<16x16xf32>
    %cst_306 = arith.constant 5.000000e-01 : f32
    %640 = vector.broadcast %cst_306 : f32 to vector<16x16xf32>
    %641 = arith.mulf %640, %639 : vector<16x16xf32>
    %cst_307 = arith.constant dense<0.000000e+00> : vector<16x16xf32>
    %642 = tpu.matmul %636, %641, %cst_307 {dimension_numbers = #tpu.dot_dimension_numbers<[1], [0], [0], [1], [0, 0, 1, 1], [], []>} : vector<16x16xf32>, vector<16x16xf32>, vector<16x16xf32> -> vector<16x16xf32>
    %cst_308 = arith.constant dense<0.000000e+00> : vector<16x16xf32>
    %643 = tpu.matmul %641, %637, %cst_308 {dimension_numbers = #tpu.dot_dimension_numbers<[1], [0], [0], [1], [0, 0, 1, 1], [], []>} : vector<16x16xf32>, vector<16x16xf32>, vector<16x16xf32> -> vector<16x16xf32>
    %cst_309 = arith.constant dense<0.000000e+00> : vector<16x16xf32>
    %644 = tpu.matmul %643, %642, %cst_309 {dimension_numbers = #tpu.dot_dimension_numbers<[1], [0], [0], [1], [0, 0, 1, 1], [], []>} : vector<16x16xf32>, vector<16x16xf32>, vector<16x16xf32> -> vector<16x16xf32>
    %645 = arith.subf %6, %644 : vector<16x16xf32>
    %cst_310 = arith.constant 5.000000e-01 : f32
    %646 = vector.broadcast %cst_310 : f32 to vector<16x16xf32>
    %647 = arith.mulf %646, %645 : vector<16x16xf32>
    %cst_311 = arith.constant dense<0.000000e+00> : vector<16x16xf32>
    %648 = tpu.matmul %647, %643, %cst_311 {dimension_numbers = #tpu.dot_dimension_numbers<[1], [0], [0], [1], [0, 0, 1, 1], [], []>} : vector<16x16xf32>, vector<16x16xf32>, vector<16x16xf32> -> vector<16x16xf32>
    %649 = math.rsqrt %607 : f32
    %650 = vector.broadcast %649 : f32 to vector<16x16xf32>
    %651 = arith.mulf %648, %650 : vector<16x16xf32>
    %cst_312 = arith.constant dense<0.000000e+00> : vector<16x16xf32>
    %652 = tpu.matmul %651, %651, %cst_312 {dimension_numbers = #tpu.dot_dimension_numbers<[1], [0], [0], [1], [0, 0, 1, 1], [], []>} : vector<16x16xf32>, vector<16x16xf32>, vector<16x16xf32> -> vector<16x16xf32>
    %cst_313 = arith.constant 0.000000e+00 : f32
    %653 = vector.broadcast %cst_313 : f32 to vector<16x16xf32>
    %654 = arith.subf %653, %652 : vector<16x16xf32>
    %655 = tpu.transpose %374, [1, 0] : vector<16x16xf32> -> vector<16x16xf32>
    %656 = arith.addf %655, %374 : vector<16x16xf32>
    %cst_314 = arith.constant 5.000000e-01 : f32
    %657 = vector.broadcast %cst_314 : f32 to vector<16x16xf32>
    %658 = arith.mulf %657, %656 : vector<16x16xf32>
    %659 = arith.addf %654, %658 : vector<16x16xf32>
    %cst_315 = arith.constant 7.000000e-02 : f32
    %660 = vector.broadcast %cst_315 : f32 to vector<16x16xf32>
    %661 = arith.addf %659, %660 : vector<16x16xf32>
    %cst_316 = arith.constant 0.000000e+00 : f32
    %662 = vector.broadcast %cst_316 : f32 to vector<16x16xf32>
    %663 = arith.mulf %662, %661 : vector<16x16xf32>
    %664 = arith.subf %597, %663 : vector<16x16xf32>
    %cst_317 = arith.constant 0.000000e+00 : f32
    %665 = vector.broadcast %cst_317 : f32 to vector<16x16xf32>
    %666 = arith.maximumf %664, %665 : vector<16x16xf32>
    %cst_318 = arith.constant 0.000000e+00 : f32
    %667 = vector.broadcast %cst_318 : f32 to vector<16x16xf32>
    %668 = arith.subf %667, %659 : vector<16x16xf32>
    %cst_319 = arith.constant 7.000000e-02 : f32
    %669 = vector.broadcast %cst_319 : f32 to vector<16x16xf32>
    %670 = arith.addf %668, %669 : vector<16x16xf32>
    %cst_320 = arith.constant 0.000000e+00 : f32
    %671 = vector.broadcast %cst_320 : f32 to vector<16x16xf32>
    %672 = arith.mulf %671, %670 : vector<16x16xf32>
    %673 = arith.subf %601, %672 : vector<16x16xf32>
    %cst_321 = arith.constant 0.000000e+00 : f32
    %674 = vector.broadcast %cst_321 : f32 to vector<16x16xf32>
    %675 = arith.maximumf %673, %674 : vector<16x16xf32>
    %676 = arith.subf %666, %675 : vector<16x16xf32>
    %677 = tpu.transpose %676, [1, 0] : vector<16x16xf32> -> vector<16x16xf32>
    %678 = arith.addf %676, %677 : vector<16x16xf32>
    %cst_322 = arith.constant 5.000000e-01 : f32
    %679 = vector.broadcast %cst_322 : f32 to vector<16x16xf32>
    %680 = arith.mulf %679, %678 : vector<16x16xf32>
    %681 = vector.broadcast %372 : f32 to vector<16x16xf32>
    %682 = arith.divf %680, %681 : vector<16x16xf32>
    %c1_323 = arith.constant 1 : index
    %c0_324 = arith.constant 0 : index
    %c0_325 = arith.constant 0 : index
    %683 = vector.load %arg5[%c1_323, %c0_324, %c0_325] : memref<2x16x16xf32, #tpu.memory_space<vmem>>, vector<1x16x16xf32>
    %684 = vector.shape_cast %683 : vector<1x16x16xf32> to vector<16x16xf32>
    %685 = vector.shape_cast %682 : vector<16x16xf32> to vector<1x16x16xf32>
    tpu.vector_store %arg5[%c1_323, %c0_324, %c0_325], %685 {strides = array<i32>} : memref<2x16x16xf32, #tpu.memory_space<vmem>>, vector<1x16x16xf32>,
    return
  }
  func.func @transform_0(%arg0: i32) -> (i32, i32, i32) {
    %c0_i32 = arith.constant 0 : i32
    %c0_i32_0 = arith.constant 0 : i32
    %c0_i32_1 = arith.constant 0 : i32
    return %arg0, %c0_i32, %c0_i32_0 : i32, i32, i32
  }
  func.func @transform_1(%arg0: i32) -> (i32, i32) {
    %c0_i32 = arith.constant 0 : i32
    %c0_i32_0 = arith.constant 0 : i32
    %c0_i32_1 = arith.constant 0 : i32
    return %c0_i32, %c0_i32_0 : i32, i32
  }
  func.func @transform_2(%arg0: i32) -> (i32, i32) {
    %c0_i32 = arith.constant 0 : i32
    %c0_i32_0 = arith.constant 0 : i32
    %c0_i32_1 = arith.constant 0 : i32
    return %c0_i32, %c0_i32_0 : i32, i32
  }
  func.func @transform_3(%arg0: i32) -> (i32, i32) {
    %c0_i32 = arith.constant 0 : i32
    %c0_i32_0 = arith.constant 0 : i32
    %c0_i32_1 = arith.constant 0 : i32
    return %c0_i32, %c0_i32_0 : i32, i32
  }
  func.func @transform_4(%arg0: i32) -> (i32, i32, i32) {
    %c0_i32 = arith.constant 0 : i32
    %c0_i32_0 = arith.constant 0 : i32
    %c0_i32_1 = arith.constant 0 : i32
    return %arg0, %c0_i32, %c0_i32_0 : i32, i32, i32
  }
}

</mosaic_0001>

<bundles_post_ra>
// kernel: tpu_custom_call.1
= control target key start
LH: loop header
LB: loop body
LE: loop exit
PB: predicated region body
PF: predicated region fallthrough
CT: control target
= control target key end

     0   :  { %9 = vsyncpa [#allocation3], 0  ;;  %s17245_s0 = inlined_call_operand.hbm [shape: f32[2,32,64], index: 0, kind: input, shape index: {}]   ;;  %s17246_s1 = inlined_call_operand.vmem [shape: f32[16,32], index: 1, kind: input, shape index: {}]   ;;  %s17247_s2 = inlined_call_operand.vmem [shape: f32[16,1], index: 2, kind: input, shape index: {}]   ;;  %s17248_s3 = inlined_call_operand.vmem [shape: f32[1,16], index: 3, kind: input, shape index: {}]   ;;  %s17249_s4 = inlined_call_operand.hbm [shape: f32[2,16,16], index: 4, kind: output, shape index: {}]  }
   0x1   :  { %10 = vsyncpa [#allocation4], 0  ;;  %s16517_s15 = smov [#allocation2]   ;;  %s16469_s19 = scalar_lea.hbm %s17245_s0, 1024 }
   0x2   :  { %s16_s16 = sshll.u32 %s16517_s15, 4  ;;  %p16470_p0 = scmp.ne.s32.totalorder %s17245_s0, %s16469_s19  ;;  %s17_s16 = int_to_ptr.vmem [resolvable:$true] %s16_s16 }
   0x3   :  { %p16473_p1 = scmp.lt.u32.totalorder %s16469_s19, %s17245_s0 }
   0x5   :  { %p16475_p2 = pnand %p16473_p1, %p16470_p0 }
   0x7   :  { %16478 = shalt.err (!%p16475_p2)
}
   0x8   :  { %s16479_s24 = scalar_lea.vmem %s17_s16, 1024  ;;  %p16484_p4 = scmp.lt.s32.totalorder %s17_s16, %s17_s16 }
   0x9   :  { %p16480_p3 = scmp.ne.s32.totalorder %s17_s16, %s16479_s24  ;;  %p16485_p5 = scmp.lt.s32.totalorder %s16479_s24, %s16479_s24 }
   0xb   :  { %p16486_p6 = por %p16485_p5, %p16484_p4 }
   0xd   :  { %p16487_p7 = pnand %p16486_p6, %p16480_p3 }
   0xf   :  { %16490 = shalt.err (!%p16487_p7)
}
  0x10   :  { %s16518_s25 = smov 128   ;;  %s16519_s26 = smov 8  }
  0x11   :  { %22 = dma.hbm_to_vmem [thread:$0]  %s17245_s0, 1024, %s17_s16, [#allocation3], %s16518_s25, %s16518_s25, %s16519_s26  }
  0x12   :  { %16513 = dma.done.wait [#allocation3], 1024  }
  0x13   :  { %16514 = vsyncadd [#allocation3], 4294966272  ;;  %v16520_v0 = vmov 0   ;;  %vm76_vm0 = vcmask 261120   ;;  %v62_v1 = vld [vmem:[#allocation2] sm:$0xff]  ;;  %v63_v2 = vld [vmem:[#allocation2 + $0x8] sm:$0xff]  ;;  %v32_v29 = vlaneseq }
  0x14   :  { %16430 = vset.pattern.permute.xlu0 %v16520_v0  ;;  %v64_v3 = vld [vmem:[#allocation2 + $0x10] sm:$0xff]  ;;  %v15752_v4 = vpack.c.bf16 %v63_v2, %v62_v1  ;;  %v65_v5 = vld [vmem:[#allocation2 + $0x18] sm:$0xff]  ;;  %v58_v6 = vld [vmem:[%s17246_s1] sm:$0xff]  ;;  %vm160_vm1 = vcmask 523264   ;;  %v16521_v33 = vmov 0.0   ;;  %vm257_vm5 = vcmask 130048  }
  0x15   :  { %v15756_v7 = vpack.c.bf16 %v65_v5, %v64_v3  ;;  %14660 = vmatprep.mubr.msk.f32.mxu0 %vm76_vm0, %v58_v6  ;;  %v60_v8 = vld [vmem:[%s17247_s2] sm:$0xff]  ;;  %v61_v9 = vld [vmem:[%s17247_s2 + $0x8] sm:$0xff]  ;;  %vm16588_vm2 = vmpackc.low %vm160_vm1, %vm160_vm1  ;;  %v33_v30 = vshrl.u32 %v32_v29, 7  ;;  %v36_v32 = vand.u32 127, %v32_v29  ;;  %s16522_s0 = smov [#allocation5]  }
  0x16   :  { %15753 = vmatprep.subr.bf16.mxu0 %v15752_v4  ;;  %68 = vperm.xlu0 %16430, %v60_v8   ;;  %v59_v10 = vld [vmem:[%s17246_s1 + $0x8] sm:$0xff]  ;;  %v13707_v52 = vld [vmem:[%s17248_s3] ss:$0 sm:$0xff]  ;;  %s13693_s7 = sshll.u32 %s16522_s0, 4  ;;  %s13694_s7 = int_to_ptr.vmem [resolvable:$true] %s13693_s7 }
  0x17   :  { %15755 = vmatpush3.bf16.msra.mxu0 %v15752_v4  ;;  %v34_v31 = vadd.s32 8, %v33_v30  ;;  %vm37_vm4 = vcmp.eq.s32.totalorder %v33_v30, %v36_v32  ;;  %s16491_s8 = scalar_lea.vmem %s13694_s7, 512  ;;  %p16496_p9 = scmp.lt.s32.totalorder %s13694_s7, %s13694_s7 }
  0x18   :  { %15757 = vmatprep.subr.bf16.mxu0 %v15756_v7  ;;  %v16599_v37 = vsel %vm37_vm4, 1.0, %v16521_v33  ;;  %p16492_p8 = scmp.ne.s32.totalorder %s13694_s7, %s16491_s8  ;;  %p16497_p10 = scmp.lt.s32.totalorder %s16491_s8, %s16491_s8 }
  0x19   :  { %vm38_vm3 = vcmp.eq.s32.totalorder %v34_v31, %v36_v32  ;;  %v52_v54 = vmul.f32 %v13707_v52, %v16599_v37 }
  0x1a   :  { %73 = vperm.xlu0 %16430, %v61_v9   ;;  %v16597_v34 = vsel %vm38_vm3, 1.0, %v16521_v33  ;;  %p16498_p11 = por %p16497_p10, %p16496_p9 }
  0x1b   :  { %15759 = vmatpush3.bf16.msra.mxu0 %v15756_v7  ;;  %v53_v55 = vmul.f32 %v13707_v52, %v16597_v34  ;;  %v54_v56 = vmul.f32 1e-09, %v52_v54 }
  0x1c   :  { %p16499_p12 = pnand %p16498_p11, %p16492_p8 }
  0x1d   :  { %v55_v57 = vmul.f32 1e-09, %v53_v55  ;;  %v16610_v58 = vadd.f32 1e-10, %v54_v56 }
  0x1e   :  { %14661 = vmatmul.mubr.msk.f32.vlgmr.msra.gmra.mrb[0].mxu0 %vm76_vm0, %v59_v10 }
  0x1f   :  { %v16612_v59 = vadd.f32 1e-10, %v55_v57 }
  0x95   :  { %v16577_v11 = vpop.permute.xlu0 %68 }
  0x99   :  { %v16579_v12 = vpop.permute.xlu0 %73 }
  0xf1   :  { %v14662_v13 = vpop.f32.mrb[0].mxu0 }
  0xf2   :  { %v149_v14 = vpop.f32.mrb[1].mxu0  ;;  %v155_v15 = vadd.f32 %v14662_v13, %v16579_v12 }
  0xf3   :  { %v150_v16 = vadd.f32 %v149_v14, %v16577_v11 }
  0xf4   :  { %v159_v18 = vmax.f32 %v155_v15, 0.0 }
  0xf5   :  { %v158_v17 = vmax.f32 %v150_v16, 0.0  ;;  %v16631_v16 = vmul.f32 3.0, %v16597_v34 }
  0xf6   :  { %v164_v20 = vsel %vm160_vm1, %v159_v18, 0.0 }
  0xf7   :  { %v161_v19 = vsel %vm160_vm1, %v158_v17, 0.0 }
  0xf8   :  { %162 = vadd.xlane.f32.xlu1 %v161_v19 }
  0xfc   :  { %165 = vadd.xlane.f32.xlu1 %v164_v20 }
 0x185   :  { %v163_v21 = vpop.xlane.xlu1 %162 }
 0x186   :  { %v168_v22 = vmul.f32 0.015625, %v163_v21 }
 0x188   :  { %v170_v23 = vsub.f32 %v158_v17, %v168_v22  ;;  %v16634_v17 = vmul.f32 3.0, %v16599_v37 }
 0x189   :  { %v166_v24 = vpop.xlane.xlu1 %165 }
 0x18a   :  { %v169_v25 = vmul.f32 0.015625, %v166_v24  ;;  %14667 = vmatprep.mubr.msk.f32.mxu1 %vm160_vm1, %v170_v23 }
 0x18c   :  { %v171_v26 = vsub.f32 %v159_v18, %v169_v25 }
 0x18e   :  { %v15760_v28 = vpack.c.bf16 %v171_v26, %v170_v23 }
 0x190   :  { %15762 = vmatprep.subr.msk.bf16.mxu1 %vm16588_vm2, %v15760_v28 }
 0x191   :  { %15765 = vmatpush3.bf16.xpose.msk.msra.mxu1 %vm16588_vm2, %v15760_v28 }
 0x198   :  { %14668 = vmatmul.mubr.msk.f32.vlgmr.msra.gmra.mrb[0].mxu1 %vm160_vm1, %v171_v26 }
 0x26b   :  { %v14669_v35 = vpop.f32.mrb[0].mxu1 }
 0x26c   :  { %v254_v36 = vmul.f32 0.015625, %v14669_v35  ;;  %v244_v38 = vpop.f32.mrb[1].mxu1 }
 0x26d   :  { %v253_v39 = vmul.f32 0.015625, %v244_v38 }
 0x26e   :  { %v256_v40 = vmul.f32 %v16597_v34, %v254_v36 }
 0x26f   :  { %v255_v41 = vmul.f32 %v16599_v37, %v253_v39 }
 0x270   :  { %v259_v42 = vsel %vm257_vm5, %v256_v40, 0.0 }
 0x271   :  { %v258_v43 = vsel %vm257_vm5, %v255_v41, 0.0 }
 0x272   :  { %v260_v44 = vadd.f32 %v259_v42, %v258_v43 }
 0x274   :  { %261 = vadd.xlane.f32.xlu0 %v260_v44 }
 0x301   :  { %v262_v45 = vpop.xlane.xlu0 %261 }
 0x302   :  { %v263_v46 = vrot.slane %v262_v45, 4 }
 0x304   :  { %v264_v47 = vadd.f32 %v263_v46, %v262_v45 }
 0x306   :  { %v265_v48 = vrot.slane %v264_v47, 2 }
 0x308   :  { %v266_v49 = vadd.f32 %v265_v48, %v264_v47 }
 0x30a   :  { %v267_v50 = vrot.slane %v266_v49, 1 }
 0x30c   :  { %v268_v51 = vadd.f32 %v267_v50, %v266_v49 }
 0x30e   :  { %16388 = vpush %v268_v51 }
 0x33f   :  { %s16389_s2 = spop %16388 }
 0x340   :  { %v270_v53 = vstv %s16389_s2 }
 0x341   :  { %16431 = vrcp.f32 %v270_v53 }
 0x34b   :  { %v16614_v60 = vpop.eup %16431 }
 0x34c   :  { %v16617_v61 = vmul.f32 %v16614_v60, %v253_v39  ;;  %v16620_v62 = vmul.f32 %v16614_v60, %v254_v36 }
 0x34e   :  { %v274_v63 = vadd.f32 %v16617_v61, %v16610_v58  ;;  %v275_v0 = vadd.f32 %v16620_v62, %v16612_v59 }
 0x350   :  { %v276_v1 = vmul.f32 %v16599_v37, %v274_v63  ;;  %v277_v2 = vmul.f32 %v16597_v34, %v275_v0 }
 0x352   :  { %v278_v3 = vsel %vm257_vm5, %v276_v1, 0.0  ;;  %v279_v4 = vsel %vm257_vm5, %v277_v2, 0.0 }
 0x353   :  { %v280_v5 = vadd.f32 %v279_v4, %v278_v3 }
 0x355   :  { %281 = vadd.xlane.f32.xlu1 %v280_v5 }
 0x3e2   :  { %v282_v6 = vpop.xlane.xlu1 %281 }
 0x3e3   :  { %v283_v7 = vrot.slane %v282_v6, 4 }
 0x3e5   :  { %v284_v8 = vadd.f32 %v283_v7, %v282_v6 }
 0x3e7   :  { %v285_v9 = vrot.slane %v284_v8, 2 }
 0x3e9   :  { %v286_v10 = vadd.f32 %v285_v9, %v284_v8 }
 0x3eb   :  { %v287_v13 = vrot.slane %v286_v10, 1 }
 0x3ed   :  { %v288_v14 = vadd.f32 %v287_v13, %v286_v10 }
 0x3ef   :  { %16390 = vpush %v288_v14 }
 0x420   :  { %s16391_s3 = spop %16390 }
 0x421   :  { %v290_v15 = vstv %s16391_s3 }
 0x422   :  { %16433 = vrcp.f32 %v290_v15 }
 0x423   :  { %16435 = vrsqrt.f32 %v290_v15 }
 0x42c   :  { %v16434_v18 = vpop.eup %16433 }
 0x42d   :  { %v16436_v19 = vpop.eup %16435  ;;  %v292_v20 = vmul.f32 %v16434_v18, %v274_v63  ;;  %v293_v21 = vmul.f32 %v16434_v18, %v275_v0 }
 0x42e   :  { %16392 = vpush %v16436_v19 }
 0x42f   :  { %14674 = vmatprep.mubr.msk.f32.mxu0 %vm257_vm5, %v292_v20  ;;  %v294_v22 = vsub.f32 %v16634_v17, %v292_v20  ;;  %v295_v23 = vsub.f32 %v16631_v16, %v293_v21 }
 0x431   :  { %v296_v24 = vmul.f32 0.5, %v294_v22  ;;  %v297_v25 = vmul.f32 0.5, %v295_v23 }
 0x433   :  { %14681 = vmatprep.mubr.msk.f32.mxu1 %vm257_vm5, %v296_v24  ;;  %v15766_v26 = vpack.c.bf16 %v297_v25, %v296_v24 }
 0x435   :  { %15767 = vmatprep.subr.bf16.mxu0 %v15766_v26 }
 0x436   :  { %15769 = vmatpush3.bf16.msra.mxu0 %v15766_v26 }
 0x439   :  { %14675 = vmatmul.mubr.msk.f32.vlgmr.msra.gmra.mrb[2].mxu0 %vm257_vm5, %v293_v21 }
 0x45f   :  { %s16393_s12 = spop %16392 }
 0x50c   :  { %v14676_v28 = vpop.f32.mrb[2].mxu0 }
 0x50d   :  { %v370_v29 = vpop.f32.mrb[3].mxu0 }
 0x50e   :  { %v15770_v30 = vpack.c.bf16 %v14676_v28, %v370_v29  ;;  %14688 = vmatprep.mubr.msk.f32.mxu0 %vm257_vm5, %v370_v29 }
 0x510   :  { %15771 = vmatprep.subr.bf16.mxu1 %v15770_v30 }
 0x511   :  { %15773 = vmatpush3.bf16.msra.mxu1 %v15770_v30 }
 0x512   :  { %15779 = vmatprep.subr.bf16.mxu1 %v15766_v26 }
 0x514   :  { %14682 = vmatmul.mubr.msk.f32.vlgmr.msra.gmra.mrb[2].mxu1 %vm257_vm5, %v297_v25 }
 0x515   :  { %15781 = vmatpush3.bf16.msra.mxu1 %v15766_v26 }
 0x5e7   :  { %v14683_v31 = vpop.f32.mrb[2].mxu1 }
 0x5e8   :  { %v461_v32 = vsub.f32 %v16631_v16, %v14683_v31  ;;  %v451_v33 = vpop.f32.mrb[3].mxu1 }
 0x5e9   :  { %v460_v35 = vsub.f32 %v16634_v17, %v451_v33 }
 0x5ea   :  { %v463_v36 = vmul.f32 0.5, %v461_v32 }
 0x5eb   :  { %v462_v38 = vmul.f32 0.5, %v460_v35 }
 0x5ed   :  { %v15774_v39 = vpack.c.bf16 %v463_v36, %v462_v38  ;;  %14695 = vmatprep.mubr.msk.f32.mxu1 %vm257_vm5, %v462_v38 }
 0x5ee   :  { %14696 = vmatmul.mubr.msk.f32.vlgmr.msra.gmra.mrb[4].mxu1 %vm257_vm5, %v463_v36 }
 0x5ef   :  { %15775 = vmatprep.subr.bf16.mxu0 %v15774_v39 }
 0x5f0   :  { %15777 = vmatpush3.bf16.msra.mxu0 %v15774_v39 }
 0x5f3   :  { %14689 = vmatmul.mubr.msk.f32.vlgmr.msra.gmra.mrb[4].mxu0 %vm257_vm5, %v14676_v28 }
 0x6c1   :  { %v14697_v40 = vpop.f32.mrb[4].mxu1 }
 0x6c2   :  { %v617_v41 = vpop.f32.mrb[5].mxu1 }
 0x6c3   :  { %v15790_v42 = vpack.c.bf16 %v14697_v40, %v617_v41  ;;  %14702 = vmatprep.mubr.msk.f32.mxu0 %vm257_vm5, %v617_v41 }
 0x6c6   :  { %v14690_v43 = vpop.f32.mrb[4].mxu0 }
 0x6c7   :  { %v536_v44 = vpop.f32.mrb[5].mxu0 }
 0x6c8   :  { %v15782_v45 = vpack.c.bf16 %v14690_v43, %v536_v44  ;;  %14709 = vmatprep.mubr.msk.f32.mxu1 %vm257_vm5, %v536_v44 }
 0x6ca   :  { %15783 = vmatprep.subr.bf16.mxu0 %v15782_v45 }
 0x6cb   :  { %15785 = vmatpush3.bf16.msra.mxu0 %v15782_v45 }
 0x6cc   :  { %15791 = vmatprep.subr.bf16.mxu0 %v15790_v42 }
 0x6ce   :  { %14703 = vmatmul.mubr.msk.f32.vlgmr.msra.gmra.mrb[6].mxu0 %vm257_vm5, %v14697_v40 }
 0x6cf   :  { %15793 = vmatpush3.bf16.msra.mxu0 %v15790_v42 }
 0x7a1   :  { %v14704_v46 = vpop.f32.mrb[6].mxu0 }
 0x7a2   :  { %v708_v47 = vsub.f32 %v16631_v16, %v14704_v46  ;;  %v698_v48 = vpop.f32.mrb[7].mxu0 }
 0x7a3   :  { %v707_v49 = vsub.f32 %v16634_v17, %v698_v48 }
 0x7a4   :  { %v710_v50 = vmul.f32 0.5, %v708_v47 }
 0x7a5   :  { %v709_v51 = vmul.f32 0.5, %v707_v49 }
 0x7a7   :  { %v15786_v52 = vpack.c.bf16 %v710_v50, %v709_v51  ;;  %14716 = vmatprep.mubr.msk.f32.mxu0 %vm257_vm5, %v709_v51 }
 0x7a8   :  { %14717 = vmatmul.mubr.msk.f32.vlgmr.msra.gmra.mrb[8].mxu0 %vm257_vm5, %v710_v50 }
 0x7a9   :  { %15787 = vmatprep.subr.bf16.mxu1 %v15786_v52 }
 0x7aa   :  { %15789 = vmatpush3.bf16.msra.mxu1 %v15786_v52  ;;  %v1783_v52 = vstv %s16393_s12 }
 0x7ad   :  { %14710 = vmatmul.mubr.msk.f32.vlgmr.msra.gmra.mrb[6].mxu1 %vm257_vm5, %v14690_v43 }
 0x87b   :  { %v14718_v53 = vpop.f32.mrb[8].mxu0 }
 0x87c   :  { %v864_v54 = vpop.f32.mrb[9].mxu0 }
 0x87d   :  { %v15802_v55 = vpack.c.bf16 %v14718_v53, %v864_v54  ;;  %14723 = vmatprep.mubr.msk.f32.mxu1 %vm257_vm5, %v864_v54 }
 0x880   :  { %v14711_v56 = vpop.f32.mrb[6].mxu1 }
 0x881   :  { %v783_v57 = vpop.f32.mrb[7].mxu1 }
 0x882   :  { %v15794_v63 = vpack.c.bf16 %v14711_v56, %v783_v57  ;;  %14730 = vmatprep.mubr.msk.f32.mxu0 %vm257_vm5, %v783_v57 }
 0x884   :  { %15795 = vmatprep.subr.bf16.mxu1 %v15794_v63 }
 0x885   :  { %15797 = vmatpush3.bf16.msra.mxu1 %v15794_v63 }
 0x886   :  { %15803 = vmatprep.subr.bf16.mxu1 %v15802_v55 }
 0x888   :  { %14724 = vmatmul.mubr.msk.f32.vlgmr.msra.gmra.mrb[8].mxu1 %vm257_vm5, %v14718_v53 }
 0x889   :  { %15805 = vmatpush3.bf16.msra.mxu1 %v15802_v55 }
 0x95b   :  { %v14725_v0 = vpop.f32.mrb[8].mxu1 }
 0x95c   :  { %v955_v1 = vsub.f32 %v16631_v16, %v14725_v0  ;;  %v945_v2 = vpop.f32.mrb[9].mxu1 }
 0x95d   :  { %v954_v3 = vsub.f32 %v16634_v17, %v945_v2 }
 0x95e   :  { %v957_v4 = vmul.f32 0.5, %v955_v1 }
 0x95f   :  { %v956_v5 = vmul.f32 0.5, %v954_v3 }
 0x961   :  { %v15798_v6 = vpack.c.bf16 %v957_v4, %v956_v5  ;;  %14737 = vmatprep.mubr.msk.f32.mxu1 %vm257_vm5, %v956_v5 }
 0x962   :  { %14738 = vmatmul.mubr.msk.f32.vlgmr.msra.gmra.mrb[10].mxu1 %vm257_vm5, %v957_v4 }
 0x963   :  { %15799 = vmatprep.subr.bf16.mxu0 %v15798_v6 }
 0x964   :  { %15801 = vmatpush3.bf16.msra.mxu0 %v15798_v6 }
 0x967   :  { %14731 = vmatmul.mubr.msk.f32.vlgmr.msra.gmra.mrb[10].mxu0 %vm257_vm5, %v14711_v56 }
 0xa35   :  { %v14739_v7 = vpop.f32.mrb[10].mxu1 }
 0xa36   :  { %v1111_v8 = vpop.f32.mrb[11].mxu1 }
 0xa37   :  { %v15814_v9 = vpack.c.bf16 %v14739_v7, %v1111_v8  ;;  %14744 = vmatprep.mubr.msk.f32.mxu0 %vm257_vm5, %v1111_v8 }
 0xa3a   :  { %v14732_v10 = vpop.f32.mrb[10].mxu0 }
 0xa3b   :  { %v1030_v13 = vpop.f32.mrb[11].mxu0 }
 0xa3c   :  { %v15806_v14 = vpack.c.bf16 %v14732_v10, %v1030_v13  ;;  %14751 = vmatprep.mubr.msk.f32.mxu1 %vm257_vm5, %v1030_v13 }
 0xa3e   :  { %15807 = vmatprep.subr.bf16.mxu0 %v15806_v14 }
 0xa3f   :  { %15809 = vmatpush3.bf16.msra.mxu0 %v15806_v14 }
 0xa40   :  { %15815 = vmatprep.subr.bf16.mxu0 %v15814_v9 }
 0xa42   :  { %14745 = vmatmul.mubr.msk.f32.vlgmr.msra.gmra.mrb[12].mxu0 %vm257_vm5, %v14739_v7 }
 0xa43   :  { %15817 = vmatpush3.bf16.msra.mxu0 %v15814_v9 }
 0xb15   :  { %v14746_v15 = vpop.f32.mrb[12].mxu0 }
 0xb16   :  { %v1202_v18 = vsub.f32 %v16631_v16, %v14746_v15  ;;  %v1192_v19 = vpop.f32.mrb[13].mxu0 }
 0xb17   :  { %v1201_v20 = vsub.f32 %v16634_v17, %v1192_v19 }
 0xb18   :  { %v1204_v21 = vmul.f32 0.5, %v1202_v18 }
 0xb19   :  { %v1203_v22 = vmul.f32 0.5, %v1201_v20 }
 0xb1b   :  { %v15810_v23 = vpack.c.bf16 %v1204_v21, %v1203_v22  ;;  %14758 = vmatprep.mubr.msk.f32.mxu0 %vm257_vm5, %v1203_v22 }
 0xb1c   :  { %14759 = vmatmul.mubr.msk.f32.vlgmr.msra.gmra.mrb[14].mxu0 %vm257_vm5, %v1204_v21 }
 0xb1d   :  { %15811 = vmatprep.subr.bf16.mxu1 %v15810_v23 }
 0xb1e   :  { %15813 = vmatpush3.bf16.msra.mxu1 %v15810_v23 }
 0xb21   :  { %14752 = vmatmul.mubr.msk.f32.vlgmr.msra.gmra.mrb[12].mxu1 %vm257_vm5, %v14732_v10 }
 0xbef   :  { %v14760_v24 = vpop.f32.mrb[14].mxu0 }
 0xbf0   :  { %v1358_v25 = vpop.f32.mrb[15].mxu0 }
 0xbf1   :  { %v15826_v26 = vpack.c.bf16 %v14760_v24, %v1358_v25  ;;  %14765 = vmatprep.mubr.msk.f32.mxu1 %vm257_vm5, %v1358_v25 }
 0xbf4   :  { %v14753_v28 = vpop.f32.mrb[12].mxu1 }
 0xbf5   :  { %v1277_v29 = vpop.f32.mrb[13].mxu1 }
 0xbf6   :  { %v15818_v30 = vpack.c.bf16 %v14753_v28, %v1277_v29  ;;  %14772 = vmatprep.mubr.msk.f32.mxu0 %vm257_vm5, %v1277_v29 }
 0xbf8   :  { %15819 = vmatprep.subr.bf16.mxu1 %v15818_v30 }
 0xbf9   :  { %15821 = vmatpush3.bf16.msra.mxu1 %v15818_v30 }
 0xbfa   :  { %15827 = vmatprep.subr.bf16.mxu1 %v15826_v26 }
 0xbfc   :  { %14766 = vmatmul.mubr.msk.f32.vlgmr.msra.gmra.mrb[14].mxu1 %vm257_vm5, %v14760_v24 }
 0xbfd   :  { %15829 = vmatpush3.bf16.msra.mxu1 %v15826_v26 }
 0xccf   :  { %v14767_v31 = vpop.f32.mrb[14].mxu1 }
 0xcd0   :  { %v1449_v32 = vsub.f32 %v16631_v16, %v14767_v31  ;;  %v1439_v33 = vpop.f32.mrb[15].mxu1 }
 0xcd1   :  { %v1448_v35 = vsub.f32 %v16634_v17, %v1439_v33 }
 0xcd2   :  { %v1451_v36 = vmul.f32 0.5, %v1449_v32 }
 0xcd3   :  { %v1450_v38 = vmul.f32 0.5, %v1448_v35 }
 0xcd5   :  { %v15822_v39 = vpack.c.bf16 %v1451_v36, %v1450_v38  ;;  %14779 = vmatprep.mubr.msk.f32.mxu1 %vm257_vm5, %v1450_v38 }
 0xcd6   :  { %14780 = vmatmul.mubr.msk.f32.vlgmr.msra.gmra.mrb[16].mxu1 %vm257_vm5, %v1451_v36 }
 0xcd7   :  { %15823 = vmatprep.subr.bf16.mxu0 %v15822_v39 }
 0xcd8   :  { %15825 = vmatpush3.bf16.msra.mxu0 %v15822_v39 }
 0xcdb   :  { %14773 = vmatmul.mubr.msk.f32.vlgmr.msra.gmra.mrb[16].mxu0 %vm257_vm5, %v14753_v28 }
 0xda9   :  { %v14781_v40 = vpop.f32.mrb[16].mxu1 }
 0xdaa   :  { %v1605_v41 = vpop.f32.mrb[17].mxu1 }
 0xdab   :  { %v15834_v42 = vpack.c.bf16 %v14781_v40, %v1605_v41  ;;  %14786 = vmatprep.mubr.msk.f32.mxu0 %vm257_vm5, %v1605_v41 }
 0xdad   :  { %15835 = vmatprep.subr.bf16.mxu1 %v15834_v42 }
 0xdae   :  { %v14774_v43 = vpop.f32.mrb[16].mxu0  ;;  %15837 = vmatpush3.bf16.msra.mxu1 %v15834_v42 }
 0xdaf   :  { %v1524_v44 = vpop.f32.mrb[17].mxu0 }
 0xdb0   :  { %v15830_v45 = vpack.c.bf16 %v14774_v43, %v1524_v44 }
 0xdb2   :  { %15831 = vmatprep.subr.bf16.mxu0 %v15830_v45 }
 0xdb3   :  { %15833 = vmatpush3.bf16.msra.mxu0 %v15830_v45 }
 0xdb6   :  { %14787 = vmatmul.mubr.msk.f32.vlgmr.msra.gmra.mrb[18].mxu0 %vm257_vm5, %v14781_v40 }
 0xe89   :  { %v14788_v46 = vpop.f32.mrb[18].mxu0 }
 0xe8a   :  { %v1696_v47 = vsub.f32 %v16631_v16, %v14788_v46  ;;  %v1686_v48 = vpop.f32.mrb[19].mxu0 }
 0xe8b   :  { %v1695_v49 = vsub.f32 %v16634_v17, %v1686_v48 }
 0xe8c   :  { %v1698_v51 = vmul.f32 0.5, %v1696_v47 }
 0xe8d   :  { %v1697_v50 = vmul.f32 0.5, %v1695_v49 }
 0xe8f   :  { %14793 = vmatprep.mubr.msk.f32.mxu1 %vm257_vm5, %v1697_v50 }
 0xe90   :  { %14794 = vmatmul.mubr.msk.f32.vlgmr.msra.gmra.mrb[18].mxu1 %vm257_vm5, %v1698_v51 }
 0xf63   :  { %v14795_v53 = vpop.f32.mrb[18].mxu1 }
 0xf64   :  { %v1785_v54 = vmul.f32 %v14795_v53, %v1783_v52  ;;  %v1771_v55 = vpop.f32.mrb[19].mxu1 }
 0xf65   :  { %v1784_v56 = vmul.f32 %v1783_v52, %v1771_v55 }
 0xf67   :  { %v15838_v57 = vpack.c.bf16 %v1785_v54, %v1784_v56  ;;  %14800 = vmatprep.mubr.msk.f32.mxu0 %vm257_vm5, %v1784_v56 }
 0xf69   :  { %15839 = vmatprep.subr.bf16.mxu0 %v15838_v57 }
 0xf6a   :  { %15841 = vmatpush3.bf16.msra.mxu0 %v15838_v57 }
 0xf6d   :  { %14801 = vmatmul.mubr.msk.f32.vlgmr.msra.gmra.mrb[20].mxu0 %vm257_vm5, %v1785_v54 }
0x1040   :  { %v16688_v63 = vpop.f32.mrb[20].mxu0 }
0x1041   :  { %v1874_v0 = vadd.f32 %v16688_v63, %v16612_v59  ;;  %v16692_v1 = vpop.f32.mrb[21].mxu0 }
0x1042   :  { %v1873_v2 = vadd.f32 %v16692_v1, %v16610_v58 }
0x1043   :  { %v1876_v3 = vmul.f32 %v16597_v34, %v1874_v0 }
0x1044   :  { %v1875_v4 = vmul.f32 %v16599_v37, %v1873_v2 }
0x1045   :  { %v1878_v5 = vsel %vm257_vm5, %v1876_v3, 0.0 }
0x1046   :  { %v1877_v6 = vsel %vm257_vm5, %v1875_v4, 0.0 }
0x1047   :  { %v1879_v7 = vadd.f32 %v1878_v5, %v1877_v6 }
0x1049   :  { %1880 = vadd.xlane.f32.xlu1 %v1879_v7 }
0x107c   :  { %3468 = vxpose.xlu1.b32.start [1/2] (short) (narrow) %v16617_v61, 16 }
0x1080   :  { %3469 = vxpose.xlu1.b32.end [2/2] (short) (narrow) %v16620_v62, 16 }
0x10d6   :  { %v1881_v8 = vpop.xlane.xlu1 %1880 }
0x10d7   :  { %v1882_v9 = vrot.slane %v1881_v8, 4 }
0x10d9   :  { %v1883_v10 = vadd.f32 %v1882_v9, %v1881_v8 }
0x10db   :  { %v1884_v13 = vrot.slane %v1883_v10, 2 }
0x10dd   :  { %v1885_v14 = vadd.f32 %v1884_v13, %v1883_v10 }
0x10df   :  { %v1886_v15 = vrot.slane %v1885_v14, 1 }
0x10e1   :  { %v1887_v18 = vadd.f32 %v1886_v15, %v1885_v14 }
0x10e3   :  { %16394 = vpush %v1887_v18 }
0x1114   :  { %s16395_s13 = spop %16394 }
0x1115   :  { %v1889_v19 = vstv %s16395_s13 }
0x1116   :  { %16437 = vrcp.f32 %v1889_v19 }
0x1117   :  { %16439 = vrsqrt.f32 %v1889_v19 }
0x1120   :  { %v16438_v20 = vpop.eup %16437 }
0x1121   :  { %v16440_v21 = vpop.eup %16439  ;;  %v1891_v22 = vmul.f32 %v16438_v20, %v1873_v2  ;;  %v1892_v23 = vmul.f32 %v16438_v20, %v1874_v0 }
0x1122   :  { %16396 = vpush %v16440_v21 }
0x1123   :  { %14807 = vmatprep.mubr.msk.f32.mxu1 %vm257_vm5, %v1891_v22  ;;  %v1893_v24 = vsub.f32 %v16634_v17, %v1891_v22  ;;  %v1894_v25 = vsub.f32 %v16631_v16, %v1892_v23 }
0x1125   :  { %v1895_v26 = vmul.f32 0.5, %v1893_v24  ;;  %v1896_v28 = vmul.f32 0.5, %v1894_v25 }
0x1127   :  { %14814 = vmatprep.mubr.msk.f32.mxu0 %vm257_vm5, %v1895_v26  ;;  %v15842_v29 = vpack.c.bf16 %v1896_v28, %v1895_v26 }
0x1129   :  { %15843 = vmatprep.subr.bf16.mxu1 %v15842_v29 }
0x112a   :  { %15845 = vmatpush3.bf16.msra.mxu1 %v15842_v29 }
0x112d   :  { %14808 = vmatmul.mubr.msk.f32.vlgmr.msra.gmra.mrb[20].mxu1 %vm257_vm5, %v1892_v23 }
0x1153   :  { %s16397_s14 = spop %16396 }
0x1200   :  { %v14809_v30 = vpop.f32.mrb[20].mxu1 }
0x1201   :  { %v1969_v31 = vpop.f32.mrb[21].mxu1 }
0x1202   :  { %v15846_v32 = vpack.c.bf16 %v14809_v30, %v1969_v31  ;;  %14821 = vmatprep.mubr.msk.f32.mxu1 %vm257_vm5, %v1969_v31 }
0x1204   :  { %15847 = vmatprep.subr.bf16.mxu0 %v15846_v32 }
0x1205   :  { %15849 = vmatpush3.bf16.msra.mxu0 %v15846_v32 }
0x1206   :  { %15855 = vmatprep.subr.bf16.mxu0 %v15842_v29 }
0x1208   :  { %14815 = vmatmul.mubr.msk.f32.vlgmr.msra.gmra.mrb[22].mxu0 %vm257_vm5, %v1896_v28 }
0x1209   :  { %15857 = vmatpush3.bf16.msra.mxu0 %v15842_v29 }
0x12db   :  { %v14816_v33 = vpop.f32.mrb[22].mxu0 }
0x12dc   :  { %v2060_v35 = vsub.f32 %v16631_v16, %v14816_v33  ;;  %v2050_v36 = vpop.f32.mrb[23].mxu0 }
0x12dd   :  { %v2059_v38 = vsub.f32 %v16634_v17, %v2050_v36 }
0x12de   :  { %v2062_v39 = vmul.f32 0.5, %v2060_v35 }
0x12df   :  { %v2061_v40 = vmul.f32 0.5, %v2059_v38 }
0x12e1   :  { %v15850_v41 = vpack.c.bf16 %v2062_v39, %v2061_v40  ;;  %14828 = vmatprep.mubr.msk.f32.mxu0 %vm257_vm5, %v2061_v40 }
0x12e2   :  { %14829 = vmatmul.mubr.msk.f32.vlgmr.msra.gmra.mrb[24].mxu0 %vm257_vm5, %v2062_v39 }
0x12e3   :  { %15851 = vmatprep.subr.bf16.mxu1 %v15850_v41 }
0x12e4   :  { %15853 = vmatpush3.bf16.msra.mxu1 %v15850_v41 }
0x12e7   :  { %14822 = vmatmul.mubr.msk.f32.vlgmr.msra.gmra.mrb[22].mxu1 %vm257_vm5, %v14809_v30 }
0x13b5   :  { %v14830_v42 = vpop.f32.mrb[24].mxu0 }
0x13b6   :  { %v2216_v43 = vpop.f32.mrb[25].mxu0 }
0x13b7   :  { %v15866_v44 = vpack.c.bf16 %v14830_v42, %v2216_v43  ;;  %14835 = vmatprep.mubr.msk.f32.mxu1 %vm257_vm5, %v2216_v43 }
0x13ba   :  { %v14823_v45 = vpop.f32.mrb[22].mxu1 }
0x13bb   :  { %v2135_v46 = vpop.f32.mrb[23].mxu1 }
0x13bc   :  { %v15858_v47 = vpack.c.bf16 %v14823_v45, %v2135_v46  ;;  %14842 = vmatprep.mubr.msk.f32.mxu0 %vm257_vm5, %v2135_v46 }
0x13be   :  { %15859 = vmatprep.subr.bf16.mxu1 %v15858_v47 }
0x13bf   :  { %15861 = vmatpush3.bf16.msra.mxu1 %v15858_v47 }
0x13c0   :  { %15867 = vmatprep.subr.bf16.mxu1 %v15866_v44 }
0x13c2   :  { %14836 = vmatmul.mubr.msk.f32.vlgmr.msra.gmra.mrb[24].mxu1 %vm257_vm5, %v14830_v42 }
0x13c3   :  { %15869 = vmatpush3.bf16.msra.mxu1 %v15866_v44 }
0x1495   :  { %v14837_v48 = vpop.f32.mrb[24].mxu1 }
0x1496   :  { %v2307_v49 = vsub.f32 %v16631_v16, %v14837_v48  ;;  %v2297_v50 = vpop.f32.mrb[25].mxu1 }
0x1497   :  { %v2306_v51 = vsub.f32 %v16634_v17, %v2297_v50 }
0x1498   :  { %v2309_v52 = vmul.f32 0.5, %v2307_v49 }
0x1499   :  { %v2308_v53 = vmul.f32 0.5, %v2306_v51 }
0x149b   :  { %v15862_v54 = vpack.c.bf16 %v2309_v52, %v2308_v53  ;;  %14849 = vmatprep.mubr.msk.f32.mxu1 %vm257_vm5, %v2308_v53 }
0x149c   :  { %14850 = vmatmul.mubr.msk.f32.vlgmr.msra.gmra.mrb[26].mxu1 %vm257_vm5, %v2309_v52 }
0x149d   :  { %15863 = vmatprep.subr.bf16.mxu0 %v15862_v54 }
0x149e   :  { %15865 = vmatpush3.bf16.msra.mxu0 %v15862_v54 }
0x14a1   :  { %14843 = vmatmul.mubr.msk.f32.vlgmr.msra.gmra.mrb[26].mxu0 %vm257_vm5, %v14823_v45 }
0x156f   :  { %v14851_v55 = vpop.f32.mrb[26].mxu1 }
0x1570   :  { %v2463_v56 = vpop.f32.mrb[27].mxu1 }
0x1571   :  { %v15878_v57 = vpack.c.bf16 %v14851_v55, %v2463_v56  ;;  %14856 = vmatprep.mubr.msk.f32.mxu0 %vm257_vm5, %v2463_v56  ;;  %v3382_v56 = vstv %s16397_s14 }
0x1574   :  { %v14844_v0 = vpop.f32.mrb[26].mxu0 }
0x1575   :  { %v2382_v2 = vpop.f32.mrb[27].mxu0 }
0x1576   :  { %v15870_v3 = vpack.c.bf16 %v14844_v0, %v2382_v2  ;;  %14863 = vmatprep.mubr.msk.f32.mxu1 %vm257_vm5, %v2382_v2 }
0x1578   :  { %15871 = vmatprep.subr.bf16.mxu0 %v15870_v3 }
0x1579   :  { %15873 = vmatpush3.bf16.msra.mxu0 %v15870_v3 }
0x157a   :  { %15879 = vmatprep.subr.bf16.mxu0 %v15878_v57 }
0x157c   :  { %14857 = vmatmul.mubr.msk.f32.vlgmr.msra.gmra.mrb[28].mxu0 %vm257_vm5, %v14851_v55 }
0x157d   :  { %15881 = vmatpush3.bf16.msra.mxu0 %v15878_v57 }
0x164f   :  { %v14858_v4 = vpop.f32.mrb[28].mxu0 }
0x1650   :  { %v2554_v5 = vsub.f32 %v16631_v16, %v14858_v4  ;;  %v2544_v6 = vpop.f32.mrb[29].mxu0 }
0x1651   :  { %v2553_v7 = vsub.f32 %v16634_v17, %v2544_v6 }
0x1652   :  { %v2556_v8 = vmul.f32 0.5, %v2554_v5  ;;  %v3484_v5 = vpop.trf.xlu1 }
0x1653   :  { %v2555_v9 = vmul.f32 0.5, %v2553_v7 }
0x1655   :  { %v15874_v10 = vpack.c.bf16 %v2556_v8, %v2555_v9  ;;  %14870 = vmatprep.mubr.msk.f32.mxu0 %vm257_vm5, %v2555_v9 }
0x1656   :  { %14871 = vmatmul.mubr.msk.f32.vlgmr.msra.gmra.mrb[30].mxu0 %vm257_vm5, %v2556_v8  ;;  %v3485_v6 = vpop.trf.xlu1  ;;  %v3500_v8 = vadd.f32 %v3484_v5, %v16617_v61 }
0x1657   :  { %15875 = vmatprep.subr.bf16.mxu1 %v15874_v10  ;;  %v3501_v7 = vadd.f32 %v3485_v6, %v16620_v62  ;;  %v1869_v62 = vsub.f32 0.0, %v16692_v1 }
0x1658   :  { %15877 = vmatpush3.bf16.msra.mxu1 %v15874_v10 }
0x1659   :  { %v16756_v10 = vmul.f32 0.5, %v3501_v7 }
0x165b   :  { %14864 = vmatmul.mubr.msk.f32.vlgmr.msra.gmra.mrb[28].mxu1 %vm257_vm5, %v14844_v0 }
0x1729   :  { %v14872_v13 = vpop.f32.mrb[30].mxu0 }
0x172a   :  { %v2710_v14 = vpop.f32.mrb[31].mxu0 }
0x172b   :  { %v15890_v15 = vpack.c.bf16 %v14872_v13, %v2710_v14  ;;  %14877 = vmatprep.mubr.msk.f32.mxu1 %vm257_vm5, %v2710_v14 }
0x172e   :  { %v14865_v18 = vpop.f32.mrb[28].mxu1 }
0x172f   :  { %v2629_v19 = vpop.f32.mrb[29].mxu1 }
0x1730   :  { %v15882_v20 = vpack.c.bf16 %v14865_v18, %v2629_v19  ;;  %14884 = vmatprep.mubr.msk.f32.mxu0 %vm257_vm5, %v2629_v19 }
0x1732   :  { %15883 = vmatprep.subr.bf16.mxu1 %v15882_v20 }
0x1733   :  { %15885 = vmatpush3.bf16.msra.mxu1 %v15882_v20 }
0x1734   :  { %15891 = vmatprep.subr.bf16.mxu1 %v15890_v15 }
0x1736   :  { %14878 = vmatmul.mubr.msk.f32.vlgmr.msra.gmra.mrb[30].mxu1 %vm257_vm5, %v14872_v13 }
0x1737   :  { %15893 = vmatpush3.bf16.msra.mxu1 %v15890_v15  ;;  %v16758_v15 = vmul.f32 0.5, %v3500_v8 }
0x1809   :  { %v14879_v21 = vpop.f32.mrb[30].mxu1 }
0x180a   :  { %v2801_v22 = vsub.f32 %v16631_v16, %v14879_v21  ;;  %v2791_v23 = vpop.f32.mrb[31].mxu1  ;;  %v1870_v21 = vsub.f32 0.0, %v16688_v63 }
0x180b   :  { %v2800_v24 = vsub.f32 %v16634_v17, %v2791_v23 }
0x180c   :  { %v2803_v25 = vmul.f32 0.5, %v2801_v22 }
0x180d   :  { %v2802_v26 = vmul.f32 0.5, %v2800_v24 }
0x180f   :  { %v15886_v28 = vpack.c.bf16 %v2803_v25, %v2802_v26  ;;  %14891 = vmatprep.mubr.msk.f32.mxu1 %vm257_vm5, %v2802_v26 }
0x1810   :  { %14892 = vmatmul.mubr.msk.f32.vlgmr.msra.gmra.mrb[32].mxu1 %vm257_vm5, %v2803_v25  ;;  %v1868_v25 = vmax.f32 %v16688_v63, 0.0 }
0x1811   :  { %15887 = vmatprep.subr.bf16.mxu0 %v15886_v28 }
0x1812   :  { %15889 = vmatpush3.bf16.msra.mxu0 %v15886_v28 }
0x1815   :  { %14885 = vmatmul.mubr.msk.f32.vlgmr.msra.gmra.mrb[32].mxu0 %vm257_vm5, %v14865_v18 }
0x18e3   :  { %v14893_v29 = vpop.f32.mrb[32].mxu1 }
0x18e4   :  { %v2957_v30 = vpop.f32.mrb[33].mxu1 }
0x18e5   :  { %v15902_v31 = vpack.c.bf16 %v14893_v29, %v2957_v30  ;;  %14898 = vmatprep.mubr.msk.f32.mxu0 %vm257_vm5, %v2957_v30 }
0x18e8   :  { %v14886_v32 = vpop.f32.mrb[32].mxu0 }
0x18e9   :  { %v2876_v33 = vpop.f32.mrb[33].mxu0 }
0x18ea   :  { %v15894_v35 = vpack.c.bf16 %v14886_v32, %v2876_v33  ;;  %14905 = vmatprep.mubr.msk.f32.mxu1 %vm257_vm5, %v2876_v33 }
0x18ec   :  { %15895 = vmatprep.subr.bf16.mxu0 %v15894_v35 }
0x18ed   :  { %15897 = vmatpush3.bf16.msra.mxu0 %v15894_v35 }
0x18ee   :  { %15903 = vmatprep.subr.bf16.mxu0 %v15902_v31 }
0x18f0   :  { %14899 = vmatmul.mubr.msk.f32.vlgmr.msra.gmra.mrb[34].mxu0 %vm257_vm5, %v14893_v29  ;;  %v1867_v29 = vmax.f32 %v16692_v1, 0.0 }
0x18f1   :  { %15905 = vmatpush3.bf16.msra.mxu0 %v15902_v31 }
0x19c3   :  { %v14900_v36 = vpop.f32.mrb[34].mxu0 }
0x19c4   :  { %v3048_v38 = vsub.f32 %v16631_v16, %v14900_v36  ;;  %v3038_v39 = vpop.f32.mrb[35].mxu0  ;;  %v1871_v36 = vmax.f32 %v1869_v62, 0.0 }
0x19c5   :  { %v3047_v40 = vsub.f32 %v16634_v17, %v3038_v39 }
0x19c6   :  { %v3050_v41 = vmul.f32 0.5, %v3048_v38 }
0x19c7   :  { %v3049_v42 = vmul.f32 0.5, %v3047_v40 }
0x19c9   :  { %v15898_v43 = vpack.c.bf16 %v3050_v41, %v3049_v42  ;;  %14912 = vmatprep.mubr.msk.f32.mxu0 %vm257_vm5, %v3049_v42 }
0x19ca   :  { %14913 = vmatmul.mubr.msk.f32.vlgmr.msra.gmra.mrb[36].mxu0 %vm257_vm5, %v3050_v41 }
0x19cb   :  { %15899 = vmatprep.subr.bf16.mxu1 %v15898_v43 }
0x19cc   :  { %15901 = vmatpush3.bf16.msra.mxu1 %v15898_v43 }
0x19cf   :  { %14906 = vmatmul.mubr.msk.f32.vlgmr.msra.gmra.mrb[34].mxu1 %vm257_vm5, %v14886_v32  ;;  %v1872_v32 = vmax.f32 %v1870_v21, 0.0 }
0x1a9d   :  { %v14914_v44 = vpop.f32.mrb[36].mxu0 }
0x1a9e   :  { %v3204_v45 = vpop.f32.mrb[37].mxu0 }
0x1a9f   :  { %v15910_v46 = vpack.c.bf16 %v14914_v44, %v3204_v45  ;;  %14919 = vmatprep.mubr.msk.f32.mxu1 %vm257_vm5, %v3204_v45 }
0x1aa1   :  { %15911 = vmatprep.subr.bf16.mxu0 %v15910_v46 }
0x1aa2   :  { %v14907_v47 = vpop.f32.mrb[34].mxu1  ;;  %15913 = vmatpush3.bf16.msra.mxu0 %v15910_v46 }
0x1aa3   :  { %v3123_v48 = vpop.f32.mrb[35].mxu1 }
0x1aa4   :  { %v15906_v49 = vpack.c.bf16 %v14907_v47, %v3123_v48 }
0x1aa6   :  { %15907 = vmatprep.subr.bf16.mxu1 %v15906_v49 }
0x1aa7   :  { %15909 = vmatpush3.bf16.msra.mxu1 %v15906_v49 }
0x1aaa   :  { %14920 = vmatmul.mubr.msk.f32.vlgmr.msra.gmra.mrb[36].mxu1 %vm257_vm5, %v14914_v44 }
0x1b7d   :  { %v14921_v50 = vpop.f32.mrb[36].mxu1 }
0x1b7e   :  { %v3295_v51 = vsub.f32 %v16631_v16, %v14921_v50  ;;  %v3285_v52 = vpop.f32.mrb[37].mxu1 }
0x1b7f   :  { %v3294_v53 = vsub.f32 %v16634_v17, %v3285_v52 }
0x1b80   :  { %v3297_v55 = vmul.f32 0.5, %v3295_v51 }
0x1b81   :  { %v3296_v54 = vmul.f32 0.5, %v3294_v53 }
0x1b83   :  { %14926 = vmatprep.mubr.msk.f32.mxu0 %vm257_vm5, %v3296_v54 }
0x1b84   :  { %14927 = vmatmul.mubr.msk.f32.vlgmr.msra.gmra.mrb[38].mxu0 %vm257_vm5, %v3297_v55 }
0x1c57   :  { %v14928_v57 = vpop.f32.mrb[38].mxu0 }
0x1c58   :  { %v3384_v0 = vmul.f32 %v14928_v57, %v3382_v56  ;;  %v3370_v2 = vpop.f32.mrb[39].mxu0 }
0x1c59   :  { %v3383_v3 = vmul.f32 %v3382_v56, %v3370_v2 }
0x1c5b   :  { %v15914_v4 = vpack.c.bf16 %v3384_v0, %v3383_v3  ;;  %14933 = vmatprep.mubr.msk.f32.mxu1 %vm257_vm5, %v3383_v3 }
0x1c5d   :  { %15915 = vmatprep.subr.bf16.mxu1 %v15914_v4 }
0x1c5e   :  { %15917 = vmatpush3.bf16.msra.mxu1 %v15914_v4 }
0x1c61   :  { %14934 = vmatmul.mubr.msk.f32.vlgmr.msra.gmra.mrb[38].mxu1 %vm257_vm5, %v3384_v0 }
0x1d34   :  { %v14935_v9 = vpop.f32.mrb[38].mxu1 }
0x1d35   :  { %v3467_v13 = vsub.f32 0.0, %v14935_v9  ;;  %v3457_v14 = vpop.f32.mrb[39].mxu1 }
0x1d36   :  { %v3466_v18 = vsub.f32 0.0, %v3457_v14 }
0x1d37   :  { %v3505_v19 = vadd.f32 %v16756_v10, %v3467_v13 }
0x1d38   :  { %v3504_v20 = vadd.f32 %v16758_v15, %v3466_v18 }
0x1d39   :  { %v3507_v22 = vadd.f32 0.07, %v3505_v19  ;;  %v3515_v23 = vsub.f32 0.0, %v3505_v19 }
0x1d3a   :  { %v3506_v24 = vadd.f32 0.07, %v3504_v20  ;;  %v3514_v61 = vsub.f32 0.0, %v3504_v20 }
0x1d3b   :  { %v3509_v26 = vmul.f32 5.0, %v3507_v22  ;;  %v3517_v28 = vadd.f32 0.07, %v3515_v23 }
0x1d3c   :  { %v3508_v30 = vmul.f32 5.0, %v3506_v24  ;;  %v3516_v31 = vadd.f32 0.07, %v3514_v61 }
0x1d3d   :  { %v3511_v33 = vsub.f32 %v1868_v25, %v3509_v26  ;;  %v3519_v35 = vmul.f32 5.0, %v3517_v28 }
0x1d3e   :  { %v3518_v38 = vmul.f32 5.0, %v3516_v31  ;;  %v3510_v39 = vsub.f32 %v1867_v29, %v3508_v30 }
0x1d3f   :  { %v3521_v40 = vsub.f32 %v1872_v32, %v3519_v35  ;;  %v3513_v42 = vmax.f32 %v3511_v33, 0.0 }
0x1d40   :  { %v3520_v41 = vsub.f32 %v1871_v36, %v3518_v38  ;;  %v3512_v44 = vmax.f32 %v3510_v39, 0.0 }
0x1d41   :  { %v3523_v43 = vmax.f32 %v3521_v40, 0.0 }
0x1d42   :  { %v3522_v45 = vmax.f32 %v3520_v41, 0.0 }
0x1d43   :  { %v3525_v46 = vsub.f32 %v3513_v42, %v3523_v43 }
0x1d44   :  { %v3524_v63 = vsub.f32 %v3512_v44, %v3522_v45 }
0x1d46   :  { %3526 = vxpose.xlu0.b32.start [1/2] (short) (narrow) %v3524_v63, 16 }
0x1d4a   :  { %3527 = vxpose.xlu0.b32.end [2/2] (short) (narrow) %v3525_v46, 16 }
0x1dc6   :  { %v3542_v47 = vpop.trf.xlu0 }
0x1dc7   :  { %v3558_v1 = vadd.f32 %v3542_v47, %v3524_v63 }
0x1dc9   :  { %v16766_v48 = vmul.f32 0.5, %v3558_v1 }
0x1dca   :  { %v3543_v49 = vpop.trf.xlu0 }
0x1dcb   :  { %v3568_v50 = vadd.f32 %v16766_v48, %v16610_v58  ;;  %v3559_v51 = vadd.f32 %v3543_v49, %v3525_v46 }
0x1dcd   :  { %v16770_v52 = vmul.f32 0.5, %v3559_v51  ;;  %v3570_v54 = vmul.f32 %v16599_v37, %v3568_v50 }
0x1dcf   :  { %v3569_v53 = vadd.f32 %v16770_v52, %v16612_v59  ;;  %v3572_v56 = vsel %vm257_vm5, %v3570_v54, 0.0 }
0x1dd1   :  { %v3571_v55 = vmul.f32 %v16597_v34, %v3569_v53 }
0x1dd3   :  { %v3573_v57 = vsel %vm257_vm5, %v3571_v55, 0.0 }
0x1dd4   :  { %v3574_v0 = vadd.f32 %v3573_v57, %v3572_v56 }
0x1dd6   :  { %3575 = vadd.xlane.f32.xlu1 %v3574_v0 }
0x1e63   :  { %v3576_v2 = vpop.xlane.xlu1 %3575 }
0x1e64   :  { %v3577_v3 = vrot.slane %v3576_v2, 4 }
0x1e66   :  { %v3578_v4 = vadd.f32 %v3577_v3, %v3576_v2 }
0x1e68   :  { %v3579_v5 = vrot.slane %v3578_v4, 2 }
0x1e6a   :  { %v3580_v6 = vadd.f32 %v3579_v5, %v3578_v4 }
0x1e6c   :  { %v3581_v7 = vrot.slane %v3580_v6, 1 }
0x1e6e   :  { %v3582_v8 = vadd.f32 %v3581_v7, %v3580_v6 }
0x1e70   :  { %16398 = vpush %v3582_v8 }
0x1ea1   :  { %s16399_s15 = spop %16398 }
0x1ea2   :  { %v3584_v9 = vstv %s16399_s15 }
0x1ea3   :  { %16441 = vrcp.f32 %v3584_v9 }
0x1ea4   :  { %16443 = vrsqrt.f32 %v3584_v9 }
0x1ead   :  { %v16442_v13 = vpop.eup %16441 }
0x1eae   :  { %v16444_v14 = vpop.eup %16443  ;;  %v3586_v18 = vmul.f32 %v16442_v13, %v3568_v50  ;;  %v3587_v19 = vmul.f32 %v16442_v13, %v3569_v53 }
0x1eaf   :  { %16400 = vpush %v16444_v14 }
0x1eb0   :  { %14940 = vmatprep.mubr.msk.f32.mxu0 %vm257_vm5, %v3586_v18  ;;  %v3588_v20 = vsub.f32 %v16634_v17, %v3586_v18  ;;  %v3589_v21 = vsub.f32 %v16631_v16, %v3587_v19 }
0x1eb2   :  { %v3590_v22 = vmul.f32 0.5, %v3588_v20  ;;  %v3591_v23 = vmul.f32 0.5, %v3589_v21 }
0x1eb4   :  { %14947 = vmatprep.mubr.msk.f32.mxu1 %vm257_vm5, %v3590_v22  ;;  %v15918_v62 = vpack.c.bf16 %v3591_v23, %v3590_v22 }
0x1eb6   :  { %15919 = vmatprep.subr.bf16.mxu0 %v15918_v62 }
0x1eb7   :  { %15921 = vmatpush3.bf16.msra.mxu0 %v15918_v62 }
0x1eba   :  { %14941 = vmatmul.mubr.msk.f32.vlgmr.msra.gmra.mrb[40].mxu0 %vm257_vm5, %v3587_v19 }
0x1ee0   :  { %s16401_s16 = spop %16400 }
0x1f8d   :  { %v14942_v24 = vpop.f32.mrb[40].mxu0 }
0x1f8e   :  { %v3664_v61 = vpop.f32.mrb[41].mxu0 }
0x1f8f   :  { %v15922_v25 = vpack.c.bf16 %v14942_v24, %v3664_v61  ;;  %14954 = vmatprep.mubr.msk.f32.mxu0 %vm257_vm5, %v3664_v61 }
0x1f91   :  { %15923 = vmatprep.subr.bf16.mxu1 %v15922_v25 }
0x1f92   :  { %15925 = vmatpush3.bf16.msra.mxu1 %v15922_v25 }
0x1f93   :  { %15931 = vmatprep.subr.bf16.mxu1 %v15918_v62 }
0x1f95   :  { %14948 = vmatmul.mubr.msk.f32.vlgmr.msra.gmra.mrb[40].mxu1 %vm257_vm5, %v3591_v23 }
0x1f96   :  { %15933 = vmatpush3.bf16.msra.mxu1 %v15918_v62 }
0x2068   :  { %v14949_v26 = vpop.f32.mrb[40].mxu1 }
0x2069   :  { %v3755_v28 = vsub.f32 %v16631_v16, %v14949_v26  ;;  %v3745_v29 = vpop.f32.mrb[41].mxu1 }
0x206a   :  { %v3754_v30 = vsub.f32 %v16634_v17, %v3745_v29 }
0x206b   :  { %v3757_v31 = vmul.f32 0.5, %v3755_v28 }
0x206c   :  { %v3756_v32 = vmul.f32 0.5, %v3754_v30 }
0x206e   :  { %v15926_v33 = vpack.c.bf16 %v3757_v31, %v3756_v32  ;;  %14961 = vmatprep.mubr.msk.f32.mxu1 %vm257_vm5, %v3756_v32 }
0x206f   :  { %14962 = vmatmul.mubr.msk.f32.vlgmr.msra.gmra.mrb[42].mxu1 %vm257_vm5, %v3757_v31 }
0x2070   :  { %15927 = vmatprep.subr.bf16.mxu0 %v15926_v33 }
0x2071   :  { %15929 = vmatpush3.bf16.msra.mxu0 %v15926_v33 }
0x2074   :  { %14955 = vmatmul.mubr.msk.f32.vlgmr.msra.gmra.mrb[42].mxu0 %vm257_vm5, %v14942_v24 }
0x2142   :  { %v14963_v35 = vpop.f32.mrb[42].mxu1 }
0x2143   :  { %v3911_v36 = vpop.f32.mrb[43].mxu1 }
0x2144   :  { %v15942_v38 = vpack.c.bf16 %v14963_v35, %v3911_v36  ;;  %14968 = vmatprep.mubr.msk.f32.mxu0 %vm257_vm5, %v3911_v36 }
0x2147   :  { %v14956_v39 = vpop.f32.mrb[42].mxu0 }
0x2148   :  { %v3830_v40 = vpop.f32.mrb[43].mxu0 }
0x2149   :  { %v15934_v41 = vpack.c.bf16 %v14956_v39, %v3830_v40  ;;  %14975 = vmatprep.mubr.msk.f32.mxu1 %vm257_vm5, %v3830_v40 }
0x214b   :  { %15935 = vmatprep.subr.bf16.mxu0 %v15934_v41 }
0x214c   :  { %15937 = vmatpush3.bf16.msra.mxu0 %v15934_v41 }
0x214d   :  { %15943 = vmatprep.subr.bf16.mxu0 %v15942_v38 }
0x214f   :  { %14969 = vmatmul.mubr.msk.f32.vlgmr.msra.gmra.mrb[44].mxu0 %vm257_vm5, %v14963_v35 }
0x2150   :  { %15945 = vmatpush3.bf16.msra.mxu0 %v15942_v38 }
0x2222   :  { %v14970_v42 = vpop.f32.mrb[44].mxu0 }
0x2223   :  { %v4002_v43 = vsub.f32 %v16631_v16, %v14970_v42  ;;  %v3992_v44 = vpop.f32.mrb[45].mxu0 }
0x2224   :  { %v4001_v45 = vsub.f32 %v16634_v17, %v3992_v44 }
0x2225   :  { %v4004_v46 = vmul.f32 0.5, %v4002_v43 }
0x2226   :  { %v4003_v63 = vmul.f32 0.5, %v4001_v45 }
0x2228   :  { %v15938_v47 = vpack.c.bf16 %v4004_v46, %v4003_v63  ;;  %14982 = vmatprep.mubr.msk.f32.mxu0 %vm257_vm5, %v4003_v63 }
0x2229   :  { %14983 = vmatmul.mubr.msk.f32.vlgmr.msra.gmra.mrb[46].mxu0 %vm257_vm5, %v4004_v46 }
0x222a   :  { %15939 = vmatprep.subr.bf16.mxu1 %v15938_v47 }
0x222b   :  { %15941 = vmatpush3.bf16.msra.mxu1 %v15938_v47 }
0x222e   :  { %14976 = vmatmul.mubr.msk.f32.vlgmr.msra.gmra.mrb[44].mxu1 %vm257_vm5, %v14956_v39 }
0x22fc   :  { %v14984_v1 = vpop.f32.mrb[46].mxu0 }
0x22fd   :  { %v4158_v49 = vpop.f32.mrb[47].mxu0 }
0x22fe   :  { %v15954_v50 = vpack.c.bf16 %v14984_v1, %v4158_v49  ;;  %14989 = vmatprep.mubr.msk.f32.mxu1 %vm257_vm5, %v4158_v49  ;;  %v5077_v49 = vstv %s16401_s16 }
0x2301   :  { %v14977_v51 = vpop.f32.mrb[44].mxu1 }
0x2302   :  { %v4077_v53 = vpop.f32.mrb[45].mxu1 }
0x2303   :  { %v15946_v54 = vpack.c.bf16 %v14977_v51, %v4077_v53  ;;  %14996 = vmatprep.mubr.msk.f32.mxu0 %vm257_vm5, %v4077_v53 }
0x2305   :  { %15947 = vmatprep.subr.bf16.mxu1 %v15946_v54 }
0x2306   :  { %15949 = vmatpush3.bf16.msra.mxu1 %v15946_v54 }
0x2307   :  { %15955 = vmatprep.subr.bf16.mxu1 %v15954_v50 }
0x2309   :  { %14990 = vmatmul.mubr.msk.f32.vlgmr.msra.gmra.mrb[46].mxu1 %vm257_vm5, %v14984_v1 }
0x230a   :  { %15957 = vmatpush3.bf16.msra.mxu1 %v15954_v50 }
0x23dc   :  { %v14991_v55 = vpop.f32.mrb[46].mxu1 }
0x23dd   :  { %v4249_v56 = vsub.f32 %v16631_v16, %v14991_v55  ;;  %v4239_v57 = vpop.f32.mrb[47].mxu1 }
0x23de   :  { %v4248_v0 = vsub.f32 %v16634_v17, %v4239_v57 }
0x23df   :  { %v4251_v2 = vmul.f32 0.5, %v4249_v56 }
0x23e0   :  { %v4250_v3 = vmul.f32 0.5, %v4248_v0 }
0x23e2   :  { %v15950_v4 = vpack.c.bf16 %v4251_v2, %v4250_v3  ;;  %15003 = vmatprep.mubr.msk.f32.mxu1 %vm257_vm5, %v4250_v3 }
0x23e3   :  { %15004 = vmatmul.mubr.msk.f32.vlgmr.msra.gmra.mrb[48].mxu1 %vm257_vm5, %v4251_v2 }
0x23e4   :  { %15951 = vmatprep.subr.bf16.mxu0 %v15950_v4 }
0x23e5   :  { %15953 = vmatpush3.bf16.msra.mxu0 %v15950_v4 }
0x23e8   :  { %14997 = vmatmul.mubr.msk.f32.vlgmr.msra.gmra.mrb[48].mxu0 %vm257_vm5, %v14977_v51 }
0x24b6   :  { %v15005_v5 = vpop.f32.mrb[48].mxu1 }
0x24b7   :  { %v4405_v6 = vpop.f32.mrb[49].mxu1 }
0x24b8   :  { %v15966_v7 = vpack.c.bf16 %v15005_v5, %v4405_v6  ;;  %15010 = vmatprep.mubr.msk.f32.mxu0 %vm257_vm5, %v4405_v6 }
0x24bb   :  { %v14998_v8 = vpop.f32.mrb[48].mxu0 }
0x24bc   :  { %v4324_v9 = vpop.f32.mrb[49].mxu0 }
0x24bd   :  { %v15958_v13 = vpack.c.bf16 %v14998_v8, %v4324_v9  ;;  %15017 = vmatprep.mubr.msk.f32.mxu1 %vm257_vm5, %v4324_v9 }
0x24bf   :  { %15959 = vmatprep.subr.bf16.mxu0 %v15958_v13 }
0x24c0   :  { %15961 = vmatpush3.bf16.msra.mxu0 %v15958_v13 }
0x24c1   :  { %15967 = vmatprep.subr.bf16.mxu0 %v15966_v7 }
0x24c3   :  { %15011 = vmatmul.mubr.msk.f32.vlgmr.msra.gmra.mrb[50].mxu0 %vm257_vm5, %v15005_v5  ;;  %v3565_v5 = vsub.f32 0.0, %v16770_v52 }
0x24c4   :  { %15969 = vmatpush3.bf16.msra.mxu0 %v15966_v7 }
0x2596   :  { %v15012_v14 = vpop.f32.mrb[50].mxu0 }
0x2597   :  { %v4496_v18 = vsub.f32 %v16631_v16, %v15012_v14  ;;  %v4486_v19 = vpop.f32.mrb[51].mxu0  ;;  %v3563_v14 = vmax.f32 %v16770_v52, 0.0 }
0x2598   :  { %v4495_v20 = vsub.f32 %v16634_v17, %v4486_v19 }
0x2599   :  { %v4498_v21 = vmul.f32 0.5, %v4496_v18 }
0x259a   :  { %v4497_v22 = vmul.f32 0.5, %v4495_v20  ;;  %v3562_v20 = vmax.f32 %v16766_v48, 0.0 }
0x259c   :  { %v15962_v23 = vpack.c.bf16 %v4498_v21, %v4497_v22  ;;  %15024 = vmatprep.mubr.msk.f32.mxu0 %vm257_vm5, %v4497_v22 }
0x259d   :  { %15025 = vmatmul.mubr.msk.f32.vlgmr.msra.gmra.mrb[52].mxu0 %vm257_vm5, %v4498_v21 }
0x259e   :  { %15963 = vmatprep.subr.bf16.mxu1 %v15962_v23 }
0x259f   :  { %15965 = vmatpush3.bf16.msra.mxu1 %v15962_v23  ;;  %v3567_v23 = vmax.f32 %v3565_v5, 0.0 }
0x25a2   :  { %15018 = vmatmul.mubr.msk.f32.vlgmr.msra.gmra.mrb[50].mxu1 %vm257_vm5, %v14998_v8  ;;  %v3564_v8 = vsub.f32 0.0, %v16766_v48 }
0x2670   :  { %v15026_v62 = vpop.f32.mrb[52].mxu0 }
0x2671   :  { %v4652_v24 = vpop.f32.mrb[53].mxu0 }
0x2672   :  { %v15978_v61 = vpack.c.bf16 %v15026_v62, %v4652_v24  ;;  %15031 = vmatprep.mubr.msk.f32.mxu1 %vm257_vm5, %v4652_v24 }
0x2675   :  { %v15019_v25 = vpop.f32.mrb[50].mxu1 }
0x2676   :  { %v4571_v26 = vpop.f32.mrb[51].mxu1 }
0x2677   :  { %v15970_v28 = vpack.c.bf16 %v15019_v25, %v4571_v26  ;;  %15038 = vmatprep.mubr.msk.f32.mxu0 %vm257_vm5, %v4571_v26 }
0x2679   :  { %15971 = vmatprep.subr.bf16.mxu1 %v15970_v28 }
0x267a   :  { %15973 = vmatpush3.bf16.msra.mxu1 %v15970_v28 }
0x267b   :  { %15979 = vmatprep.subr.bf16.mxu1 %v15978_v61 }
0x267d   :  { %15032 = vmatmul.mubr.msk.f32.vlgmr.msra.gmra.mrb[52].mxu1 %vm257_vm5, %v15026_v62 }
0x267e   :  { %15981 = vmatpush3.bf16.msra.mxu1 %v15978_v61  ;;  %v3566_v61 = vmax.f32 %v3564_v8, 0.0 }
0x2750   :  { %v15033_v29 = vpop.f32.mrb[52].mxu1 }
0x2751   :  { %v4743_v30 = vsub.f32 %v16631_v16, %v15033_v29  ;;  %v4733_v31 = vpop.f32.mrb[53].mxu1 }
0x2752   :  { %v4742_v32 = vsub.f32 %v16634_v17, %v4733_v31 }
0x2753   :  { %v4745_v33 = vmul.f32 0.5, %v4743_v30 }
0x2754   :  { %v4744_v35 = vmul.f32 0.5, %v4742_v32 }
0x2756   :  { %v15974_v36 = vpack.c.bf16 %v4745_v33, %v4744_v35  ;;  %15045 = vmatprep.mubr.msk.f32.mxu1 %vm257_vm5, %v4744_v35 }
0x2757   :  { %15046 = vmatmul.mubr.msk.f32.vlgmr.msra.gmra.mrb[54].mxu1 %vm257_vm5, %v4745_v33 }
0x2758   :  { %15975 = vmatprep.subr.bf16.mxu0 %v15974_v36 }
0x2759   :  { %15977 = vmatpush3.bf16.msra.mxu0 %v15974_v36 }
0x275c   :  { %15039 = vmatmul.mubr.msk.f32.vlgmr.msra.gmra.mrb[54].mxu0 %vm257_vm5, %v15019_v25 }
0x282a   :  { %v15047_v38 = vpop.f32.mrb[54].mxu1 }
0x282b   :  { %v4899_v39 = vpop.f32.mrb[55].mxu1 }
0x282c   :  { %v15986_v40 = vpack.c.bf16 %v15047_v38, %v4899_v39  ;;  %15052 = vmatprep.mubr.msk.f32.mxu0 %vm257_vm5, %v4899_v39 }
0x282e   :  { %15987 = vmatprep.subr.bf16.mxu1 %v15986_v40 }
0x282f   :  { %v15040_v41 = vpop.f32.mrb[54].mxu0  ;;  %15989 = vmatpush3.bf16.msra.mxu1 %v15986_v40 }
0x2830   :  { %v4818_v42 = vpop.f32.mrb[55].mxu0 }
0x2831   :  { %v15982_v43 = vpack.c.bf16 %v15040_v41, %v4818_v42 }
0x2833   :  { %15983 = vmatprep.subr.bf16.mxu0 %v15982_v43 }
0x2834   :  { %15985 = vmatpush3.bf16.msra.mxu0 %v15982_v43 }
0x2837   :  { %15053 = vmatmul.mubr.msk.f32.vlgmr.msra.gmra.mrb[56].mxu0 %vm257_vm5, %v15047_v38 }
0x290a   :  { %v15054_v44 = vpop.f32.mrb[56].mxu0 }
0x290b   :  { %v4990_v45 = vsub.f32 %v16631_v16, %v15054_v44  ;;  %v4980_v46 = vpop.f32.mrb[57].mxu0 }
0x290c   :  { %v4989_v63 = vsub.f32 %v16634_v17, %v4980_v46 }
0x290d   :  { %v4992_v1 = vmul.f32 0.5, %v4990_v45 }
0x290e   :  { %v4991_v47 = vmul.f32 0.5, %v4989_v63 }
0x2910   :  { %15059 = vmatprep.mubr.msk.f32.mxu1 %vm257_vm5, %v4991_v47 }
0x2911   :  { %15060 = vmatmul.mubr.msk.f32.vlgmr.msra.gmra.mrb[56].mxu1 %vm257_vm5, %v4992_v1 }
0x29e4   :  { %v15061_v50 = vpop.f32.mrb[56].mxu1 }
0x29e5   :  { %v5079_v51 = vmul.f32 %v15061_v50, %v5077_v49  ;;  %v5065_v53 = vpop.f32.mrb[57].mxu1 }
0x29e6   :  { %v5078_v54 = vmul.f32 %v5077_v49, %v5065_v53 }
0x29e8   :  { %v15990_v55 = vpack.c.bf16 %v5079_v51, %v5078_v54  ;;  %15066 = vmatprep.mubr.msk.f32.mxu0 %vm257_vm5, %v5078_v54 }
0x29ea   :  { %15991 = vmatprep.subr.bf16.mxu0 %v15990_v55 }
0x29eb   :  { %15993 = vmatpush3.bf16.msra.mxu0 %v15990_v55 }
0x29ee   :  { %15067 = vmatmul.mubr.msk.f32.vlgmr.msra.gmra.mrb[58].mxu0 %vm257_vm5, %v5079_v51 }
0x2ac1   :  { %v15068_v56 = vpop.f32.mrb[58].mxu0 }
0x2ac2   :  { %v5162_v57 = vsub.f32 0.0, %v15068_v56  ;;  %v5152_v0 = vpop.f32.mrb[59].mxu0 }
0x2ac3   :  { %v5161_v2 = vsub.f32 0.0, %v5152_v0 }
0x2ac4   :  { %v5164_v3 = vadd.f32 %v5162_v57, %v16756_v10 }
0x2ac5   :  { %v5163_v4 = vadd.f32 %v5161_v2, %v16758_v15 }
0x2ac6   :  { %v5166_v6 = vadd.f32 0.07, %v5164_v3  ;;  %v5174_v7 = vsub.f32 0.0, %v5164_v3 }
0x2ac7   :  { %v5165_v9 = vadd.f32 0.07, %v5163_v4  ;;  %v5173_v13 = vsub.f32 0.0, %v5163_v4 }
0x2ac8   :  { %v5168_v18 = vmul.f32 2.5, %v5166_v6  ;;  %v5176_v19 = vadd.f32 0.07, %v5174_v7 }
0x2ac9   :  { %v5167_v21 = vmul.f32 2.5, %v5165_v9  ;;  %v5175_v22 = vadd.f32 0.07, %v5173_v13 }
0x2aca   :  { %v5170_v62 = vsub.f32 %v3563_v14, %v5168_v18  ;;  %v5178_v24 = vmul.f32 2.5, %v5176_v19 }
0x2acb   :  { %v5177_v25 = vmul.f32 2.5, %v5175_v22  ;;  %v5169_v26 = vsub.f32 %v3562_v20, %v5167_v21 }
0x2acc   :  { %v5180_v28 = vsub.f32 %v3567_v23, %v5178_v24  ;;  %v5172_v30 = vmax.f32 %v5170_v62, 0.0 }
0x2acd   :  { %v5179_v29 = vsub.f32 %v3566_v61, %v5177_v25  ;;  %v5171_v32 = vmax.f32 %v5169_v26, 0.0 }
0x2ace   :  { %v5182_v31 = vmax.f32 %v5180_v28, 0.0 }
0x2acf   :  { %v5181_v33 = vmax.f32 %v5179_v29, 0.0 }
0x2ad0   :  { %v5184_v35 = vsub.f32 %v5172_v30, %v5182_v31 }
0x2ad1   :  { %v5183_v52 = vsub.f32 %v5171_v32, %v5181_v33 }
0x2ad3   :  { %5185 = vxpose.xlu0.b32.start [1/2] (short) (narrow) %v5183_v52, 16 }
0x2ad7   :  { %5186 = vxpose.xlu0.b32.end [2/2] (short) (narrow) %v5184_v35, 16 }
0x2b53   :  { %v5201_v36 = vpop.trf.xlu0 }
0x2b54   :  { %v5217_v48 = vadd.f32 %v5201_v36, %v5183_v52 }
0x2b56   :  { %v16836_v38 = vmul.f32 0.5, %v5217_v48 }
0x2b57   :  { %v5202_v39 = vpop.trf.xlu0 }
0x2b58   :  { %v5227_v40 = vadd.f32 %v16836_v38, %v16610_v58  ;;  %v5218_v41 = vadd.f32 %v5202_v39, %v5184_v35 }
0x2b5a   :  { %v16840_v42 = vmul.f32 0.5, %v5218_v41  ;;  %v5229_v44 = vmul.f32 %v16599_v37, %v5227_v40 }
0x2b5c   :  { %v5228_v43 = vadd.f32 %v16840_v42, %v16612_v59  ;;  %v5231_v46 = vsel %vm257_vm5, %v5229_v44, 0.0  ;;  %v5222_v27 = vmax.f32 %v16840_v42, 0.0 }
0x2b5e   :  { %v5230_v45 = vmul.f32 %v16597_v34, %v5228_v43 }
0x2b60   :  { %v5232_v63 = vsel %vm257_vm5, %v5230_v45, 0.0 }
0x2b61   :  { %v5233_v47 = vadd.f32 %v5232_v63, %v5231_v46 }
0x2b63   :  { %5234 = vadd.xlane.f32.xlu0 %v5233_v47 }
0x2bf0   :  { %v5235_v1 = vpop.xlane.xlu0 %5234 }
0x2bf1   :  { %v5236_v49 = vrot.slane %v5235_v1, 4 }
0x2bf3   :  { %v5237_v50 = vadd.f32 %v5236_v49, %v5235_v1 }
0x2bf5   :  { %v5238_v51 = vrot.slane %v5237_v50, 2 }
0x2bf7   :  { %v5239_v53 = vadd.f32 %v5238_v51, %v5237_v50 }
0x2bf9   :  { %v5240_v54 = vrot.slane %v5239_v53, 1 }
0x2bfb   :  { %v5241_v55 = vadd.f32 %v5240_v54, %v5239_v53 }
0x2bfd   :  { %16402 = vpush %v5241_v55 }
0x2c2e   :  { %s16403_s17 = spop %16402 }
0x2c2f   :  { %v5243_v56 = vstv %s16403_s17 }
0x2c30   :  { %16445 = vrcp.f32 %v5243_v56 }
0x2c31   :  { %16447 = vrsqrt.f32 %v5243_v56 }
0x2c3a   :  { %v16446_v57 = vpop.eup %16445 }
0x2c3b   :  { %v16448_v0 = vpop.eup %16447  ;;  %v5245_v2 = vmul.f32 %v16446_v57, %v5227_v40  ;;  %v5246_v3 = vmul.f32 %v16446_v57, %v5228_v43 }
0x2c3c   :  { %16404 = vpush %v16448_v0 }
0x2c3d   :  { %15073 = vmatprep.mubr.msk.f32.mxu1 %vm257_vm5, %v5245_v2  ;;  %v5247_v4 = vsub.f32 %v16634_v17, %v5245_v2  ;;  %v5248_v5 = vsub.f32 %v16631_v16, %v5246_v3 }
0x2c3f   :  { %v5249_v6 = vmul.f32 0.5, %v5247_v4  ;;  %v5250_v7 = vmul.f32 0.5, %v5248_v5 }
0x2c41   :  { %15080 = vmatprep.mubr.msk.f32.mxu0 %vm257_vm5, %v5249_v6  ;;  %v15994_v8 = vpack.c.bf16 %v5250_v7, %v5249_v6 }
0x2c43   :  { %15995 = vmatprep.subr.bf16.mxu1 %v15994_v8 }
0x2c44   :  { %15997 = vmatpush3.bf16.msra.mxu1 %v15994_v8 }
0x2c47   :  { %15074 = vmatmul.mubr.msk.f32.vlgmr.msra.gmra.mrb[58].mxu1 %vm257_vm5, %v5246_v3 }
0x2c6d   :  { %s16405_s22 = spop %16404 }
0x2d1a   :  { %v15075_v9 = vpop.f32.mrb[58].mxu1 }
0x2d1b   :  { %v5323_v13 = vpop.f32.mrb[59].mxu1 }
0x2d1c   :  { %v15998_v14 = vpack.c.bf16 %v15075_v9, %v5323_v13  ;;  %15087 = vmatprep.mubr.msk.f32.mxu1 %vm257_vm5, %v5323_v13 }
0x2d1e   :  { %15999 = vmatprep.subr.bf16.mxu0 %v15998_v14 }
0x2d1f   :  { %16001 = vmatpush3.bf16.msra.mxu0 %v15998_v14 }
0x2d20   :  { %16007 = vmatprep.subr.bf16.mxu0 %v15994_v8 }
0x2d22   :  { %15081 = vmatmul.mubr.msk.f32.vlgmr.msra.gmra.mrb[60].mxu0 %vm257_vm5, %v5250_v7 }
0x2d23   :  { %16009 = vmatpush3.bf16.msra.mxu0 %v15994_v8 }
0x2df5   :  { %v15082_v18 = vpop.f32.mrb[60].mxu0 }
0x2df6   :  { %v5414_v19 = vsub.f32 %v16631_v16, %v15082_v18  ;;  %v5404_v20 = vpop.f32.mrb[61].mxu0 }
0x2df7   :  { %v5413_v21 = vsub.f32 %v16634_v17, %v5404_v20 }
0x2df8   :  { %v5416_v22 = vmul.f32 0.5, %v5414_v19 }
0x2df9   :  { %v5415_v23 = vmul.f32 0.5, %v5413_v21 }
0x2dfb   :  { %v16002_v62 = vpack.c.bf16 %v5416_v22, %v5415_v23  ;;  %15094 = vmatprep.mubr.msk.f32.mxu0 %vm257_vm5, %v5415_v23 }
0x2dfc   :  { %15095 = vmatmul.mubr.msk.f32.vlgmr.msra.gmra.mrb[62].mxu0 %vm257_vm5, %v5416_v22 }
0x2dfd   :  { %16003 = vmatprep.subr.bf16.mxu1 %v16002_v62 }
0x2dfe   :  { %16005 = vmatpush3.bf16.msra.mxu1 %v16002_v62 }
0x2e01   :  { %15088 = vmatmul.mubr.msk.f32.vlgmr.msra.gmra.mrb[60].mxu1 %vm257_vm5, %v15075_v9 }
0x2ecf   :  { %v15096_v24 = vpop.f32.mrb[62].mxu0 }
0x2ed0   :  { %v5570_v61 = vpop.f32.mrb[63].mxu0 }
0x2ed1   :  { %v16018_v25 = vpack.c.bf16 %v15096_v24, %v5570_v61  ;;  %15101 = vmatprep.mubr.msk.f32.mxu1 %vm257_vm5, %v5570_v61 }
0x2ed4   :  { %v15089_v26 = vpop.f32.mrb[60].mxu1 }
0x2ed5   :  { %v5489_v28 = vpop.f32.mrb[61].mxu1 }
0x2ed6   :  { %v16010_v29 = vpack.c.bf16 %v15089_v26, %v5489_v28  ;;  %15108 = vmatprep.mubr.msk.f32.mxu0 %vm257_vm5, %v5489_v28 }
0x2ed8   :  { %16011 = vmatprep.subr.bf16.mxu1 %v16010_v29 }
0x2ed9   :  { %16013 = vmatpush3.bf16.msra.mxu1 %v16010_v29 }
0x2eda   :  { %16019 = vmatprep.subr.bf16.mxu1 %v16018_v25 }
0x2edc   :  { %15102 = vmatmul.mubr.msk.f32.vlgmr.msra.gmra.mrb[62].mxu1 %vm257_vm5, %v15096_v24 }
0x2edd   :  { %16021 = vmatpush3.bf16.msra.mxu1 %v16018_v25 }
0x2faf   :  { %v15103_v30 = vpop.f32.mrb[62].mxu1 }
0x2fb0   :  { %v5661_v31 = vsub.f32 %v16631_v16, %v15103_v30  ;;  %v5651_v32 = vpop.f32.mrb[63].mxu1 }
0x2fb1   :  { %v5660_v33 = vsub.f32 %v16634_v17, %v5651_v32  ;;  %v6885_v32 = vld [vmem:[#allocation2 + $0x20] sm:$0xff] }
0x2fb2   :  { %v5663_v35 = vmul.f32 0.5, %v5661_v31 }
0x2fb3   :  { %v5662_v52 = vmul.f32 0.5, %v5660_v33  ;;  %v6886_v33 = vld [vmem:[#allocation2 + $0x28] sm:$0xff] }
0x2fb5   :  { %v16014_v36 = vpack.c.bf16 %v5663_v35, %v5662_v52  ;;  %15115 = vmatprep.mubr.msk.f32.mxu1 %vm257_vm5, %v5662_v52 }
0x2fb6   :  { %15116 = vmatmul.mubr.msk.f32.vlgmr.msra.gmra.mrb[64].mxu1 %vm257_vm5, %v5663_v35  ;;  %v16070_v35 = vpack.c.bf16 %v6886_v33, %v6885_v32 }
0x2fb7   :  { %16015 = vmatprep.subr.bf16.mxu0 %v16014_v36 }
0x2fb8   :  { %16017 = vmatpush3.bf16.msra.mxu0 %v16014_v36 }
0x2fbb   :  { %15109 = vmatmul.mubr.msk.f32.vlgmr.msra.gmra.mrb[64].mxu0 %vm257_vm5, %v15089_v26 }
0x3089   :  { %v15117_v48 = vpop.f32.mrb[64].mxu1 }
0x308a   :  { %v5817_v39 = vpop.f32.mrb[65].mxu1 }
0x308b   :  { %v16030_v40 = vpack.c.bf16 %v15117_v48, %v5817_v39  ;;  %15122 = vmatprep.mubr.msk.f32.mxu0 %vm257_vm5, %v5817_v39 }
0x308e   :  { %v15110_v41 = vpop.f32.mrb[64].mxu0 }
0x308f   :  { %v5736_v43 = vpop.f32.mrb[65].mxu0 }
0x3090   :  { %v16022_v44 = vpack.c.bf16 %v15110_v41, %v5736_v43  ;;  %15129 = vmatprep.mubr.msk.f32.mxu1 %vm257_vm5, %v5736_v43 }
0x3092   :  { %16023 = vmatprep.subr.bf16.mxu0 %v16022_v44 }
0x3093   :  { %16025 = vmatpush3.bf16.msra.mxu0 %v16022_v44 }
0x3094   :  { %16031 = vmatprep.subr.bf16.mxu0 %v16030_v40 }
0x3096   :  { %15123 = vmatmul.mubr.msk.f32.vlgmr.msra.gmra.mrb[66].mxu0 %vm257_vm5, %v15117_v48 }
0x3097   :  { %16033 = vmatpush3.bf16.msra.mxu0 %v16030_v40  ;;  %v6887_v40 = vld [vmem:[#allocation2 + $0x30] sm:$0xff] }
0x3169   :  { %v15124_v45 = vpop.f32.mrb[66].mxu0 }
0x316a   :  { %v5908_v46 = vsub.f32 %v16631_v16, %v15124_v45  ;;  %v5898_v63 = vpop.f32.mrb[67].mxu0 }
0x316b   :  { %v5907_v47 = vsub.f32 %v16634_v17, %v5898_v63  ;;  %v16468_v63 = vld [vmem:[%s17246_s1 + $0x8] sm:$0xff] }
0x316c   :  { %v5910_v1 = vmul.f32 0.5, %v5908_v46  ;;  %v16467_v46 = vld [vmem:[%s17246_s1] sm:$0xff] }
0x316d   :  { %v5909_v49 = vmul.f32 0.5, %v5907_v47  ;;  %v6736_v47 = vstv %s16405_s22 }
0x316f   :  { %v16026_v50 = vpack.c.bf16 %v5910_v1, %v5909_v49  ;;  %15136 = vmatprep.mubr.msk.f32.mxu0 %vm257_vm5, %v5909_v49 }
0x3170   :  { %15137 = vmatmul.mubr.msk.f32.vlgmr.msra.gmra.mrb[68].mxu0 %vm257_vm5, %v5910_v1 }
0x3171   :  { %16027 = vmatprep.subr.bf16.mxu1 %v16026_v50 }
0x3172   :  { %16029 = vmatpush3.bf16.msra.mxu1 %v16026_v50 }
0x3175   :  { %15130 = vmatmul.mubr.msk.f32.vlgmr.msra.gmra.mrb[66].mxu1 %vm257_vm5, %v15110_v41  ;;  %v6888_v41 = vld [vmem:[#allocation2 + $0x38] sm:$0xff] }
0x3176   :  { %v16074_v45 = vpack.c.bf16 %v6888_v41, %v6887_v40 }
0x3243   :  { %v15138_v51 = vpop.f32.mrb[68].mxu0 }
0x3244   :  { %v6064_v53 = vpop.f32.mrb[69].mxu0 }
0x3245   :  { %v16042_v54 = vpack.c.bf16 %v15138_v51, %v6064_v53  ;;  %15143 = vmatprep.mubr.msk.f32.mxu1 %vm257_vm5, %v6064_v53 }
0x3248   :  { %v15131_v55 = vpop.f32.mrb[66].mxu1 }
0x3249   :  { %v5983_v56 = vpop.f32.mrb[67].mxu1 }
0x324a   :  { %v16034_v57 = vpack.c.bf16 %v15131_v55, %v5983_v56  ;;  %15150 = vmatprep.mubr.msk.f32.mxu0 %vm257_vm5, %v5983_v56 }
0x324c   :  { %16035 = vmatprep.subr.bf16.mxu1 %v16034_v57 }
0x324d   :  { %16037 = vmatpush3.bf16.msra.mxu1 %v16034_v57 }
0x324e   :  { %16043 = vmatprep.subr.bf16.mxu1 %v16042_v54 }
0x3250   :  { %15144 = vmatmul.mubr.msk.f32.vlgmr.msra.gmra.mrb[68].mxu1 %vm257_vm5, %v15138_v51 }
0x3251   :  { %16045 = vmatpush3.bf16.msra.mxu1 %v16042_v54 }
0x3323   :  { %v15145_v0 = vpop.f32.mrb[68].mxu1 }
0x3324   :  { %v6155_v2 = vsub.f32 %v16631_v16, %v15145_v0  ;;  %v6145_v3 = vpop.f32.mrb[69].mxu1 }
0x3325   :  { %v6154_v4 = vsub.f32 %v16634_v17, %v6145_v3 }
0x3326   :  { %v6157_v5 = vmul.f32 0.5, %v6155_v2 }
0x3327   :  { %v6156_v6 = vmul.f32 0.5, %v6154_v4 }
0x3329   :  { %v16038_v7 = vpack.c.bf16 %v6157_v5, %v6156_v6  ;;  %15157 = vmatprep.mubr.msk.f32.mxu1 %vm257_vm5, %v6156_v6 }
0x332a   :  { %15158 = vmatmul.mubr.msk.f32.vlgmr.msra.gmra.mrb[70].mxu1 %vm257_vm5, %v6157_v5 }
0x332b   :  { %16039 = vmatprep.subr.bf16.mxu0 %v16038_v7 }
0x332c   :  { %16041 = vmatpush3.bf16.msra.mxu0 %v16038_v7 }
0x332f   :  { %15151 = vmatmul.mubr.msk.f32.vlgmr.msra.gmra.mrb[70].mxu0 %vm257_vm5, %v15131_v55 }
0x33fd   :  { %v15159_v8 = vpop.f32.mrb[70].mxu1 }
0x33fe   :  { %v6311_v9 = vpop.f32.mrb[71].mxu1 }
0x33ff   :  { %v16054_v13 = vpack.c.bf16 %v15159_v8, %v6311_v9  ;;  %15164 = vmatprep.mubr.msk.f32.mxu0 %vm257_vm5, %v6311_v9 }
0x3402   :  { %v15152_v14 = vpop.f32.mrb[70].mxu0 }
0x3403   :  { %v6230_v18 = vpop.f32.mrb[71].mxu0 }
0x3404   :  { %v16046_v19 = vpack.c.bf16 %v15152_v14, %v6230_v18  ;;  %15171 = vmatprep.mubr.msk.f32.mxu1 %vm257_vm5, %v6230_v18 }
0x3406   :  { %16047 = vmatprep.subr.bf16.mxu0 %v16046_v19 }
0x3407   :  { %16049 = vmatpush3.bf16.msra.mxu0 %v16046_v19 }
0x3408   :  { %16055 = vmatprep.subr.bf16.mxu0 %v16054_v13 }
0x340a   :  { %15165 = vmatmul.mubr.msk.f32.vlgmr.msra.gmra.mrb[72].mxu0 %vm257_vm5, %v15159_v8 }
0x340b   :  { %16057 = vmatpush3.bf16.msra.mxu0 %v16054_v13 }
0x34dd   :  { %v15166_v20 = vpop.f32.mrb[72].mxu0 }
0x34de   :  { %v6402_v21 = vsub.f32 %v16631_v16, %v15166_v20  ;;  %v6392_v22 = vpop.f32.mrb[73].mxu0 }
0x34df   :  { %v6401_v23 = vsub.f32 %v16634_v17, %v6392_v22  ;;  %v5224_v22 = vsub.f32 0.0, %v16840_v42 }
0x34e0   :  { %v6404_v62 = vmul.f32 0.5, %v6402_v21 }
0x34e1   :  { %v6403_v24 = vmul.f32 0.5, %v6401_v23  ;;  %v5226_v32 = vmax.f32 %v5224_v22, 0.0 }
0x34e3   :  { %v16050_v61 = vpack.c.bf16 %v6404_v62, %v6403_v24  ;;  %15178 = vmatprep.mubr.msk.f32.mxu0 %vm257_vm5, %v6403_v24  ;;  %v5223_v24 = vsub.f32 0.0, %v16836_v38 }
0x34e4   :  { %15179 = vmatmul.mubr.msk.f32.vlgmr.msra.gmra.mrb[74].mxu0 %vm257_vm5, %v6404_v62 }
0x34e5   :  { %16051 = vmatprep.subr.bf16.mxu1 %v16050_v61 }
0x34e6   :  { %16053 = vmatpush3.bf16.msra.mxu1 %v16050_v61 }
0x34e9   :  { %15172 = vmatmul.mubr.msk.f32.vlgmr.msra.gmra.mrb[72].mxu1 %vm257_vm5, %v15152_v14 }
0x35b7   :  { %v15180_v25 = vpop.f32.mrb[74].mxu0 }
0x35b8   :  { %v6558_v26 = vpop.f32.mrb[75].mxu0 }
0x35b9   :  { %v16062_v28 = vpack.c.bf16 %v15180_v25, %v6558_v26  ;;  %15185 = vmatprep.mubr.msk.f32.mxu1 %vm257_vm5, %v6558_v26 }
0x35bb   :  { %16063 = vmatprep.subr.bf16.mxu0 %v16062_v28 }
0x35bc   :  { %v15173_v29 = vpop.f32.mrb[72].mxu1  ;;  %16065 = vmatpush3.bf16.msra.mxu0 %v16062_v28 }
0x35bd   :  { %v6477_v30 = vpop.f32.mrb[73].mxu1  ;;  %16071 = vmatprep.subr.bf16.mxu0 %v16070_v35 }
0x35be   :  { %v16058_v31 = vpack.c.bf16 %v15173_v29, %v6477_v30  ;;  %v5221_v29 = vmax.f32 %v16836_v38, 0.0 }
0x35c0   :  { %16059 = vmatprep.subr.bf16.mxu1 %v16058_v31 }
0x35c1   :  { %16061 = vmatpush3.bf16.msra.mxu1 %v16058_v31 }
0x35c4   :  { %15186 = vmatmul.mubr.msk.f32.vlgmr.msra.gmra.mrb[74].mxu1 %vm257_vm5, %v15180_v25 }
0x3697   :  { %v15187_v52 = vpop.f32.mrb[74].mxu1 }
0x3698   :  { %v6649_v36 = vsub.f32 %v16631_v16, %v15187_v52  ;;  %v6639_v48 = vpop.f32.mrb[75].mxu1 }
0x3699   :  { %v6648_v39 = vsub.f32 %v16634_v17, %v6639_v48 }
0x369a   :  { %v6651_v44 = vmul.f32 0.5, %v6649_v36 }
0x369b   :  { %v6650_v43 = vmul.f32 0.5, %v6648_v39 }
0x369d   :  { %15192 = vmatprep.mubr.msk.f32.mxu0 %vm257_vm5, %v6650_v43 }
0x369e   :  { %15193 = vmatmul.mubr.msk.f32.vlgmr.msra.gmra.mrb[76].mxu0 %vm257_vm5, %v6651_v44 }
0x369f   :  { %16073 = vmatpush3.bf16.msra.mxu0 %v16070_v35  ;;  %15210 = vmatprep.mubr.msk.f32.mxu0 %vm76_vm0, %v16467_v46 }
0x36a0   :  { %16075 = vmatprep.subr.bf16.mxu0 %v16074_v45 }
0x36a3   :  { %16077 = vmatpush3.bf16.msra.mxu0 %v16074_v45 }
0x36a6   :  { %15211 = vmatmul.mubr.msk.f32.vlgmr.msra.gmra.mrb[78].mxu0 %vm76_vm0, %v16468_v63 }
0x3771   :  { %v15194_v1 = vpop.f32.mrb[76].mxu0 }
0x3772   :  { %v6738_v49 = vmul.f32 %v15194_v1, %v6736_v47  ;;  %v6724_v50 = vpop.f32.mrb[77].mxu0 }
0x3773   :  { %v6737_v51 = vmul.f32 %v6736_v47, %v6724_v50 }
0x3775   :  { %v16066_v53 = vpack.c.bf16 %v6738_v49, %v6737_v51  ;;  %15199 = vmatprep.mubr.msk.f32.mxu1 %vm257_vm5, %v6737_v51 }
0x3777   :  { %16067 = vmatprep.subr.bf16.mxu1 %v16066_v53 }
0x3778   :  { %16069 = vmatpush3.bf16.msra.mxu1 %v16066_v53 }
0x3779   :  { %v15212_v54 = vpop.f32.mrb[78].mxu0 }
0x377a   :  { %v6955_v55 = vpop.f32.mrb[79].mxu0  ;;  %v6961_v56 = vadd.f32 %v15212_v54, %v16579_v12 }
0x377b   :  { %v6956_v57 = vadd.f32 %v6955_v55, %v16577_v11  ;;  %15200 = vmatmul.mubr.msk.f32.vlgmr.msra.gmra.mrb[76].mxu1 %vm257_vm5, %v6738_v49 }
0x377c   :  { %v6965_v2 = vmax.f32 %v6961_v56, 0.0 }
0x377d   :  { %v6964_v0 = vmax.f32 %v6956_v57, 0.0 }
0x377e   :  { %v6969_v4 = vsel %vm160_vm1, %v6965_v2, 0.0 }
0x377f   :  { %v6966_v3 = vsel %vm160_vm1, %v6964_v0, 0.0 }
0x3780   :  { %6967 = vadd.xlane.f32.xlu1 %v6966_v3 }
0x3784   :  { %6970 = vadd.xlane.f32.xlu1 %v6969_v4 }
0x380d   :  { %v6968_v5 = vpop.xlane.xlu1 %6967 }
0x380e   :  { %v6972_v6 = vmul.f32 0.015625, %v6968_v5 }
0x3810   :  { %v6974_v7 = vsub.f32 %v6964_v0, %v6972_v6 }
0x3811   :  { %v6971_v8 = vpop.xlane.xlu1 %6970 }
0x3812   :  { %v6973_v9 = vmul.f32 0.015625, %v6971_v8  ;;  %15217 = vmatprep.mubr.msk.f32.mxu1 %vm160_vm1, %v6974_v7 }
0x3814   :  { %v6975_v12 = vsub.f32 %v6965_v2, %v6973_v9 }
0x3816   :  { %v16078_v13 = vpack.c.bf16 %v6975_v12, %v6974_v7 }
0x3818   :  { %16080 = vmatprep.subr.msk.bf16.mxu1 %vm16588_vm2, %v16078_v13 }
0x3819   :  { %16083 = vmatpush3.bf16.xpose.msk.msra.mxu1 %vm16588_vm2, %v16078_v13 }
0x3820   :  { %15218 = vmatmul.mubr.msk.f32.vlgmr.msra.gmra.mrb[78].mxu1 %vm160_vm1, %v6975_v12 }
0x384e   :  { %v15201_v11 = vpop.f32.mrb[76].mxu1 }
0x384f   :  { %v6821_v14 = vsub.f32 0.0, %v15201_v11  ;;  %v6811_v18 = vpop.f32.mrb[77].mxu1 }
0x3850   :  { %v6820_v19 = vsub.f32 0.0, %v6811_v18 }
0x3851   :  { %v6823_v20 = vadd.f32 %v6821_v14, %v16756_v10 }
0x3852   :  { %v6822_v21 = vadd.f32 %v6820_v19, %v16758_v15  ;;  %v5225_v15 = vmax.f32 %v5223_v24, 0.0 }
0x3853   :  { %v6825_v23 = vadd.f32 0.07, %v6823_v20  ;;  %v6833_v62 = vsub.f32 0.0, %v6823_v20 }
0x3854   :  { %v6824_v61 = vadd.f32 0.07, %v6822_v21  ;;  %v6832_v25 = vsub.f32 0.0, %v6822_v21 }
0x3855   :  { %v6827_v26 = vmul.f32 0.0, %v6825_v23  ;;  %v6835_v28 = vadd.f32 0.07, %v6833_v62 }
0x3856   :  { %v6826_v30 = vmul.f32 0.0, %v6824_v61  ;;  %v6834_v31 = vadd.f32 0.07, %v6832_v25 }
0x3857   :  { %v6829_v10 = vsub.f32 %v5222_v27, %v6827_v26  ;;  %v6837_v33 = vmul.f32 0.0, %v6835_v28 }
0x3858   :  { %v6836_v35 = vmul.f32 0.0, %v6834_v31  ;;  %v6828_v52 = vsub.f32 %v5221_v29, %v6826_v30 }
0x3859   :  { %v6839_v36 = vsub.f32 %v5226_v32, %v6837_v33  ;;  %v6831_v39 = vmax.f32 %v6829_v10, 0.0 }
0x385a   :  { %v6838_v48 = vsub.f32 %v5225_v15, %v6836_v35  ;;  %v6830_v41 = vmax.f32 %v6828_v52, 0.0 }
0x385b   :  { %v6841_v40 = vmax.f32 %v6839_v36, 0.0 }
0x385c   :  { %v6840_v43 = vmax.f32 %v6838_v48, 0.0 }
0x385d   :  { %v16924_v44 = vsub.f32 %v6831_v39, %v6841_v40 }
0x385e   :  { %v16926_v42 = vsub.f32 %v6830_v41, %v6840_v43 }
0x38f3   :  { %v15219_v45 = vpop.f32.mrb[78].mxu1 }
0x38f4   :  { %v7058_v38 = vmul.f32 0.015625, %v15219_v45  ;;  %v7048_v46 = vpop.f32.mrb[79].mxu1 }
0x38f5   :  { %v7057_v63 = vmul.f32 0.015625, %v7048_v46 }
0x38f6   :  { %v7060_v47 = vmul.f32 %v16597_v34, %v7058_v38 }
0x38f7   :  { %v7059_v1 = vmul.f32 %v16599_v37, %v7057_v63 }
0x38f8   :  { %v7062_v49 = vsel %vm257_vm5, %v7060_v47, 0.0 }
0x38f9   :  { %v7061_v50 = vsel %vm257_vm5, %v7059_v1, 0.0 }
0x38fa   :  { %v7063_v51 = vadd.f32 %v7062_v49, %v7061_v50 }
0x38fc   :  { %7064 = vadd.xlane.f32.xlu1 %v7063_v51 }
0x3989   :  { %v7065_v53 = vpop.xlane.xlu1 %7064 }
0x398a   :  { %v7066_v54 = vrot.slane %v7065_v53, 4 }
0x398c   :  { %v7067_v55 = vadd.f32 %v7066_v54, %v7065_v53 }
0x398e   :  { %v7068_v56 = vrot.slane %v7067_v55, 2 }
0x3990   :  { %v7069_v57 = vadd.f32 %v7068_v56, %v7067_v55 }
0x3992   :  { %v7070_v0 = vrot.slane %v7069_v57, 1 }
0x3994   :  { %v7071_v2 = vadd.f32 %v7070_v0, %v7069_v57 }
0x3996   :  { %16406 = vpush %v7071_v2 }
0x39c7   :  { %s16407_s1 = spop %16406 }
0x39c8   :  { %v7073_v3 = vstv %s16407_s1 }
0x39c9   :  { %16449 = vrcp.f32 %v7073_v3 }
0x39d3   :  { %v16932_v4 = vpop.eup %16449 }
0x39d4   :  { %v16935_v5 = vmul.f32 %v16932_v4, %v7057_v63  ;;  %v16938_v6 = vmul.f32 %v16932_v4, %v7058_v38 }
0x39d6   :  { %v7077_v7 = vadd.f32 %v16935_v5, %v16610_v58  ;;  %v7078_v8 = vadd.f32 %v16938_v6, %v16612_v59 }
0x39d8   :  { %v7079_v9 = vmul.f32 %v16599_v37, %v7077_v7  ;;  %v7080_v12 = vmul.f32 %v16597_v34, %v7078_v8 }
0x39da   :  { %v7081_v13 = vsel %vm257_vm5, %v7079_v9, 0.0  ;;  %v7082_v11 = vsel %vm257_vm5, %v7080_v12, 0.0 }
0x39db   :  { %v7083_v14 = vadd.f32 %v7082_v11, %v7081_v13 }
0x39dd   :  { %7084 = vadd.xlane.f32.xlu1 %v7083_v14 }
0x3a6a   :  { %v7085_v18 = vpop.xlane.xlu1 %7084 }
0x3a6b   :  { %v7086_v19 = vrot.slane %v7085_v18, 4 }
0x3a6d   :  { %v7087_v20 = vadd.f32 %v7086_v19, %v7085_v18 }
0x3a6f   :  { %v7088_v21 = vrot.slane %v7087_v20, 2 }
0x3a71   :  { %v7089_v22 = vadd.f32 %v7088_v21, %v7087_v20 }
0x3a73   :  { %v7090_v23 = vrot.slane %v7089_v22, 1 }
0x3a75   :  { %v7091_v62 = vadd.f32 %v7090_v23, %v7089_v22 }
0x3a77   :  { %16408 = vpush %v7091_v62 }
0x3aa8   :  { %s16409_s23 = spop %16408 }
0x3aa9   :  { %v7093_v24 = vstv %s16409_s23 }
0x3aaa   :  { %16451 = vrcp.f32 %v7093_v24 }
0x3aab   :  { %16453 = vrsqrt.f32 %v7093_v24 }
0x3ab4   :  { %v16452_v61 = vpop.eup %16451 }
0x3ab5   :  { %v16454_v25 = vpop.eup %16453  ;;  %v7095_v27 = vmul.f32 %v16452_v61, %v7077_v7  ;;  %v7096_v26 = vmul.f32 %v16452_v61, %v7078_v8 }
0x3ab6   :  { %16410 = vpush %v16454_v25 }
0x3ab7   :  { %15224 = vmatprep.mubr.msk.f32.mxu0 %vm257_vm5, %v7095_v27  ;;  %v7097_v28 = vsub.f32 %v16634_v17, %v7095_v27  ;;  %v7098_v29 = vsub.f32 %v16631_v16, %v7096_v26 }
0x3ab9   :  { %v7099_v30 = vmul.f32 0.5, %v7097_v28  ;;  %v7100_v31 = vmul.f32 0.5, %v7098_v29 }
0x3abb   :  { %15231 = vmatprep.mubr.msk.f32.mxu1 %vm257_vm5, %v7099_v30  ;;  %v16084_v32 = vpack.c.bf16 %v7100_v31, %v7099_v30 }
0x3abd   :  { %16085 = vmatprep.subr.bf16.mxu0 %v16084_v32 }
0x3abe   :  { %16087 = vmatpush3.bf16.msra.mxu0 %v16084_v32 }
0x3ac1   :  { %15225 = vmatmul.mubr.msk.f32.vlgmr.msra.gmra.mrb[80].mxu0 %vm257_vm5, %v7096_v26 }
0x3ae7   :  { %s16411_s24 = spop %16410 }
0x3b94   :  { %v15226_v10 = vpop.f32.mrb[80].mxu0 }
0x3b95   :  { %v7173_v33 = vpop.f32.mrb[81].mxu0 }
0x3b96   :  { %v16088_v15 = vpack.c.bf16 %v15226_v10, %v7173_v33  ;;  %15238 = vmatprep.mubr.msk.f32.mxu0 %vm257_vm5, %v7173_v33 }
0x3b98   :  { %16089 = vmatprep.subr.bf16.mxu1 %v16088_v15 }
0x3b99   :  { %16091 = vmatpush3.bf16.msra.mxu1 %v16088_v15 }
0x3b9a   :  { %16097 = vmatprep.subr.bf16.mxu1 %v16084_v32 }
0x3b9c   :  { %15232 = vmatmul.mubr.msk.f32.vlgmr.msra.gmra.mrb[80].mxu1 %vm257_vm5, %v7100_v31 }
0x3b9d   :  { %16099 = vmatpush3.bf16.msra.mxu1 %v16084_v32 }
0x3c6f   :  { %v15233_v35 = vpop.f32.mrb[80].mxu1 }
0x3c70   :  { %v7264_v52 = vsub.f32 %v16631_v16, %v15233_v35  ;;  %v7254_v36 = vpop.f32.mrb[81].mxu1 }
0x3c71   :  { %v7263_v48 = vsub.f32 %v16634_v17, %v7254_v36 }
0x3c72   :  { %v7266_v39 = vmul.f32 0.5, %v7264_v52 }
0x3c73   :  { %v7265_v40 = vmul.f32 0.5, %v7263_v48 }
0x3c75   :  { %v16092_v41 = vpack.c.bf16 %v7266_v39, %v7265_v40  ;;  %15245 = vmatprep.mubr.msk.f32.mxu1 %vm257_vm5, %v7265_v40 }
0x3c76   :  { %15246 = vmatmul.mubr.msk.f32.vlgmr.msra.gmra.mrb[82].mxu1 %vm257_vm5, %v7266_v39 }
0x3c77   :  { %16093 = vmatprep.subr.bf16.mxu0 %v16092_v41 }
0x3c78   :  { %16095 = vmatpush3.bf16.msra.mxu0 %v16092_v41 }
0x3c7b   :  { %15239 = vmatmul.mubr.msk.f32.vlgmr.msra.gmra.mrb[82].mxu0 %vm257_vm5, %v15226_v10 }
0x3d49   :  { %v15247_v43 = vpop.f32.mrb[82].mxu1 }
0x3d4a   :  { %v7420_v45 = vpop.f32.mrb[83].mxu1 }
0x3d4b   :  { %v16108_v38 = vpack.c.bf16 %v15247_v43, %v7420_v45  ;;  %15252 = vmatprep.mubr.msk.f32.mxu0 %vm257_vm5, %v7420_v45 }
0x3d4e   :  { %v15240_v46 = vpop.f32.mrb[82].mxu0 }
0x3d4f   :  { %v7339_v63 = vpop.f32.mrb[83].mxu0 }
0x3d50   :  { %v16100_v47 = vpack.c.bf16 %v15240_v46, %v7339_v63  ;;  %15259 = vmatprep.mubr.msk.f32.mxu1 %vm257_vm5, %v7339_v63 }
0x3d52   :  { %16101 = vmatprep.subr.bf16.mxu0 %v16100_v47 }
0x3d53   :  { %16103 = vmatpush3.bf16.msra.mxu0 %v16100_v47 }
0x3d54   :  { %16109 = vmatprep.subr.bf16.mxu0 %v16108_v38 }
0x3d56   :  { %15253 = vmatmul.mubr.msk.f32.vlgmr.msra.gmra.mrb[84].mxu0 %vm257_vm5, %v15247_v43 }
0x3d57   :  { %16111 = vmatpush3.bf16.msra.mxu0 %v16108_v38 }
0x3e29   :  { %v15254_v1 = vpop.f32.mrb[84].mxu0 }
0x3e2a   :  { %v7511_v49 = vsub.f32 %v16631_v16, %v15254_v1  ;;  %v7501_v50 = vpop.f32.mrb[85].mxu0 }
0x3e2b   :  { %v7510_v51 = vsub.f32 %v16634_v17, %v7501_v50 }
0x3e2c   :  { %v7513_v53 = vmul.f32 0.5, %v7511_v49 }
0x3e2d   :  { %v7512_v54 = vmul.f32 0.5, %v7510_v51 }
0x3e2f   :  { %v16104_v55 = vpack.c.bf16 %v7513_v53, %v7512_v54  ;;  %15266 = vmatprep.mubr.msk.f32.mxu0 %vm257_vm5, %v7512_v54 }
0x3e30   :  { %15267 = vmatmul.mubr.msk.f32.vlgmr.msra.gmra.mrb[86].mxu0 %vm257_vm5, %v7513_v53 }
0x3e31   :  { %16105 = vmatprep.subr.bf16.mxu1 %v16104_v55 }
0x3e32   :  { %16107 = vmatpush3.bf16.msra.mxu1 %v16104_v55  ;;  %v8586_v55 = vstv %s16411_s24 }
0x3e35   :  { %15260 = vmatmul.mubr.msk.f32.vlgmr.msra.gmra.mrb[84].mxu1 %vm257_vm5, %v15240_v46 }
0x3f03   :  { %v15268_v56 = vpop.f32.mrb[86].mxu0 }
0x3f04   :  { %v7667_v57 = vpop.f32.mrb[87].mxu0 }
0x3f05   :  { %v16120_v0 = vpack.c.bf16 %v15268_v56, %v7667_v57  ;;  %15273 = vmatprep.mubr.msk.f32.mxu1 %vm257_vm5, %v7667_v57 }
0x3f08   :  { %v15261_v2 = vpop.f32.mrb[84].mxu1 }
0x3f09   :  { %v7586_v3 = vpop.f32.mrb[85].mxu1 }
0x3f0a   :  { %v16112_v7 = vpack.c.bf16 %v15261_v2, %v7586_v3  ;;  %15280 = vmatprep.mubr.msk.f32.mxu0 %vm257_vm5, %v7586_v3 }
0x3f0c   :  { %16113 = vmatprep.subr.bf16.mxu1 %v16112_v7 }
0x3f0d   :  { %16115 = vmatpush3.bf16.msra.mxu1 %v16112_v7 }
0x3f0e   :  { %16121 = vmatprep.subr.bf16.mxu1 %v16120_v0 }
0x3f10   :  { %15274 = vmatmul.mubr.msk.f32.vlgmr.msra.gmra.mrb[86].mxu1 %vm257_vm5, %v15268_v56 }
0x3f11   :  { %16123 = vmatpush3.bf16.msra.mxu1 %v16120_v0 }
0x3fe3   :  { %v15275_v8 = vpop.f32.mrb[86].mxu1 }
0x3fe4   :  { %v7758_v9 = vsub.f32 %v16631_v16, %v15275_v8  ;;  %v7748_v12 = vpop.f32.mrb[87].mxu1 }
0x3fe5   :  { %v7757_v13 = vsub.f32 %v16634_v17, %v7748_v12 }
0x3fe6   :  { %v7760_v11 = vmul.f32 0.5, %v7758_v9 }
0x3fe7   :  { %v7759_v14 = vmul.f32 0.5, %v7757_v13 }
0x3fe9   :  { %v16116_v18 = vpack.c.bf16 %v7760_v11, %v7759_v14  ;;  %15287 = vmatprep.mubr.msk.f32.mxu1 %vm257_vm5, %v7759_v14 }
0x3fea   :  { %15288 = vmatmul.mubr.msk.f32.vlgmr.msra.gmra.mrb[88].mxu1 %vm257_vm5, %v7760_v11 }
0x3feb   :  { %16117 = vmatprep.subr.bf16.mxu0 %v16116_v18 }
0x3fec   :  { %16119 = vmatpush3.bf16.msra.mxu0 %v16116_v18 }
0x3fef   :  { %15281 = vmatmul.mubr.msk.f32.vlgmr.msra.gmra.mrb[88].mxu0 %vm257_vm5, %v15261_v2 }
0x40bd   :  { %v15289_v19 = vpop.f32.mrb[88].mxu1 }
0x40be   :  { %v7914_v20 = vpop.f32.mrb[89].mxu1 }
0x40bf   :  { %v16132_v21 = vpack.c.bf16 %v15289_v19, %v7914_v20  ;;  %15294 = vmatprep.mubr.msk.f32.mxu0 %vm257_vm5, %v7914_v20 }
0x40c2   :  { %v15282_v22 = vpop.f32.mrb[88].mxu0 }
0x40c3   :  { %v7833_v23 = vpop.f32.mrb[89].mxu0 }
0x40c4   :  { %v16124_v62 = vpack.c.bf16 %v15282_v22, %v7833_v23  ;;  %15301 = vmatprep.mubr.msk.f32.mxu1 %vm257_vm5, %v7833_v23 }
0x40c6   :  { %16125 = vmatprep.subr.bf16.mxu0 %v16124_v62 }
0x40c7   :  { %16127 = vmatpush3.bf16.msra.mxu0 %v16124_v62 }
0x40c8   :  { %16133 = vmatprep.subr.bf16.mxu0 %v16132_v21 }
0x40ca   :  { %15295 = vmatmul.mubr.msk.f32.vlgmr.msra.gmra.mrb[90].mxu0 %vm257_vm5, %v15289_v19 }
0x40cb   :  { %16135 = vmatpush3.bf16.msra.mxu0 %v16132_v21 }
0x419d   :  { %v15296_v24 = vpop.f32.mrb[90].mxu0 }
0x419e   :  { %v8005_v61 = vsub.f32 %v16631_v16, %v15296_v24  ;;  %v7995_v25 = vpop.f32.mrb[91].mxu0 }
0x419f   :  { %v8004_v27 = vsub.f32 %v16634_v17, %v7995_v25 }
0x41a0   :  { %v8007_v26 = vmul.f32 0.5, %v8005_v61 }
0x41a1   :  { %v8006_v28 = vmul.f32 0.5, %v8004_v27 }
0x41a3   :  { %v16128_v29 = vpack.c.bf16 %v8007_v26, %v8006_v28  ;;  %15308 = vmatprep.mubr.msk.f32.mxu0 %vm257_vm5, %v8006_v28 }
0x41a4   :  { %15309 = vmatmul.mubr.msk.f32.vlgmr.msra.gmra.mrb[92].mxu0 %vm257_vm5, %v8007_v26 }
0x41a5   :  { %16129 = vmatprep.subr.bf16.mxu1 %v16128_v29 }
0x41a6   :  { %16131 = vmatpush3.bf16.msra.mxu1 %v16128_v29 }
0x41a9   :  { %15302 = vmatmul.mubr.msk.f32.vlgmr.msra.gmra.mrb[90].mxu1 %vm257_vm5, %v15282_v22 }
0x4277   :  { %v15310_v30 = vpop.f32.mrb[92].mxu0 }
0x4278   :  { %v8161_v31 = vpop.f32.mrb[93].mxu0 }
0x4279   :  { %v16144_v32 = vpack.c.bf16 %v15310_v30, %v8161_v31  ;;  %15315 = vmatprep.mubr.msk.f32.mxu1 %vm257_vm5, %v8161_v31 }
0x427c   :  { %v15303_v10 = vpop.f32.mrb[90].mxu1 }
0x427d   :  { %v8080_v33 = vpop.f32.mrb[91].mxu1 }
0x427e   :  { %v16136_v15 = vpack.c.bf16 %v15303_v10, %v8080_v33  ;;  %15322 = vmatprep.mubr.msk.f32.mxu0 %vm257_vm5, %v8080_v33 }
0x4280   :  { %16137 = vmatprep.subr.bf16.mxu1 %v16136_v15 }
0x4281   :  { %16139 = vmatpush3.bf16.msra.mxu1 %v16136_v15 }
0x4282   :  { %16145 = vmatprep.subr.bf16.mxu1 %v16144_v32 }
0x4284   :  { %15316 = vmatmul.mubr.msk.f32.vlgmr.msra.gmra.mrb[92].mxu1 %vm257_vm5, %v15310_v30 }
0x4285   :  { %16147 = vmatpush3.bf16.msra.mxu1 %v16144_v32 }
0x4357   :  { %v15317_v35 = vpop.f32.mrb[92].mxu1 }
0x4358   :  { %v8252_v52 = vsub.f32 %v16631_v16, %v15317_v35  ;;  %v8242_v36 = vpop.f32.mrb[93].mxu1 }
0x4359   :  { %v8251_v48 = vsub.f32 %v16634_v17, %v8242_v36 }
0x435a   :  { %v8254_v39 = vmul.f32 0.5, %v8252_v52 }
0x435b   :  { %v8253_v40 = vmul.f32 0.5, %v8251_v48 }
0x435d   :  { %v16140_v41 = vpack.c.bf16 %v8254_v39, %v8253_v40  ;;  %15329 = vmatprep.mubr.msk.f32.mxu1 %vm257_vm5, %v8253_v40 }
0x435e   :  { %15330 = vmatmul.mubr.msk.f32.vlgmr.msra.gmra.mrb[94].mxu1 %vm257_vm5, %v8254_v39 }
0x435f   :  { %16141 = vmatprep.subr.bf16.mxu0 %v16140_v41 }
0x4360   :  { %16143 = vmatpush3.bf16.msra.mxu0 %v16140_v41 }
0x4363   :  { %15323 = vmatmul.mubr.msk.f32.vlgmr.msra.gmra.mrb[94].mxu0 %vm257_vm5, %v15303_v10 }
0x4431   :  { %v15331_v43 = vpop.f32.mrb[94].mxu1 }
0x4432   :  { %v8408_v45 = vpop.f32.mrb[95].mxu1 }
0x4433   :  { %v16152_v38 = vpack.c.bf16 %v15331_v43, %v8408_v45  ;;  %15336 = vmatprep.mubr.msk.f32.mxu0 %vm257_vm5, %v8408_v45 }
0x4435   :  { %16153 = vmatprep.subr.bf16.mxu1 %v16152_v38 }
0x4436   :  { %v15324_v46 = vpop.f32.mrb[94].mxu0  ;;  %16155 = vmatpush3.bf16.msra.mxu1 %v16152_v38 }
0x4437   :  { %v8327_v63 = vpop.f32.mrb[95].mxu0 }
0x4438   :  { %v16148_v47 = vpack.c.bf16 %v15324_v46, %v8327_v63 }
0x443a   :  { %16149 = vmatprep.subr.bf16.mxu0 %v16148_v47 }
0x443b   :  { %16151 = vmatpush3.bf16.msra.mxu0 %v16148_v47 }
0x443e   :  { %15337 = vmatmul.mubr.msk.f32.vlgmr.msra.gmra.mrb[96].mxu0 %vm257_vm5, %v15331_v43 }
0x4511   :  { %v15338_v1 = vpop.f32.mrb[96].mxu0 }
0x4512   :  { %v8499_v49 = vsub.f32 %v16631_v16, %v15338_v1  ;;  %v8489_v50 = vpop.f32.mrb[97].mxu0 }
0x4513   :  { %v8498_v51 = vsub.f32 %v16634_v17, %v8489_v50 }
0x4514   :  { %v8501_v54 = vmul.f32 0.5, %v8499_v49 }
0x4515   :  { %v8500_v53 = vmul.f32 0.5, %v8498_v51 }
0x4517   :  { %15343 = vmatprep.mubr.msk.f32.mxu1 %vm257_vm5, %v8500_v53 }
0x4518   :  { %15344 = vmatmul.mubr.msk.f32.vlgmr.msra.gmra.mrb[96].mxu1 %vm257_vm5, %v8501_v54 }
0x45eb   :  { %v15345_v56 = vpop.f32.mrb[96].mxu1 }
0x45ec   :  { %v8588_v57 = vmul.f32 %v15345_v56, %v8586_v55  ;;  %v8574_v0 = vpop.f32.mrb[97].mxu1 }
0x45ed   :  { %v8587_v2 = vmul.f32 %v8586_v55, %v8574_v0 }
0x45ef   :  { %v16156_v3 = vpack.c.bf16 %v8588_v57, %v8587_v2  ;;  %15350 = vmatprep.mubr.msk.f32.mxu0 %vm257_vm5, %v8587_v2 }
0x45f1   :  { %16157 = vmatprep.subr.bf16.mxu0 %v16156_v3 }
0x45f2   :  { %16159 = vmatpush3.bf16.msra.mxu0 %v16156_v3 }
0x45f5   :  { %15351 = vmatmul.mubr.msk.f32.vlgmr.msra.gmra.mrb[98].mxu0 %vm257_vm5, %v8588_v57 }
0x46c8   :  { %v17000_v7 = vpop.f32.mrb[98].mxu0 }
0x46c9   :  { %v8677_v8 = vadd.f32 %v17000_v7, %v16612_v59  ;;  %v17004_v9 = vpop.f32.mrb[99].mxu0 }
0x46ca   :  { %v8676_v12 = vadd.f32 %v17004_v9, %v16610_v58 }
0x46cb   :  { %v8679_v13 = vmul.f32 %v16597_v34, %v8677_v8 }
0x46cc   :  { %v8678_v11 = vmul.f32 %v16599_v37, %v8676_v12 }
0x46cd   :  { %v8681_v14 = vsel %vm257_vm5, %v8679_v13, 0.0 }
0x46ce   :  { %v8680_v18 = vsel %vm257_vm5, %v8678_v11, 0.0 }
0x46cf   :  { %v8682_v19 = vadd.f32 %v8681_v14, %v8680_v18 }
0x46d1   :  { %8683 = vadd.xlane.f32.xlu1 %v8682_v19 }
0x4704   :  { %10271 = vxpose.xlu1.b32.start [1/2] (short) (narrow) %v16935_v5, 16 }
0x4708   :  { %10272 = vxpose.xlu1.b32.end [2/2] (short) (narrow) %v16938_v6, 16 }
0x475e   :  { %v8684_v20 = vpop.xlane.xlu1 %8683 }
0x475f   :  { %v8685_v21 = vrot.slane %v8684_v20, 4 }
0x4761   :  { %v8686_v22 = vadd.f32 %v8685_v21, %v8684_v20 }
0x4763   :  { %v8687_v23 = vrot.slane %v8686_v22, 2 }
0x4765   :  { %v8688_v62 = vadd.f32 %v8687_v23, %v8686_v22 }
0x4767   :  { %v8689_v24 = vrot.slane %v8688_v62, 1 }
0x4769   :  { %v8690_v61 = vadd.f32 %v8689_v24, %v8688_v62 }
0x476b   :  { %16412 = vpush %v8690_v61 }
0x479c   :  { %s16413_s27 = spop %16412 }
0x479d   :  { %v8692_v25 = vstv %s16413_s27 }
0x479e   :  { %16455 = vrcp.f32 %v8692_v25 }
0x479f   :  { %16457 = vrsqrt.f32 %v8692_v25 }
0x47a8   :  { %v16456_v27 = vpop.eup %16455 }
0x47a9   :  { %v16458_v26 = vpop.eup %16457  ;;  %v8694_v28 = vmul.f32 %v16456_v27, %v8676_v12  ;;  %v8695_v29 = vmul.f32 %v16456_v27, %v8677_v8 }
0x47aa   :  { %16414 = vpush %v16458_v26 }
0x47ab   :  { %15357 = vmatprep.mubr.msk.f32.mxu1 %vm257_vm5, %v8694_v28  ;;  %v8696_v30 = vsub.f32 %v16634_v17, %v8694_v28  ;;  %v8697_v31 = vsub.f32 %v16631_v16, %v8695_v29 }
0x47ad   :  { %v8698_v32 = vmul.f32 0.5, %v8696_v30  ;;  %v8699_v10 = vmul.f32 0.5, %v8697_v31 }
0x47af   :  { %15364 = vmatprep.mubr.msk.f32.mxu0 %vm257_vm5, %v8698_v32  ;;  %v16160_v33 = vpack.c.bf16 %v8699_v10, %v8698_v32 }
0x47b1   :  { %16161 = vmatprep.subr.bf16.mxu1 %v16160_v33 }
0x47b2   :  { %16163 = vmatpush3.bf16.msra.mxu1 %v16160_v33 }
0x47b5   :  { %15358 = vmatmul.mubr.msk.f32.vlgmr.msra.gmra.mrb[98].mxu1 %vm257_vm5, %v8695_v29 }
0x47db   :  { %s16415_s28 = spop %16414 }
0x4888   :  { %v15359_v15 = vpop.f32.mrb[98].mxu1 }
0x4889   :  { %v8772_v35 = vpop.f32.mrb[99].mxu1 }
0x488a   :  { %v16164_v52 = vpack.c.bf16 %v15359_v15, %v8772_v35  ;;  %15371 = vmatprep.mubr.msk.f32.mxu1 %vm257_vm5, %v8772_v35 }
0x488c   :  { %16165 = vmatprep.subr.bf16.mxu0 %v16164_v52 }
0x488d   :  { %16167 = vmatpush3.bf16.msra.mxu0 %v16164_v52 }
0x488e   :  { %16173 = vmatprep.subr.bf16.mxu0 %v16160_v33 }
0x4890   :  { %15365 = vmatmul.mubr.msk.f32.vlgmr.msra.gmra.mrb[100].mxu0 %vm257_vm5, %v8699_v10 }
0x4891   :  { %16175 = vmatpush3.bf16.msra.mxu0 %v16160_v33 }
0x4963   :  { %v15366_v36 = vpop.f32.mrb[100].mxu0 }
0x4964   :  { %v8863_v48 = vsub.f32 %v16631_v16, %v15366_v36  ;;  %v8853_v39 = vpop.f32.mrb[101].mxu0 }
0x4965   :  { %v8862_v40 = vsub.f32 %v16634_v17, %v8853_v39 }
0x4966   :  { %v8865_v41 = vmul.f32 0.5, %v8863_v48 }
0x4967   :  { %v8864_v43 = vmul.f32 0.5, %v8862_v40 }
0x4969   :  { %v16168_v45 = vpack.c.bf16 %v8865_v41, %v8864_v43  ;;  %15378 = vmatprep.mubr.msk.f32.mxu0 %vm257_vm5, %v8864_v43 }
0x496a   :  { %15379 = vmatmul.mubr.msk.f32.vlgmr.msra.gmra.mrb[102].mxu0 %vm257_vm5, %v8865_v41 }
0x496b   :  { %16169 = vmatprep.subr.bf16.mxu1 %v16168_v45 }
0x496c   :  { %16171 = vmatpush3.bf16.msra.mxu1 %v16168_v45 }
0x496f   :  { %15372 = vmatmul.mubr.msk.f32.vlgmr.msra.gmra.mrb[100].mxu1 %vm257_vm5, %v15359_v15 }
0x4a3d   :  { %v15380_v38 = vpop.f32.mrb[102].mxu0 }
0x4a3e   :  { %v9019_v46 = vpop.f32.mrb[103].mxu0 }
0x4a3f   :  { %v16184_v63 = vpack.c.bf16 %v15380_v38, %v9019_v46  ;;  %15385 = vmatprep.mubr.msk.f32.mxu1 %vm257_vm5, %v9019_v46 }
0x4a42   :  { %v15373_v47 = vpop.f32.mrb[100].mxu1 }
0x4a43   :  { %v8938_v1 = vpop.f32.mrb[101].mxu1 }
0x4a44   :  { %v16176_v49 = vpack.c.bf16 %v15373_v47, %v8938_v1  ;;  %15392 = vmatprep.mubr.msk.f32.mxu0 %vm257_vm5, %v8938_v1 }
0x4a46   :  { %16177 = vmatprep.subr.bf16.mxu1 %v16176_v49 }
0x4a47   :  { %16179 = vmatpush3.bf16.msra.mxu1 %v16176_v49 }
0x4a48   :  { %16185 = vmatprep.subr.bf16.mxu1 %v16184_v63 }
0x4a4a   :  { %15386 = vmatmul.mubr.msk.f32.vlgmr.msra.gmra.mrb[102].mxu1 %vm257_vm5, %v15380_v38 }
0x4a4b   :  { %16187 = vmatpush3.bf16.msra.mxu1 %v16184_v63 }
0x4b1d   :  { %v15387_v50 = vpop.f32.mrb[102].mxu1 }
0x4b1e   :  { %v9110_v51 = vsub.f32 %v16631_v16, %v15387_v50  ;;  %v9100_v53 = vpop.f32.mrb[103].mxu1 }
0x4b1f   :  { %v9109_v54 = vsub.f32 %v16634_v17, %v9100_v53 }
0x4b20   :  { %v9112_v55 = vmul.f32 0.5, %v9110_v51 }
0x4b21   :  { %v9111_v56 = vmul.f32 0.5, %v9109_v54 }
0x4b23   :  { %v16180_v57 = vpack.c.bf16 %v9112_v55, %v9111_v56  ;;  %15399 = vmatprep.mubr.msk.f32.mxu1 %vm257_vm5, %v9111_v56 }
0x4b24   :  { %15400 = vmatmul.mubr.msk.f32.vlgmr.msra.gmra.mrb[104].mxu1 %vm257_vm5, %v9112_v55 }
0x4b25   :  { %16181 = vmatprep.subr.bf16.mxu0 %v16180_v57 }
0x4b26   :  { %16183 = vmatpush3.bf16.msra.mxu0 %v16180_v57 }
0x4b29   :  { %15393 = vmatmul.mubr.msk.f32.vlgmr.msra.gmra.mrb[104].mxu0 %vm257_vm5, %v15373_v47 }
0x4bf7   :  { %v15401_v0 = vpop.f32.mrb[104].mxu1 }
0x4bf8   :  { %v9266_v2 = vpop.f32.mrb[105].mxu1 }
0x4bf9   :  { %v16196_v3 = vpack.c.bf16 %v15401_v0, %v9266_v2  ;;  %15406 = vmatprep.mubr.msk.f32.mxu0 %vm257_vm5, %v9266_v2  ;;  %v10185_v2 = vstv %s16415_s28 }
0x4bfc   :  { %v15394_v8 = vpop.f32.mrb[104].mxu0 }
0x4bfd   :  { %v9185_v12 = vpop.f32.mrb[105].mxu0 }
0x4bfe   :  { %v16188_v13 = vpack.c.bf16 %v15394_v8, %v9185_v12  ;;  %15413 = vmatprep.mubr.msk.f32.mxu1 %vm257_vm5, %v9185_v12 }
0x4c00   :  { %16189 = vmatprep.subr.bf16.mxu0 %v16188_v13 }
0x4c01   :  { %16191 = vmatpush3.bf16.msra.mxu0 %v16188_v13 }
0x4c02   :  { %16197 = vmatprep.subr.bf16.mxu0 %v16196_v3 }
0x4c04   :  { %15407 = vmatmul.mubr.msk.f32.vlgmr.msra.gmra.mrb[106].mxu0 %vm257_vm5, %v15401_v0 }
0x4c05   :  { %16199 = vmatpush3.bf16.msra.mxu0 %v16196_v3 }
0x4cd7   :  { %v15408_v11 = vpop.f32.mrb[106].mxu0 }
0x4cd8   :  { %v9357_v14 = vsub.f32 %v16631_v16, %v15408_v11  ;;  %v9347_v18 = vpop.f32.mrb[107].mxu0 }
0x4cd9   :  { %v9356_v19 = vsub.f32 %v16634_v17, %v9347_v18 }
0x4cda   :  { %v9359_v20 = vmul.f32 0.5, %v9357_v14  ;;  %v10287_v14 = vpop.trf.xlu1 }
0x4cdb   :  { %v9358_v21 = vmul.f32 0.5, %v9356_v19 }
0x4cdd   :  { %v16192_v22 = vpack.c.bf16 %v9359_v20, %v9358_v21  ;;  %15420 = vmatprep.mubr.msk.f32.mxu0 %vm257_vm5, %v9358_v21 }
0x4cde   :  { %15421 = vmatmul.mubr.msk.f32.vlgmr.msra.gmra.mrb[108].mxu0 %vm257_vm5, %v9359_v20  ;;  %v10288_v18 = vpop.trf.xlu1  ;;  %v10303_v20 = vadd.f32 %v10287_v14, %v16935_v5 }
0x4cdf   :  { %16193 = vmatprep.subr.bf16.mxu1 %v16192_v22  ;;  %v10304_v19 = vadd.f32 %v10288_v18, %v16938_v6  ;;  %v8672_v6 = vsub.f32 0.0, %v17004_v9 }
0x4ce0   :  { %16195 = vmatpush3.bf16.msra.mxu1 %v16192_v22 }
0x4ce1   :  { %v17068_v22 = vmul.f32 0.5, %v10304_v19 }
0x4ce3   :  { %15414 = vmatmul.mubr.msk.f32.vlgmr.msra.gmra.mrb[106].mxu1 %vm257_vm5, %v15394_v8 }
0x4db1   :  { %v15422_v23 = vpop.f32.mrb[108].mxu0 }
0x4db2   :  { %v9513_v62 = vpop.f32.mrb[109].mxu0 }
0x4db3   :  { %v16208_v24 = vpack.c.bf16 %v15422_v23, %v9513_v62  ;;  %15427 = vmatprep.mubr.msk.f32.mxu1 %vm257_vm5, %v9513_v62 }
0x4db6   :  { %v15415_v61 = vpop.f32.mrb[106].mxu1 }
0x4db7   :  { %v9432_v25 = vpop.f32.mrb[107].mxu1 }
0x4db8   :  { %v16200_v27 = vpack.c.bf16 %v15415_v61, %v9432_v25  ;;  %15434 = vmatprep.mubr.msk.f32.mxu0 %vm257_vm5, %v9432_v25 }
0x4dba   :  { %16201 = vmatprep.subr.bf16.mxu1 %v16200_v27 }
0x4dbb   :  { %16203 = vmatpush3.bf16.msra.mxu1 %v16200_v27 }
0x4dbc   :  { %16209 = vmatprep.subr.bf16.mxu1 %v16208_v24 }
0x4dbe   :  { %15428 = vmatmul.mubr.msk.f32.vlgmr.msra.gmra.mrb[108].mxu1 %vm257_vm5, %v15422_v23 }
0x4dbf   :  { %16211 = vmatpush3.bf16.msra.mxu1 %v16208_v24  ;;  %v17070_v24 = vmul.f32 0.5, %v10303_v20 }
0x4e91   :  { %v15429_v26 = vpop.f32.mrb[108].mxu1 }
0x4e92   :  { %v9604_v28 = vsub.f32 %v16631_v16, %v15429_v26  ;;  %v9594_v29 = vpop.f32.mrb[109].mxu1  ;;  %v8673_v26 = vsub.f32 0.0, %v17000_v7 }
0x4e93   :  { %v9603_v30 = vsub.f32 %v16634_v17, %v9594_v29 }
0x4e94   :  { %v9606_v31 = vmul.f32 0.5, %v9604_v28 }
0x4e95   :  { %v9605_v32 = vmul.f32 0.5, %v9603_v30 }
0x4e97   :  { %v16204_v10 = vpack.c.bf16 %v9606_v31, %v9605_v32  ;;  %15441 = vmatprep.mubr.msk.f32.mxu1 %vm257_vm5, %v9605_v32 }
0x4e98   :  { %15442 = vmatmul.mubr.msk.f32.vlgmr.msra.gmra.mrb[110].mxu1 %vm257_vm5, %v9606_v31  ;;  %v8671_v31 = vmax.f32 %v17000_v7, 0.0 }
0x4e99   :  { %16205 = vmatprep.subr.bf16.mxu0 %v16204_v10 }
0x4e9a   :  { %16207 = vmatpush3.bf16.msra.mxu0 %v16204_v10 }
0x4e9d   :  { %15435 = vmatmul.mubr.msk.f32.vlgmr.msra.gmra.mrb[110].mxu0 %vm257_vm5, %v15415_v61 }
0x4f6b   :  { %v15443_v33 = vpop.f32.mrb[110].mxu1 }
0x4f6c   :  { %v9760_v15 = vpop.f32.mrb[111].mxu1 }
0x4f6d   :  { %v16220_v35 = vpack.c.bf16 %v15443_v33, %v9760_v15  ;;  %15448 = vmatprep.mubr.msk.f32.mxu0 %vm257_vm5, %v9760_v15 }
0x4f70   :  { %v15436_v52 = vpop.f32.mrb[110].mxu0 }
0x4f71   :  { %v9679_v36 = vpop.f32.mrb[111].mxu0 }
0x4f72   :  { %v16212_v48 = vpack.c.bf16 %v15436_v52, %v9679_v36  ;;  %15455 = vmatprep.mubr.msk.f32.mxu1 %vm257_vm5, %v9679_v36 }
0x4f74   :  { %16213 = vmatprep.subr.bf16.mxu0 %v16212_v48 }
0x4f75   :  { %16215 = vmatpush3.bf16.msra.mxu0 %v16212_v48 }
0x4f76   :  { %16221 = vmatprep.subr.bf16.mxu0 %v16220_v35 }
0x4f78   :  { %15449 = vmatmul.mubr.msk.f32.vlgmr.msra.gmra.mrb[112].mxu0 %vm257_vm5, %v15443_v33  ;;  %v8670_v33 = vmax.f32 %v17004_v9, 0.0 }
0x4f79   :  { %16223 = vmatpush3.bf16.msra.mxu0 %v16220_v35 }
0x504b   :  { %v15450_v39 = vpop.f32.mrb[112].mxu0 }
0x504c   :  { %v9851_v40 = vsub.f32 %v16631_v16, %v15450_v39  ;;  %v9841_v41 = vpop.f32.mrb[113].mxu0  ;;  %v8674_v39 = vmax.f32 %v8672_v6, 0.0 }
0x504d   :  { %v9850_v43 = vsub.f32 %v16634_v17, %v9841_v41 }
0x504e   :  { %v9853_v45 = vmul.f32 0.5, %v9851_v40 }
0x504f   :  { %v9852_v38 = vmul.f32 0.5, %v9850_v43 }
0x5051   :  { %v16216_v46 = vpack.c.bf16 %v9853_v45, %v9852_v38  ;;  %15462 = vmatprep.mubr.msk.f32.mxu0 %vm257_vm5, %v9852_v38 }
0x5052   :  { %15463 = vmatmul.mubr.msk.f32.vlgmr.msra.gmra.mrb[114].mxu0 %vm257_vm5, %v9853_v45 }
0x5053   :  { %16217 = vmatprep.subr.bf16.mxu1 %v16216_v46 }
0x5054   :  { %16219 = vmatpush3.bf16.msra.mxu1 %v16216_v46 }
0x5057   :  { %15456 = vmatmul.mubr.msk.f32.vlgmr.msra.gmra.mrb[112].mxu1 %vm257_vm5, %v15436_v52  ;;  %v8675_v52 = vmax.f32 %v8673_v26, 0.0 }
0x5125   :  { %v15464_v63 = vpop.f32.mrb[114].mxu0 }
0x5126   :  { %v10007_v47 = vpop.f32.mrb[115].mxu0 }
0x5127   :  { %v16228_v1 = vpack.c.bf16 %v15464_v63, %v10007_v47  ;;  %15469 = vmatprep.mubr.msk.f32.mxu1 %vm257_vm5, %v10007_v47 }
0x5129   :  { %16229 = vmatprep.subr.bf16.mxu0 %v16228_v1 }
0x512a   :  { %v15457_v49 = vpop.f32.mrb[112].mxu1  ;;  %16231 = vmatpush3.bf16.msra.mxu0 %v16228_v1 }
0x512b   :  { %v9926_v50 = vpop.f32.mrb[113].mxu1 }
0x512c   :  { %v16224_v51 = vpack.c.bf16 %v15457_v49, %v9926_v50 }
0x512e   :  { %16225 = vmatprep.subr.bf16.mxu1 %v16224_v51 }
0x512f   :  { %16227 = vmatpush3.bf16.msra.mxu1 %v16224_v51 }
0x5132   :  { %15470 = vmatmul.mubr.msk.f32.vlgmr.msra.gmra.mrb[114].mxu1 %vm257_vm5, %v15464_v63 }
0x5205   :  { %v15471_v53 = vpop.f32.mrb[114].mxu1 }
0x5206   :  { %v10098_v54 = vsub.f32 %v16631_v16, %v15471_v53  ;;  %v10088_v55 = vpop.f32.mrb[115].mxu1 }
0x5207   :  { %v10097_v56 = vsub.f32 %v16634_v17, %v10088_v55 }
0x5208   :  { %v10100_v0 = vmul.f32 0.5, %v10098_v54 }
0x5209   :  { %v10099_v57 = vmul.f32 0.5, %v10097_v56 }
0x520b   :  { %15476 = vmatprep.mubr.msk.f32.mxu0 %vm257_vm5, %v10099_v57 }
0x520c   :  { %15477 = vmatmul.mubr.msk.f32.vlgmr.msra.gmra.mrb[116].mxu0 %vm257_vm5, %v10100_v0 }
0x52df   :  { %v15478_v3 = vpop.f32.mrb[116].mxu0 }
0x52e0   :  { %v10187_v8 = vmul.f32 %v15478_v3, %v10185_v2  ;;  %v10173_v12 = vpop.f32.mrb[117].mxu0 }
0x52e1   :  { %v10186_v13 = vmul.f32 %v10185_v2, %v10173_v12 }
0x52e3   :  { %v16232_v11 = vpack.c.bf16 %v10187_v8, %v10186_v13  ;;  %15483 = vmatprep.mubr.msk.f32.mxu1 %vm257_vm5, %v10186_v13 }
0x52e5   :  { %16233 = vmatprep.subr.bf16.mxu1 %v16232_v11 }
0x52e6   :  { %16235 = vmatpush3.bf16.msra.mxu1 %v16232_v11 }
0x52e9   :  { %15484 = vmatmul.mubr.msk.f32.vlgmr.msra.gmra.mrb[116].mxu1 %vm257_vm5, %v10187_v8 }
0x53bc   :  { %v15485_v21 = vpop.f32.mrb[116].mxu1 }
0x53bd   :  { %v10270_v23 = vsub.f32 0.0, %v15485_v21  ;;  %v10260_v62 = vpop.f32.mrb[117].mxu1 }
0x53be   :  { %v10269_v61 = vsub.f32 0.0, %v10260_v62 }
0x53bf   :  { %v10308_v25 = vadd.f32 %v17068_v22, %v10270_v23 }
0x53c0   :  { %v10307_v27 = vadd.f32 %v17070_v24, %v10269_v61 }
0x53c1   :  { %v10310_v28 = vadd.f32 0.07, %v10308_v25  ;;  %v10318_v29 = vsub.f32 0.0, %v10308_v25 }
0x53c2   :  { %v10309_v30 = vadd.f32 0.07, %v10307_v27  ;;  %v10317_v5 = vsub.f32 0.0, %v10307_v27 }
0x53c3   :  { %v10312_v32 = vmul.f32 5.0, %v10310_v28  ;;  %v10320_v10 = vadd.f32 0.07, %v10318_v29 }
0x53c4   :  { %v10311_v15 = vmul.f32 5.0, %v10309_v30  ;;  %v10319_v35 = vadd.f32 0.07, %v10317_v5 }
0x53c5   :  { %v10314_v36 = vsub.f32 %v8671_v31, %v10312_v32  ;;  %v10322_v48 = vmul.f32 5.0, %v10320_v10 }
0x53c6   :  { %v10313_v40 = vsub.f32 %v8670_v33, %v10311_v15  ;;  %v10321_v41 = vmul.f32 5.0, %v10319_v35 }
0x53c7   :  { %v10324_v43 = vsub.f32 %v8675_v52, %v10322_v48  ;;  %v10316_v38 = vmax.f32 %v10314_v36, 0.0 }
0x53c8   :  { %v10323_v45 = vsub.f32 %v8674_v39, %v10321_v41  ;;  %v10315_v63 = vmax.f32 %v10313_v40, 0.0 }
0x53c9   :  { %v10326_v46 = vmax.f32 %v10324_v43, 0.0 }
0x53ca   :  { %v10325_v47 = vmax.f32 %v10323_v45, 0.0 }
0x53cb   :  { %v10328_v1 = vsub.f32 %v10316_v38, %v10326_v46 }
0x53cc   :  { %v10327_v7 = vsub.f32 %v10315_v63, %v10325_v47 }
0x53ce   :  { %10329 = vxpose.xlu0.b32.start [1/2] (short) (narrow) %v10327_v7, 16 }
0x53d2   :  { %10330 = vxpose.xlu0.b32.end [2/2] (short) (narrow) %v10328_v1, 16 }
0x544e   :  { %v10345_v49 = vpop.trf.xlu0 }
0x544f   :  { %v10361_v9 = vadd.f32 %v10345_v49, %v10327_v7 }
0x5451   :  { %v17078_v50 = vmul.f32 0.5, %v10361_v9 }
0x5452   :  { %v10346_v51 = vpop.trf.xlu0 }
0x5453   :  { %v10371_v53 = vadd.f32 %v17078_v50, %v16610_v58  ;;  %v10362_v54 = vadd.f32 %v10346_v51, %v10328_v1 }
0x5455   :  { %v17082_v55 = vmul.f32 0.5, %v10362_v54  ;;  %v10373_v57 = vmul.f32 %v16599_v37, %v10371_v53 }
0x5457   :  { %v10372_v56 = vadd.f32 %v17082_v55, %v16612_v59  ;;  %v10375_v2 = vsel %vm257_vm5, %v10373_v57, 0.0 }
0x5459   :  { %v10374_v0 = vmul.f32 %v16597_v34, %v10372_v56 }
0x545b   :  { %v10376_v3 = vsel %vm257_vm5, %v10374_v0, 0.0 }
0x545c   :  { %v10377_v8 = vadd.f32 %v10376_v3, %v10375_v2 }
0x545e   :  { %10378 = vadd.xlane.f32.xlu1 %v10377_v8 }
0x5491   :  { %6844 = vxpose.xlu1.b32.start [1/2] (short) (narrow) %v16926_v42, 16 }
0x5495   :  { %6845 = vxpose.xlu1.b32.end [2/2] (short) (narrow) %v16924_v44, 16 }
0x54eb   :  { %v10379_v12 = vpop.xlane.xlu1 %10378 }
0x54ec   :  { %v10380_v13 = vrot.slane %v10379_v12, 4 }
0x54ee   :  { %v10381_v11 = vadd.f32 %v10380_v13, %v10379_v12 }
0x54f0   :  { %v10382_v14 = vrot.slane %v10381_v11, 2 }
0x54f2   :  { %v10383_v18 = vadd.f32 %v10382_v14, %v10381_v11 }
0x54f4   :  { %v10384_v19 = vrot.slane %v10383_v18, 1 }
0x54f6   :  { %v10385_v20 = vadd.f32 %v10384_v19, %v10383_v18 }
0x54f8   :  { %16416 = vpush %v10385_v20 }
0x5511   :  { %v6860_v21 = vpop.trf.xlu1 }
0x5512   :  { %v6876_v23 = vadd.f32 %v6860_v21, %v16926_v42 }
0x5514   :  { %v6878_v62 = vmul.f32 0.5, %v6876_v23 }
0x5515   :  { %v6861_v61 = vpop.trf.xlu1 }
0x5516   :  { %v6880_v25 = vmul.f32 %v16614_v60, %v6878_v62  ;;  %v6877_v27 = vadd.f32 %v6861_v61, %v16924_v44 }
0x5518   :  { %6882 = vst.msk [vmem:[#allocation5] sm:$0xff] %vm257_vm5, %v6880_v25  ;;  %v6879_v26 = vmul.f32 0.5, %v6877_v27 }
0x551a   :  { %v6881_v28 = vmul.f32 %v16614_v60, %v6879_v26 }
0x551c   :  { %6883 = vst.msk [vmem:[#allocation5 + $0x8] sm:$0xff] %vm257_vm5, %v6881_v28 }
0x5529   :  { %s16417_s29 = spop %16416 }
0x552a   :  { %v10387_v29 = vstv %s16417_s29 }
0x552b   :  { %16459 = vrcp.f32 %v10387_v29 }
0x552c   :  { %16461 = vrsqrt.f32 %v10387_v29 }
0x5535   :  { %v16460_v6 = vpop.eup %16459 }
0x5536   :  { %v16462_v30 = vpop.eup %16461  ;;  %v10389_v42 = vmul.f32 %v16460_v6, %v10371_v53  ;;  %v10390_v5 = vmul.f32 %v16460_v6, %v10372_v56 }
0x5537   :  { %16418 = vpush %v16462_v30 }
0x5538   :  { %15490 = vmatprep.mubr.msk.f32.mxu0 %vm257_vm5, %v10389_v42  ;;  %v10391_v44 = vsub.f32 %v16634_v17, %v10389_v42  ;;  %v10392_v31 = vsub.f32 %v16631_v16, %v10390_v5 }
0x553a   :  { %v10393_v32 = vmul.f32 0.5, %v10391_v44  ;;  %v10394_v10 = vmul.f32 0.5, %v10392_v31 }
0x553c   :  { %15497 = vmatprep.mubr.msk.f32.mxu1 %vm257_vm5, %v10393_v32  ;;  %v16236_v60 = vpack.c.bf16 %v10394_v10, %v10393_v32 }
0x553e   :  { %16237 = vmatprep.subr.bf16.mxu0 %v16236_v60 }
0x553f   :  { %16239 = vmatpush3.bf16.msra.mxu0 %v16236_v60 }
0x5542   :  { %15491 = vmatmul.mubr.msk.f32.vlgmr.msra.gmra.mrb[118].mxu0 %vm257_vm5, %v10390_v5 }
0x5568   :  { %s16419_s30 = spop %16418 }
0x5615   :  { %v15492_v33 = vpop.f32.mrb[118].mxu0 }
0x5616   :  { %v10467_v15 = vpop.f32.mrb[119].mxu0 }
0x5617   :  { %v16240_v35 = vpack.c.bf16 %v15492_v33, %v10467_v15  ;;  %15504 = vmatprep.mubr.msk.f32.mxu0 %vm257_vm5, %v10467_v15 }
0x5619   :  { %16241 = vmatprep.subr.bf16.mxu1 %v16240_v35 }
0x561a   :  { %16243 = vmatpush3.bf16.msra.mxu1 %v16240_v35 }
0x561b   :  { %16249 = vmatprep.subr.bf16.mxu1 %v16236_v60 }
0x561d   :  { %15498 = vmatmul.mubr.msk.f32.vlgmr.msra.gmra.mrb[118].mxu1 %vm257_vm5, %v10394_v10 }
0x561e   :  { %16251 = vmatpush3.bf16.msra.mxu1 %v16236_v60 }
0x56f0   :  { %v15499_v52 = vpop.f32.mrb[118].mxu1 }
0x56f1   :  { %v10558_v36 = vsub.f32 %v16631_v16, %v15499_v52  ;;  %v10548_v48 = vpop.f32.mrb[119].mxu1 }
0x56f2   :  { %v10557_v39 = vsub.f32 %v16634_v17, %v10548_v48 }
0x56f3   :  { %v10560_v40 = vmul.f32 0.5, %v10558_v36 }
0x56f4   :  { %v10559_v41 = vmul.f32 0.5, %v10557_v39 }
0x56f6   :  { %v16244_v43 = vpack.c.bf16 %v10560_v40, %v10559_v41  ;;  %15511 = vmatprep.mubr.msk.f32.mxu1 %vm257_vm5, %v10559_v41 }
0x56f7   :  { %15512 = vmatmul.mubr.msk.f32.vlgmr.msra.gmra.mrb[120].mxu1 %vm257_vm5, %v10560_v40 }
0x56f8   :  { %16245 = vmatprep.subr.bf16.mxu0 %v16244_v43 }
0x56f9   :  { %16247 = vmatpush3.bf16.msra.mxu0 %v16244_v43 }
0x56fc   :  { %15505 = vmatmul.mubr.msk.f32.vlgmr.msra.gmra.mrb[120].mxu0 %vm257_vm5, %v15492_v33 }
0x57ca   :  { %v15513_v45 = vpop.f32.mrb[120].mxu1 }
0x57cb   :  { %v10714_v38 = vpop.f32.mrb[121].mxu1 }
0x57cc   :  { %v16260_v46 = vpack.c.bf16 %v15513_v45, %v10714_v38  ;;  %15518 = vmatprep.mubr.msk.f32.mxu0 %vm257_vm5, %v10714_v38 }
0x57cf   :  { %v15506_v63 = vpop.f32.mrb[120].mxu0 }
0x57d0   :  { %v10633_v47 = vpop.f32.mrb[121].mxu0 }
0x57d1   :  { %v16252_v1 = vpack.c.bf16 %v15506_v63, %v10633_v47  ;;  %15525 = vmatprep.mubr.msk.f32.mxu1 %vm257_vm5, %v10633_v47 }
0x57d3   :  { %16253 = vmatprep.subr.bf16.mxu0 %v16252_v1 }
0x57d4   :  { %16255 = vmatpush3.bf16.msra.mxu0 %v16252_v1 }
0x57d5   :  { %16261 = vmatprep.subr.bf16.mxu0 %v16260_v46 }
0x57d7   :  { %15519 = vmatmul.mubr.msk.f32.vlgmr.msra.gmra.mrb[122].mxu0 %vm257_vm5, %v15513_v45 }
0x57d8   :  { %16263 = vmatpush3.bf16.msra.mxu0 %v16260_v46 }
0x58aa   :  { %v15520_v7 = vpop.f32.mrb[122].mxu0 }
0x58ab   :  { %v10805_v49 = vsub.f32 %v16631_v16, %v15520_v7  ;;  %v10795_v9 = vpop.f32.mrb[123].mxu0 }
0x58ac   :  { %v10804_v51 = vsub.f32 %v16634_v17, %v10795_v9 }
0x58ad   :  { %v10807_v53 = vmul.f32 0.5, %v10805_v49 }
0x58ae   :  { %v10806_v54 = vmul.f32 0.5, %v10804_v51 }
0x58b0   :  { %v16256_v56 = vpack.c.bf16 %v10807_v53, %v10806_v54  ;;  %15532 = vmatprep.mubr.msk.f32.mxu0 %vm257_vm5, %v10806_v54  ;;  %v11880_v54 = vstv %s16419_s30 }
0x58b1   :  { %15533 = vmatmul.mubr.msk.f32.vlgmr.msra.gmra.mrb[124].mxu0 %vm257_vm5, %v10807_v53 }
0x58b2   :  { %16257 = vmatprep.subr.bf16.mxu1 %v16256_v56 }
0x58b3   :  { %16259 = vmatpush3.bf16.msra.mxu1 %v16256_v56 }
0x58b6   :  { %15526 = vmatmul.mubr.msk.f32.vlgmr.msra.gmra.mrb[122].mxu1 %vm257_vm5, %v15506_v63 }
0x5984   :  { %v15534_v57 = vpop.f32.mrb[124].mxu0 }
0x5985   :  { %v10961_v0 = vpop.f32.mrb[125].mxu0 }
0x5986   :  { %v16272_v2 = vpack.c.bf16 %v15534_v57, %v10961_v0  ;;  %15539 = vmatprep.mubr.msk.f32.mxu1 %vm257_vm5, %v10961_v0 }
0x5989   :  { %v15527_v3 = vpop.f32.mrb[122].mxu1 }
0x598a   :  { %v10880_v8 = vpop.f32.mrb[123].mxu1 }
0x598b   :  { %v16264_v12 = vpack.c.bf16 %v15527_v3, %v10880_v8  ;;  %15546 = vmatprep.mubr.msk.f32.mxu0 %vm257_vm5, %v10880_v8 }
0x598d   :  { %16265 = vmatprep.subr.bf16.mxu1 %v16264_v12 }
0x598e   :  { %16267 = vmatpush3.bf16.msra.mxu1 %v16264_v12 }
0x598f   :  { %16273 = vmatprep.subr.bf16.mxu1 %v16272_v2 }
0x5991   :  { %15540 = vmatmul.mubr.msk.f32.vlgmr.msra.gmra.mrb[124].mxu1 %vm257_vm5, %v15534_v57 }
0x5992   :  { %16275 = vmatpush3.bf16.msra.mxu1 %v16272_v2 }
0x5a64   :  { %v15541_v13 = vpop.f32.mrb[124].mxu1 }
0x5a65   :  { %v11052_v11 = vsub.f32 %v16631_v16, %v15541_v13  ;;  %v11042_v14 = vpop.f32.mrb[125].mxu1 }
0x5a66   :  { %v11051_v18 = vsub.f32 %v16634_v17, %v11042_v14 }
0x5a67   :  { %v11054_v19 = vmul.f32 0.5, %v11052_v11 }
0x5a68   :  { %v11053_v20 = vmul.f32 0.5, %v11051_v18 }
0x5a6a   :  { %v16268_v21 = vpack.c.bf16 %v11054_v19, %v11053_v20  ;;  %15553 = vmatprep.mubr.msk.f32.mxu1 %vm257_vm5, %v11053_v20 }
0x5a6b   :  { %15554 = vmatmul.mubr.msk.f32.vlgmr.msra.gmra.mrb[126].mxu1 %vm257_vm5, %v11054_v19  ;;  %v10368_v19 = vsub.f32 0.0, %v17082_v55 }
0x5a6c   :  { %16269 = vmatprep.subr.bf16.mxu0 %v16268_v21 }
0x5a6d   :  { %16271 = vmatpush3.bf16.msra.mxu0 %v16268_v21 }
0x5a70   :  { %15547 = vmatmul.mubr.msk.f32.vlgmr.msra.gmra.mrb[126].mxu0 %vm257_vm5, %v15527_v3 }
0x5b3e   :  { %v15555_v23 = vpop.f32.mrb[126].mxu1 }
0x5b3f   :  { %v11208_v62 = vpop.f32.mrb[127].mxu1 }
0x5b40   :  { %v16284_v61 = vpack.c.bf16 %v15555_v23, %v11208_v62  ;;  %15560 = vmatprep.mubr.msk.f32.mxu0 %vm257_vm5, %v11208_v62 }
0x5b43   :  { %v15548_v25 = vpop.f32.mrb[126].mxu0 }
0x5b44   :  { %v11127_v27 = vpop.f32.mrb[127].mxu0 }
0x5b45   :  { %v16276_v26 = vpack.c.bf16 %v15548_v25, %v11127_v27  ;;  %15567 = vmatprep.mubr.msk.f32.mxu1 %vm257_vm5, %v11127_v27 }
0x5b47   :  { %16277 = vmatprep.subr.bf16.mxu0 %v16276_v26 }
0x5b48   :  { %16279 = vmatpush3.bf16.msra.mxu0 %v16276_v26 }
0x5b49   :  { %16285 = vmatprep.subr.bf16.mxu0 %v16284_v61 }
0x5b4b   :  { %15561 = vmatmul.mubr.msk.f32.vlgmr.msra.gmra.mrb[128].mxu0 %vm257_vm5, %v15555_v23  ;;  %v10367_v23 = vsub.f32 0.0, %v17078_v50 }
0x5b4c   :  { %16287 = vmatpush3.bf16.msra.mxu0 %v16284_v61 }
0x5c1e   :  { %v15562_v28 = vpop.f32.mrb[128].mxu0 }
0x5c1f   :  { %v11299_v29 = vsub.f32 %v16631_v16, %v15562_v28  ;;  %v11289_v6 = vpop.f32.mrb[129].mxu0  ;;  %v10365_v28 = vmax.f32 %v17078_v50, 0.0 }
0x5c20   :  { %v11298_v30 = vsub.f32 %v16634_v17, %v11289_v6 }
0x5c21   :  { %v11301_v42 = vmul.f32 0.5, %v11299_v29 }
0x5c22   :  { %v11300_v5 = vmul.f32 0.5, %v11298_v30  ;;  %v10370_v30 = vmax.f32 %v10368_v19, 0.0 }
0x5c24   :  { %v16280_v44 = vpack.c.bf16 %v11301_v42, %v11300_v5  ;;  %15574 = vmatprep.mubr.msk.f32.mxu0 %vm257_vm5, %v11300_v5 }
0x5c25   :  { %15575 = vmatmul.mubr.msk.f32.vlgmr.msra.gmra.mrb[130].mxu0 %vm257_vm5, %v11301_v42 }
0x5c26   :  { %16281 = vmatprep.subr.bf16.mxu1 %v16280_v44 }
0x5c27   :  { %16283 = vmatpush3.bf16.msra.mxu1 %v16280_v44  ;;  %v10369_v44 = vmax.f32 %v10367_v23, 0.0 }
0x5c2a   :  { %15568 = vmatmul.mubr.msk.f32.vlgmr.msra.gmra.mrb[128].mxu1 %vm257_vm5, %v15548_v25  ;;  %v10366_v25 = vmax.f32 %v17082_v55, 0.0 }
0x5cf8   :  { %v15576_v31 = vpop.f32.mrb[130].mxu0 }
0x5cf9   :  { %v11455_v32 = vpop.f32.mrb[131].mxu0 }
0x5cfa   :  { %v16296_v10 = vpack.c.bf16 %v15576_v31, %v11455_v32  ;;  %15581 = vmatprep.mubr.msk.f32.mxu1 %vm257_vm5, %v11455_v32 }
0x5cfd   :  { %v15569_v60 = vpop.f32.mrb[128].mxu1 }
0x5cfe   :  { %v11374_v33 = vpop.f32.mrb[129].mxu1 }
0x5cff   :  { %v16288_v15 = vpack.c.bf16 %v15569_v60, %v11374_v33  ;;  %15588 = vmatprep.mubr.msk.f32.mxu0 %vm257_vm5, %v11374_v33 }
0x5d01   :  { %16289 = vmatprep.subr.bf16.mxu1 %v16288_v15 }
0x5d02   :  { %16291 = vmatpush3.bf16.msra.mxu1 %v16288_v15 }
0x5d03   :  { %16297 = vmatprep.subr.bf16.mxu1 %v16296_v10 }
0x5d05   :  { %15582 = vmatmul.mubr.msk.f32.vlgmr.msra.gmra.mrb[130].mxu1 %vm257_vm5, %v15576_v31 }
0x5d06   :  { %16299 = vmatpush3.bf16.msra.mxu1 %v16296_v10 }
0x5dd8   :  { %v15583_v35 = vpop.f32.mrb[130].mxu1 }
0x5dd9   :  { %v11546_v52 = vsub.f32 %v16631_v16, %v15583_v35  ;;  %v11536_v36 = vpop.f32.mrb[131].mxu1 }
0x5dda   :  { %v11545_v48 = vsub.f32 %v16634_v17, %v11536_v36 }
0x5ddb   :  { %v11548_v39 = vmul.f32 0.5, %v11546_v52 }
0x5ddc   :  { %v11547_v40 = vmul.f32 0.5, %v11545_v48 }
0x5dde   :  { %v16292_v41 = vpack.c.bf16 %v11548_v39, %v11547_v40  ;;  %15595 = vmatprep.mubr.msk.f32.mxu1 %vm257_vm5, %v11547_v40 }
0x5ddf   :  { %15596 = vmatmul.mubr.msk.f32.vlgmr.msra.gmra.mrb[132].mxu1 %vm257_vm5, %v11548_v39 }
0x5de0   :  { %16293 = vmatprep.subr.bf16.mxu0 %v16292_v41 }
0x5de1   :  { %16295 = vmatpush3.bf16.msra.mxu0 %v16292_v41 }
0x5de4   :  { %15589 = vmatmul.mubr.msk.f32.vlgmr.msra.gmra.mrb[132].mxu0 %vm257_vm5, %v15569_v60 }
0x5eb2   :  { %v15597_v43 = vpop.f32.mrb[132].mxu1 }
0x5eb3   :  { %v11702_v45 = vpop.f32.mrb[133].mxu1 }
0x5eb4   :  { %v16304_v38 = vpack.c.bf16 %v15597_v43, %v11702_v45  ;;  %15602 = vmatprep.mubr.msk.f32.mxu0 %vm257_vm5, %v11702_v45 }
0x5eb6   :  { %16305 = vmatprep.subr.bf16.mxu1 %v16304_v38 }
0x5eb7   :  { %v15590_v46 = vpop.f32.mrb[132].mxu0  ;;  %16307 = vmatpush3.bf16.msra.mxu1 %v16304_v38 }
0x5eb8   :  { %v11621_v63 = vpop.f32.mrb[133].mxu0 }
0x5eb9   :  { %v16300_v47 = vpack.c.bf16 %v15590_v46, %v11621_v63 }
0x5ebb   :  { %16301 = vmatprep.subr.bf16.mxu0 %v16300_v47 }
0x5ebc   :  { %16303 = vmatpush3.bf16.msra.mxu0 %v16300_v47 }
0x5ebf   :  { %15603 = vmatmul.mubr.msk.f32.vlgmr.msra.gmra.mrb[134].mxu0 %vm257_vm5, %v15597_v43 }
0x5f92   :  { %v15604_v1 = vpop.f32.mrb[134].mxu0 }
0x5f93   :  { %v11793_v7 = vsub.f32 %v16631_v16, %v15604_v1  ;;  %v11783_v49 = vpop.f32.mrb[135].mxu0 }
0x5f94   :  { %v11792_v9 = vsub.f32 %v16634_v17, %v11783_v49 }
0x5f95   :  { %v11795_v53 = vmul.f32 0.5, %v11793_v7 }
0x5f96   :  { %v11794_v51 = vmul.f32 0.5, %v11792_v9 }
0x5f98   :  { %15609 = vmatprep.mubr.msk.f32.mxu1 %vm257_vm5, %v11794_v51 }
0x5f99   :  { %15610 = vmatmul.mubr.msk.f32.vlgmr.msra.gmra.mrb[134].mxu1 %vm257_vm5, %v11795_v53 }
0x606c   :  { %v15611_v56 = vpop.f32.mrb[134].mxu1 }
0x606d   :  { %v11882_v57 = vmul.f32 %v15611_v56, %v11880_v54  ;;  %v11868_v0 = vpop.f32.mrb[135].mxu1 }
0x606e   :  { %v11881_v2 = vmul.f32 %v11880_v54, %v11868_v0 }
0x6070   :  { %v16308_v3 = vpack.c.bf16 %v11882_v57, %v11881_v2  ;;  %15616 = vmatprep.mubr.msk.f32.mxu0 %vm257_vm5, %v11881_v2 }
0x6072   :  { %16309 = vmatprep.subr.bf16.mxu0 %v16308_v3 }
0x6073   :  { %16311 = vmatpush3.bf16.msra.mxu0 %v16308_v3 }
0x6076   :  { %15617 = vmatmul.mubr.msk.f32.vlgmr.msra.gmra.mrb[136].mxu0 %vm257_vm5, %v11882_v57 }
0x6149   :  { %v15618_v8 = vpop.f32.mrb[136].mxu0 }
0x614a   :  { %v11965_v12 = vsub.f32 0.0, %v15618_v8  ;;  %v11955_v13 = vpop.f32.mrb[137].mxu0 }
0x614b   :  { %v11964_v11 = vsub.f32 0.0, %v11955_v13 }
0x614c   :  { %v11967_v14 = vadd.f32 %v11965_v12, %v17068_v22 }
0x614d   :  { %v11966_v18 = vadd.f32 %v11964_v11, %v17070_v24 }
0x614e   :  { %v11969_v20 = vadd.f32 0.07, %v11967_v14  ;;  %v11977_v21 = vsub.f32 0.0, %v11967_v14 }
0x614f   :  { %v11968_v62 = vadd.f32 0.07, %v11966_v18  ;;  %v11976_v61 = vsub.f32 0.0, %v11966_v18 }
0x6150   :  { %v11971_v27 = vmul.f32 2.5, %v11969_v20  ;;  %v11979_v26 = vadd.f32 0.07, %v11977_v21 }
0x6151   :  { %v11970_v29 = vmul.f32 2.5, %v11968_v62  ;;  %v11978_v6 = vadd.f32 0.07, %v11976_v61 }
0x6152   :  { %v11973_v42 = vsub.f32 %v10366_v25, %v11971_v27  ;;  %v11981_v5 = vmul.f32 2.5, %v11979_v26 }
0x6153   :  { %v11980_v31 = vmul.f32 2.5, %v11978_v6  ;;  %v11972_v32 = vsub.f32 %v10365_v28, %v11970_v29 }
0x6154   :  { %v11983_v10 = vsub.f32 %v10370_v30, %v11981_v5  ;;  %v11975_v33 = vmax.f32 %v11973_v42, 0.0 }
0x6155   :  { %v11982_v60 = vsub.f32 %v10369_v44, %v11980_v31  ;;  %v11974_v35 = vmax.f32 %v11972_v32, 0.0 }
0x6156   :  { %v11985_v15 = vmax.f32 %v11983_v10, 0.0 }
0x6157   :  { %v11984_v52 = vmax.f32 %v11982_v60, 0.0 }
0x6158   :  { %v11987_v36 = vsub.f32 %v11975_v33, %v11985_v15 }
0x6159   :  { %v11986_v55 = vsub.f32 %v11974_v35, %v11984_v52 }
0x615b   :  { %11988 = vxpose.xlu0.b32.start [1/2] (short) (narrow) %v11986_v55, 16 }
0x615f   :  { %11989 = vxpose.xlu0.b32.end [2/2] (short) (narrow) %v11987_v36, 16 }
0x61db   :  { %v12004_v48 = vpop.trf.xlu0 }
0x61dc   :  { %v12020_v50 = vadd.f32 %v12004_v48, %v11986_v55 }
0x61de   :  { %v17156_v39 = vmul.f32 0.5, %v12020_v50 }
0x61df   :  { %v12005_v40 = vpop.trf.xlu0 }
0x61e0   :  { %v12030_v41 = vadd.f32 %v17156_v39, %v16610_v58  ;;  %v12021_v43 = vadd.f32 %v12005_v40, %v11987_v36 }
0x61e2   :  { %v17160_v45 = vmul.f32 0.5, %v12021_v43  ;;  %v12032_v46 = vmul.f32 %v16599_v37, %v12030_v41 }
0x61e4   :  { %v12031_v38 = vadd.f32 %v17160_v45, %v16612_v59  ;;  %v12034_v47 = vsel %vm257_vm5, %v12032_v46, 0.0 }
0x61e6   :  { %v12033_v63 = vmul.f32 %v16597_v34, %v12031_v38 }
0x61e8   :  { %v12035_v1 = vsel %vm257_vm5, %v12033_v63, 0.0 }
0x61e9   :  { %v12036_v7 = vadd.f32 %v12035_v1, %v12034_v47 }
0x61eb   :  { %12037 = vadd.xlane.f32.xlu0 %v12036_v7 }
0x6278   :  { %v12038_v49 = vpop.xlane.xlu0 %12037 }
0x6279   :  { %v12039_v9 = vrot.slane %v12038_v49, 4 }
0x627b   :  { %v12040_v51 = vadd.f32 %v12039_v9, %v12038_v49 }
0x627d   :  { %v12041_v58 = vrot.slane %v12040_v51, 2 }
0x627f   :  { %v12042_v53 = vadd.f32 %v12041_v58, %v12040_v51 }
0x6281   :  { %v12043_v54 = vrot.slane %v12042_v53, 1 }
0x6283   :  { %v12044_v56 = vadd.f32 %v12043_v54, %v12042_v53 }
0x6285   :  { %16420 = vpush %v12044_v56 }
0x62b6   :  { %s16421_s5 = spop %16420 }
0x62b7   :  { %v12046_v59 = vstv %s16421_s5 }
0x62b8   :  { %16463 = vrcp.f32 %v12046_v59 }
0x62b9   :  { %16465 = vrsqrt.f32 %v12046_v59 }
0x62c2   :  { %v16464_v37 = vpop.eup %16463 }
0x62c3   :  { %v16466_v34 = vpop.eup %16465  ;;  %v12048_v57 = vmul.f32 %v16464_v37, %v12030_v41  ;;  %v12049_v0 = vmul.f32 %v16464_v37, %v12031_v38 }
0x62c4   :  { %16422 = vpush %v16466_v34 }
0x62c5   :  { %15623 = vmatprep.mubr.msk.f32.mxu1 %vm257_vm5, %v12048_v57  ;;  %v12050_v2 = vsub.f32 %v16634_v17, %v12048_v57  ;;  %v12051_v3 = vsub.f32 %v16631_v16, %v12049_v0 }
0x62c7   :  { %v12052_v8 = vmul.f32 0.5, %v12050_v2  ;;  %v12053_v12 = vmul.f32 0.5, %v12051_v3 }
0x62c9   :  { %15630 = vmatprep.mubr.msk.f32.mxu0 %vm257_vm5, %v12052_v8  ;;  %v16312_v13 = vpack.c.bf16 %v12053_v12, %v12052_v8 }
0x62cb   :  { %16313 = vmatprep.subr.bf16.mxu1 %v16312_v13 }
0x62cc   :  { %16315 = vmatpush3.bf16.msra.mxu1 %v16312_v13 }
0x62cf   :  { %15624 = vmatmul.mubr.msk.f32.vlgmr.msra.gmra.mrb[136].mxu1 %vm257_vm5, %v12049_v0 }
0x62f5   :  { %s16423_s6 = spop %16422 }
0x63a2   :  { %v15625_v11 = vpop.f32.mrb[136].mxu1 }
0x63a3   :  { %v12126_v14 = vpop.f32.mrb[137].mxu1 }
0x63a4   :  { %v16316_v18 = vpack.c.bf16 %v15625_v11, %v12126_v14  ;;  %15637 = vmatprep.mubr.msk.f32.mxu1 %vm257_vm5, %v12126_v14 }
0x63a6   :  { %16317 = vmatprep.subr.bf16.mxu0 %v16316_v18 }
0x63a7   :  { %16319 = vmatpush3.bf16.msra.mxu0 %v16316_v18 }
0x63a8   :  { %16325 = vmatprep.subr.bf16.mxu0 %v16312_v13 }
0x63aa   :  { %15631 = vmatmul.mubr.msk.f32.vlgmr.msra.gmra.mrb[138].mxu0 %vm257_vm5, %v12053_v12 }
0x63ab   :  { %16327 = vmatpush3.bf16.msra.mxu0 %v16312_v13 }
0x647d   :  { %v15632_v19 = vpop.f32.mrb[138].mxu0 }
0x647e   :  { %v12217_v20 = vsub.f32 %v16631_v16, %v15632_v19  ;;  %v12207_v21 = vpop.f32.mrb[139].mxu0 }
0x647f   :  { %v12216_v23 = vsub.f32 %v16634_v17, %v12207_v21 }
0x6480   :  { %v12219_v62 = vmul.f32 0.5, %v12217_v20 }
0x6481   :  { %v12218_v61 = vmul.f32 0.5, %v12216_v23 }
0x6483   :  { %v16320_v25 = vpack.c.bf16 %v12219_v62, %v12218_v61  ;;  %15644 = vmatprep.mubr.msk.f32.mxu0 %vm257_vm5, %v12218_v61 }
0x6484   :  { %15645 = vmatmul.mubr.msk.f32.vlgmr.msra.gmra.mrb[140].mxu0 %vm257_vm5, %v12219_v62 }
0x6485   :  { %16321 = vmatprep.subr.bf16.mxu1 %v16320_v25 }
0x6486   :  { %16323 = vmatpush3.bf16.msra.mxu1 %v16320_v25 }
0x6489   :  { %15638 = vmatmul.mubr.msk.f32.vlgmr.msra.gmra.mrb[138].mxu1 %vm257_vm5, %v15625_v11 }
0x6557   :  { %v15646_v27 = vpop.f32.mrb[140].mxu0 }
0x6558   :  { %v12373_v26 = vpop.f32.mrb[141].mxu0 }
0x6559   :  { %v16336_v28 = vpack.c.bf16 %v15646_v27, %v12373_v26  ;;  %15651 = vmatprep.mubr.msk.f32.mxu1 %vm257_vm5, %v12373_v26 }
0x655c   :  { %v15639_v29 = vpop.f32.mrb[138].mxu1 }
0x655d   :  { %v12292_v6 = vpop.f32.mrb[139].mxu1 }
0x655e   :  { %v16328_v30 = vpack.c.bf16 %v15639_v29, %v12292_v6  ;;  %15658 = vmatprep.mubr.msk.f32.mxu0 %vm257_vm5, %v12292_v6 }
0x6560   :  { %16329 = vmatprep.subr.bf16.mxu1 %v16328_v30 }
0x6561   :  { %16331 = vmatpush3.bf16.msra.mxu1 %v16328_v30 }
0x6562   :  { %16337 = vmatprep.subr.bf16.mxu1 %v16336_v28 }
0x6564   :  { %15652 = vmatmul.mubr.msk.f32.vlgmr.msra.gmra.mrb[140].mxu1 %vm257_vm5, %v15646_v27 }
0x6565   :  { %16339 = vmatpush3.bf16.msra.mxu1 %v16336_v28 }
0x6637   :  { %v15653_v42 = vpop.f32.mrb[140].mxu1 }
0x6638   :  { %v12464_v5 = vsub.f32 %v16631_v16, %v15653_v42  ;;  %v12454_v44 = vpop.f32.mrb[141].mxu1 }
0x6639   :  { %v12463_v31 = vsub.f32 %v16634_v17, %v12454_v44 }
0x663a   :  { %v12466_v32 = vmul.f32 0.5, %v12464_v5  ;;  %v13539_v5 = vstv %s16423_s6 }
0x663b   :  { %v12465_v10 = vmul.f32 0.5, %v12463_v31 }
0x663d   :  { %v16332_v60 = vpack.c.bf16 %v12466_v32, %v12465_v10  ;;  %15665 = vmatprep.mubr.msk.f32.mxu1 %vm257_vm5, %v12465_v10 }
0x663e   :  { %15666 = vmatmul.mubr.msk.f32.vlgmr.msra.gmra.mrb[142].mxu1 %vm257_vm5, %v12466_v32 }
0x663f   :  { %16333 = vmatprep.subr.bf16.mxu0 %v16332_v60 }
0x6640   :  { %16335 = vmatpush3.bf16.msra.mxu0 %v16332_v60 }
0x6643   :  { %15659 = vmatmul.mubr.msk.f32.vlgmr.msra.gmra.mrb[142].mxu0 %vm257_vm5, %v15639_v29 }
0x6711   :  { %v15667_v33 = vpop.f32.mrb[142].mxu1 }
0x6712   :  { %v12620_v15 = vpop.f32.mrb[143].mxu1 }
0x6713   :  { %v16348_v35 = vpack.c.bf16 %v15667_v33, %v12620_v15  ;;  %15672 = vmatprep.mubr.msk.f32.mxu0 %vm257_vm5, %v12620_v15 }
0x6716   :  { %v15660_v52 = vpop.f32.mrb[142].mxu0 }
0x6717   :  { %v12539_v36 = vpop.f32.mrb[143].mxu0 }
0x6718   :  { %v16340_v55 = vpack.c.bf16 %v15660_v52, %v12539_v36  ;;  %15679 = vmatprep.mubr.msk.f32.mxu1 %vm257_vm5, %v12539_v36  ;;  %v12027_v36 = vsub.f32 0.0, %v17160_v45 }
0x671a   :  { %16341 = vmatprep.subr.bf16.mxu0 %v16340_v55 }
0x671b   :  { %16343 = vmatpush3.bf16.msra.mxu0 %v16340_v55 }
0x671c   :  { %16349 = vmatprep.subr.bf16.mxu0 %v16348_v35 }
0x671e   :  { %15673 = vmatmul.mubr.msk.f32.vlgmr.msra.gmra.mrb[144].mxu0 %vm257_vm5, %v15667_v33 }
0x671f   :  { %16351 = vmatpush3.bf16.msra.mxu0 %v16348_v35 }
0x67f1   :  { %v15674_v48 = vpop.f32.mrb[144].mxu0 }
0x67f2   :  { %v12711_v50 = vsub.f32 %v16631_v16, %v15674_v48  ;;  %v12701_v40 = vpop.f32.mrb[145].mxu0 }
0x67f3   :  { %v12710_v41 = vsub.f32 %v16634_v17, %v12701_v40 }
0x67f4   :  { %v12713_v43 = vmul.f32 0.5, %v12711_v50  ;;  %v12026_v50 = vsub.f32 0.0, %v17156_v39 }
0x67f5   :  { %v12712_v38 = vmul.f32 0.5, %v12710_v41 }
0x67f7   :  { %v16344_v46 = vpack.c.bf16 %v12713_v43, %v12712_v38  ;;  %15686 = vmatprep.mubr.msk.f32.mxu0 %vm257_vm5, %v12712_v38 }
0x67f8   :  { %15687 = vmatmul.mubr.msk.f32.vlgmr.msra.gmra.mrb[146].mxu0 %vm257_vm5, %v12713_v43  ;;  %v12025_v43 = vmax.f32 %v17160_v45, 0.0 }
0x67f9   :  { %16345 = vmatprep.subr.bf16.mxu1 %v16344_v46 }
0x67fa   :  { %16347 = vmatpush3.bf16.msra.mxu1 %v16344_v46 }
0x67fd   :  { %15680 = vmatmul.mubr.msk.f32.vlgmr.msra.gmra.mrb[144].mxu1 %vm257_vm5, %v15660_v52 }
0x68cb   :  { %v15688_v63 = vpop.f32.mrb[146].mxu0 }
0x68cc   :  { %v12867_v47 = vpop.f32.mrb[147].mxu0 }
0x68cd   :  { %v16360_v1 = vpack.c.bf16 %v15688_v63, %v12867_v47  ;;  %15693 = vmatprep.mubr.msk.f32.mxu1 %vm257_vm5, %v12867_v47 }
0x68d0   :  { %v15681_v7 = vpop.f32.mrb[144].mxu1 }
0x68d1   :  { %v12786_v49 = vpop.f32.mrb[145].mxu1 }
0x68d2   :  { %v16352_v9 = vpack.c.bf16 %v15681_v7, %v12786_v49  ;;  %15700 = vmatprep.mubr.msk.f32.mxu0 %vm257_vm5, %v12786_v49 }
0x68d4   :  { %16353 = vmatprep.subr.bf16.mxu1 %v16352_v9 }
0x68d5   :  { %16355 = vmatpush3.bf16.msra.mxu1 %v16352_v9 }
0x68d6   :  { %16361 = vmatprep.subr.bf16.mxu1 %v16360_v1 }
0x68d8   :  { %15694 = vmatmul.mubr.msk.f32.vlgmr.msra.gmra.mrb[146].mxu1 %vm257_vm5, %v15688_v63  ;;  %v12024_v63 = vmax.f32 %v17156_v39, 0.0 }
0x68d9   :  { %16363 = vmatpush3.bf16.msra.mxu1 %v16360_v1 }
0x69ab   :  { %v15695_v51 = vpop.f32.mrb[146].mxu1 }
0x69ac   :  { %v12958_v58 = vsub.f32 %v16631_v16, %v15695_v51  ;;  %v12948_v53 = vpop.f32.mrb[147].mxu1 }
0x69ad   :  { %v12957_v54 = vsub.f32 %v16634_v17, %v12948_v53 }
0x69ae   :  { %v12960_v56 = vmul.f32 0.5, %v12958_v58 }
0x69af   :  { %v12959_v59 = vmul.f32 0.5, %v12957_v54 }
0x69b1   :  { %v16356_v37 = vpack.c.bf16 %v12960_v56, %v12959_v59  ;;  %15707 = vmatprep.mubr.msk.f32.mxu1 %vm257_vm5, %v12959_v59 }
0x69b2   :  { %15708 = vmatmul.mubr.msk.f32.vlgmr.msra.gmra.mrb[148].mxu1 %vm257_vm5, %v12960_v56 }
0x69b3   :  { %16357 = vmatprep.subr.bf16.mxu0 %v16356_v37 }
0x69b4   :  { %16359 = vmatpush3.bf16.msra.mxu0 %v16356_v37 }
0x69b7   :  { %15701 = vmatmul.mubr.msk.f32.vlgmr.msra.gmra.mrb[148].mxu0 %vm257_vm5, %v15681_v7  ;;  %v12029_v7 = vmax.f32 %v12027_v36, 0.0 }
0x6a85   :  { %v15709_v34 = vpop.f32.mrb[148].mxu1 }
0x6a86   :  { %v13114_v57 = vpop.f32.mrb[149].mxu1 }
0x6a87   :  { %v16372_v0 = vpack.c.bf16 %v15709_v34, %v13114_v57  ;;  %15714 = vmatprep.mubr.msk.f32.mxu0 %vm257_vm5, %v13114_v57 }
0x6a8a   :  { %v15702_v2 = vpop.f32.mrb[148].mxu0 }
0x6a8b   :  { %v13033_v3 = vpop.f32.mrb[149].mxu0 }
0x6a8c   :  { %v16364_v8 = vpack.c.bf16 %v15702_v2, %v13033_v3  ;;  %15721 = vmatprep.mubr.msk.f32.mxu1 %vm257_vm5, %v13033_v3 }
0x6a8e   :  { %16365 = vmatprep.subr.bf16.mxu0 %v16364_v8 }
0x6a8f   :  { %16367 = vmatpush3.bf16.msra.mxu0 %v16364_v8 }
0x6a90   :  { %16373 = vmatprep.subr.bf16.mxu0 %v16372_v0 }
0x6a92   :  { %15715 = vmatmul.mubr.msk.f32.vlgmr.msra.gmra.mrb[150].mxu0 %vm257_vm5, %v15709_v34 }
0x6a93   :  { %16375 = vmatpush3.bf16.msra.mxu0 %v16372_v0 }
0x6b65   :  { %v15716_v12 = vpop.f32.mrb[150].mxu0 }
0x6b66   :  { %v13205_v13 = vsub.f32 %v16631_v16, %v15716_v12  ;;  %v13195_v11 = vpop.f32.mrb[151].mxu0 }
0x6b67   :  { %v13204_v14 = vsub.f32 %v16634_v17, %v13195_v11 }
0x6b68   :  { %v13207_v18 = vmul.f32 0.5, %v13205_v13 }
0x6b69   :  { %v13206_v19 = vmul.f32 0.5, %v13204_v14 }
0x6b6b   :  { %v16368_v20 = vpack.c.bf16 %v13207_v18, %v13206_v19  ;;  %15728 = vmatprep.mubr.msk.f32.mxu0 %vm257_vm5, %v13206_v19 }
0x6b6c   :  { %15729 = vmatmul.mubr.msk.f32.vlgmr.msra.gmra.mrb[152].mxu0 %vm257_vm5, %v13207_v18 }
0x6b6d   :  { %16369 = vmatprep.subr.bf16.mxu1 %v16368_v20 }
0x6b6e   :  { %16371 = vmatpush3.bf16.msra.mxu1 %v16368_v20 }
0x6b71   :  { %15722 = vmatmul.mubr.msk.f32.vlgmr.msra.gmra.mrb[150].mxu1 %vm257_vm5, %v15702_v2 }
0x6c3f   :  { %v15730_v21 = vpop.f32.mrb[152].mxu0 }
0x6c40   :  { %v13361_v23 = vpop.f32.mrb[153].mxu0 }
0x6c41   :  { %v16380_v62 = vpack.c.bf16 %v15730_v21, %v13361_v23  ;;  %15735 = vmatprep.mubr.msk.f32.mxu1 %vm257_vm5, %v13361_v23 }
0x6c43   :  { %16381 = vmatprep.subr.bf16.mxu0 %v16380_v62 }
0x6c44   :  { %v15723_v61 = vpop.f32.mrb[150].mxu1  ;;  %16383 = vmatpush3.bf16.msra.mxu0 %v16380_v62 }
0x6c45   :  { %v13280_v25 = vpop.f32.mrb[151].mxu1 }
0x6c46   :  { %v16376_v27 = vpack.c.bf16 %v15723_v61, %v13280_v25 }
0x6c48   :  { %16377 = vmatprep.subr.bf16.mxu1 %v16376_v27 }
0x6c49   :  { %16379 = vmatpush3.bf16.msra.mxu1 %v16376_v27 }
0x6c4c   :  { %15736 = vmatmul.mubr.msk.f32.vlgmr.msra.gmra.mrb[152].mxu1 %vm257_vm5, %v15730_v21 }
0x6d1f   :  { %v15737_v26 = vpop.f32.mrb[152].mxu1 }
0x6d20   :  { %v13452_v28 = vsub.f32 %v16631_v16, %v15737_v26  ;;  %v13442_v29 = vpop.f32.mrb[153].mxu1 }
0x6d21   :  { %v13451_v6 = vsub.f32 %v16634_v17, %v13442_v29 }
0x6d22   :  { %v13454_v42 = vmul.f32 0.5, %v13452_v28 }
0x6d23   :  { %v13453_v30 = vmul.f32 0.5, %v13451_v6 }
0x6d25   :  { %15742 = vmatprep.mubr.msk.f32.mxu0 %vm257_vm5, %v13453_v30 }
0x6d26   :  { %15743 = vmatmul.mubr.msk.f32.vlgmr.msra.gmra.mrb[154].mxu0 %vm257_vm5, %v13454_v42 }
0x6df9   :  { %v15744_v44 = vpop.f32.mrb[154].mxu0 }
0x6dfa   :  { %v13541_v31 = vmul.f32 %v15744_v44, %v13539_v5  ;;  %v13527_v32 = vpop.f32.mrb[155].mxu0 }
0x6dfb   :  { %v13540_v10 = vmul.f32 %v13539_v5, %v13527_v32 }
0x6dfd   :  { %v16384_v60 = vpack.c.bf16 %v13541_v31, %v13540_v10  ;;  %15749 = vmatprep.mubr.msk.f32.mxu1 %vm257_vm5, %v13540_v10 }
0x6dff   :  { %16385 = vmatprep.subr.bf16.mxu1 %v16384_v60 }
0x6e00   :  { %16387 = vmatpush3.bf16.msra.mxu1 %v16384_v60 }
0x6e03   :  { %15750 = vmatmul.mubr.msk.f32.vlgmr.msra.gmra.mrb[154].mxu1 %vm257_vm5, %v13541_v31 }
0x6ed6   :  { %v15751_v16 = vpop.f32.mrb[154].mxu1 }
0x6ed7   :  { %v13624_v17 = vsub.f32 0.0, %v15751_v16  ;;  %v13614_v33 = vpop.f32.mrb[155].mxu1 }
0x6ed8   :  { %v13623_v15 = vsub.f32 0.0, %v13614_v33 }
0x6ed9   :  { %v13626_v35 = vadd.f32 %v13624_v17, %v17068_v22 }
0x6eda   :  { %v13625_v52 = vadd.f32 %v13623_v15, %v17070_v24  ;;  %v12028_v24 = vmax.f32 %v12026_v50, 0.0 }
0x6edb   :  { %v13628_v55 = vadd.f32 0.07, %v13626_v35  ;;  %v13636_v48 = vsub.f32 0.0, %v13626_v35 }
0x6edc   :  { %v13627_v40 = vadd.f32 0.07, %v13625_v52  ;;  %v13635_v41 = vsub.f32 0.0, %v13625_v52 }
0x6edd   :  { %v13630_v38 = vmul.f32 0.0, %v13628_v55  ;;  %v13638_v46 = vadd.f32 0.07, %v13636_v48 }
0x6ede   :  { %v13629_v47 = vmul.f32 0.0, %v13627_v40  ;;  %v13637_v1 = vadd.f32 0.07, %v13635_v41 }
0x6edf   :  { %v13632_v22 = vsub.f32 %v12025_v43, %v13630_v38  ;;  %v13640_v49 = vmul.f32 0.0, %v13638_v46 }
0x6ee0   :  { %v13631_v9 = vsub.f32 %v12024_v63, %v13629_v47  ;;  %v13639_v51 = vmul.f32 0.0, %v13637_v1 }
0x6ee1   :  { %v13642_v58 = vsub.f32 %v12029_v7, %v13640_v49  ;;  %v13634_v54 = vmax.f32 %v13632_v22, 0.0 }
0x6ee2   :  { %v13641_v53 = vsub.f32 %v12028_v24, %v13639_v51  ;;  %v13633_v59 = vmax.f32 %v13631_v9, 0.0 }
0x6ee3   :  { %v13644_v56 = vmax.f32 %v13642_v58, 0.0 }
0x6ee4   :  { %v13643_v37 = vmax.f32 %v13641_v53, 0.0 }
0x6ee5   :  { %v13646_v34 = vsub.f32 %v13634_v54, %v13644_v56 }
0x6ee6   :  { %v13645_v45 = vsub.f32 %v13633_v59, %v13643_v37 }
0x6ee8   :  { %13647 = vxpose.xlu0.b32.start [1/2] (short) (narrow) %v13645_v45, 16 }
0x6eec   :  { %13648 = vxpose.xlu0.b32.end [2/2] (short) (narrow) %v13646_v34, 16 }
0x6f68   :  { %v13663_v57 = vpop.trf.xlu0 }
0x6f69   :  { %v13679_v39 = vadd.f32 %v13663_v57, %v13645_v45 }
0x6f6b   :  { %v13681_v0 = vmul.f32 0.5, %v13679_v39 }
0x6f6c   :  { %v13664_v2 = vpop.trf.xlu0 }
0x6f6d   :  { %v13683_v3 = vmul.f32 %v16932_v4, %v13681_v0  ;;  %v13680_v8 = vadd.f32 %v13664_v2, %v13646_v34 }
0x6f6f   :  { %13686 = vst.msk [vmem:[#allocation5 + $0x10] sm:$0xff] %vm257_vm5, %v13683_v3  ;;  %v13682_v12 = vmul.f32 0.5, %v13680_v8 }
0x6f71   :  { %v13684_v13 = vmul.f32 %v16932_v4, %v13682_v12 }
0x6f73   :  { %13687 = vst.msk [vmem:[#allocation5 + $0x18] sm:$0xff] %vm257_vm5, %v13684_v13 }
0x6f74   :  { %16502 = shalt.err (!%p16499_p12)
}
0x6f75   :  { %s16503_s10 = scalar_lea.hbm %s17249_s4, 512 }
0x6f76   :  { %p16504_p13 = scmp.ne.s32.totalorder %s17249_s4, %s16503_s10  ;;  %p16507_p0 = scmp.lt.u32.totalorder %s16503_s10, %s17249_s4 }
0x6f78   :  { %p16509_p1 = pnand %p16507_p0, %p16504_p13 }
0x6f7a   :  { %16512 = shalt.err (!%p16509_p1)
}
0x6f7b   :  { %13699 = dma.vmem_to_hbm [thread:$0]  %s13694_s7, 512, %s17249_s4, [#allocation4], %s16518_s25, %s16518_s25, %s16519_s26  }
0x6f7c   :  { %16515 = dma.done.wait [#allocation4], 512  }
0x6f7d   :  { %16516 = vsyncadd [#allocation4], 4294966784 }
0x6f7e   :  { %13703 = vsyncpa [#allocation3], 1 }
0x6f7f   :  { %13704 = vsyncpa [#allocation4], 1 }

</bundles_post_ra>
